<compile_context>
chip_gen: v5e
topology: v5e:2x2
jax: 0.10.0
libtpu: 0.0.40
codegen_flags: <defaults>
</compile_context>

<pallas_src>
import functools

import jax
import jax.numpy as jnp
from jax import lax
from jax.experimental import pallas as pl
from jax.experimental.pallas import tpu as pltpu


# ----------------------------------------------------------------------------
# helpers
# ----------------------------------------------------------------------------
def _pick_tile(dim, cap, align):
    """Largest `align`-aligned divisor of `dim` that is <= cap; else full dim."""
    if dim <= cap:
        return dim
    t = cap - (cap % align)
    while t >= align:
        if dim % t == 0:
            return t
        t -= align
    return dim


def _vmem_limit_bytes():
    """~75% of physical VMEM; leaves headroom for double buffers / scratch."""
    try:
        cap = pltpu.get_tpu_info().vmem_capacity_bytes
        return int(min(cap * 3 // 4, 96 << 20))
    except Exception:
        return 48 << 20  # safe on every generation (v7x physical is 64 MiB)


# ----------------------------------------------------------------------------
# fully fused kernel: qkv projection + multi-head attention + output projection
# ----------------------------------------------------------------------------
def _fused_attention_kernel(
    x_ref, wqkv_ref, bqkv_ref, wproj_ref, bproj_ref, o_ref,
    q_scr, k_scr, v_scr, head_scr,
    *, num_heads, head_dim, scale, tq,
):
    qi = pl.program_id(1)
    C = num_heads * head_dim
    cdt = wqkv_ref.dtype  # matmul-operand dtype (bf16), accumulation stays f32

    # ---- once per batch element: fused qkv projection into VMEM scratch ----
    @pl.when(qi == 0)
    def _():
        x = x_ref[0].astype(cdt)                                    # (S, C)
        qkv = jnp.dot(x, wqkv_ref[...], preferred_element_type=jnp.float32)
        qkv = qkv + bqkv_ref[...]                                   # (S, 3C) f32
        # pre-scale q once (S*C elements) instead of the (S, S) score matrices
        q_scr[...] = (qkv[:, :C] * scale).astype(cdt)
        k_scr[...] = qkv[:, C:2 * C].astype(cdt)
        v_scr[...] = qkv[:, 2 * C:].astype(cdt)

    # ---- per query tile: multi-head attention + fused output projection ----
    row0 = pl.multiple_of(qi * tq, tq)
    q_tile = q_scr[pl.ds(row0, tq), :]                              # (tq, C)

    # NOTE: with head_dim < 128 the per-head column slices are inherently
    # sub-vreg; heads are unrolled statically and results written straight
    # into the merged-head scratch (no concatenate epilogue).
    for h in range(num_heads):
        lo = h * head_dim
        hi = lo + head_dim
        q = q_tile[:, lo:hi]                                        # (tq, hd)
        k = k_scr[:, lo:hi]                                         # (S,  hd)
        v = v_scr[:, lo:hi]                                         # (S,  hd)

        # q @ k^T without an explicit transpose: contract the last dims.
        s = lax.dot_general(q, k, (((1,), (1,)), ((), ())),
                            preferred_element_type=jnp.float32)     # (tq, S)

        # numerically stable softmax in f32; divide via EUP reciprocal
        s = s - jnp.max(s, axis=-1, keepdims=True)
        p = jnp.exp(s)
        p = p * pl.reciprocal(jnp.sum(p, axis=-1, keepdims=True), approx=True)

        head_scr[:, lo:hi] = jnp.dot(
            p.astype(cdt), v, preferred_element_type=jnp.float32
        ).astype(cdt)

    # fused output projection; single lane-dense store in (B, S, C) layout
    out = jnp.dot(head_scr[...], wproj_ref[...],
                  preferred_element_type=jnp.float32) + bproj_ref[...]
    o_ref[0] = out.astype(o_ref.dtype)


def attention_forward(x, params, num_heads, *, q_block=256,
                      compute_dtype=jnp.bfloat16):
    """x: (B, HW, C) -> (B, HW, C); single fused pallas_call."""
    B, S, C = x.shape
    assert C % num_heads == 0
    head_dim = C // num_heads
    scale = float(C) ** (-0.5)  # matches PyTorch: self.scale = dim ** -0.5

    tq = _pick_tile(S, q_block, 8)   # divisor of S (falls back to full S)
    nq = S // tq

    # weights pre-cast to the matmul operand dtype (halves their VMEM / DMA);
    # biases stay f32 (added to the f32 accumulator).
    w_qkv = params["w_qkv"].astype(compute_dtype)
    w_proj = params["w_proj"].astype(compute_dtype)
    b_qkv = params["b_qkv"].reshape(1, 3 * C).astype(jnp.float32)
    b_proj = params["b_proj"].reshape(1, C).astype(jnp.float32)

    kern = functools.partial(
        _fused_attention_kernel,
        num_heads=num_heads, head_dim=head_dim, scale=scale, tq=tq,
    )

    return pl.pallas_call(
        kern,
        out_shape=jax.ShapeDtypeStruct((B, S, C), x.dtype),
        grid=(B, nq),
        in_specs=[
            pl.BlockSpec((1, S, C), lambda b, q: (b, 0, 0)),     # x (per batch, resident across q tiles)
            pl.BlockSpec((C, 3 * C), lambda b, q: (0, 0)),       # w_qkv  (VMEM resident)
            pl.BlockSpec((1, 3 * C), lambda b, q: (0, 0)),       # b_qkv
            pl.BlockSpec((C, C), lambda b, q: (0, 0)),           # w_proj (VMEM resident)
            pl.BlockSpec((1, C), lambda b, q: (0, 0)),           # b_proj
        ],
        out_specs=pl.BlockSpec((1, tq, C), lambda b, q: (b, q, 0)),
        scratch_shapes=[
            pltpu.VMEM((S, C), compute_dtype),    # q (pre-scaled)
            pltpu.VMEM((S, C), compute_dtype),    # k
            pltpu.VMEM((S, C), compute_dtype),    # v
            pltpu.VMEM((tq, C), compute_dtype),   # merged head outputs
        ],
        compiler_params=pltpu.CompilerParams(
            dimension_semantics=("parallel", "arbitrary"),
            vmem_limit_bytes=_vmem_limit_bytes(),
        ),
    )(x, w_qkv, b_qkv, w_proj, b_proj)


# ----------------------------------------------------------------------------
# Pure-JAX reference (mirrors the PyTorch forward exactly) for verification
# ----------------------------------------------------------------------------
def attention_reference(x, params, num_heads):
    B, HW, C = x.shape
    head_dim = C // num_heads
    scale = C ** (-0.5)
    qkv = x @ params["w_qkv"] + params["b_qkv"]
    qkv = qkv.reshape(B, HW, 3, num_heads, head_dim).transpose(2, 0, 3, 1, 4)
    q, k, v = qkv[0], qkv[1], qkv[2]
    attn = (q @ jnp.swapaxes(k, -2, -1)) * scale
    attn = jax.nn.softmax(attn, axis=-1)
    out = (attn @ v).transpose(0, 2, 1, 3).reshape(B, HW, C)
    return out @ params["w_proj"] + params["b_proj"]


def init_params(key, dim):
    """Deterministic parameter init (same shapes as the nn.Module's layers)."""
    k1, k2, k3, k4 = jax.random.split(key, 4)
    bound = 1.0 / (dim ** 0.5)
    return {
        # stored transposed relative to torch (so x @ w matches x @ W^T)
        "w_qkv": jax.random.uniform(k1, (dim, 3 * dim), jnp.float32, -bound, bound),
        "b_qkv": jax.random.uniform(k2, (3 * dim,), jnp.float32, -bound, bound),
        "w_proj": jax.random.uniform(k3, (dim, dim), jnp.float32, -bound, bound),
        "b_proj": jax.random.uniform(k4, (dim,), jnp.float32, -bound, bound),
    }


if __name__ == "__main__":
    B, HW, C = 2, 256, 32       # 16x16 spatial map flattened to 256 tokens
    num_heads = 4               # head_dim = 8

    key = jax.random.PRNGKey(0)
    kx, kp = jax.random.split(key)
    x = jax.random.normal(kx, (B, HW, C), jnp.float32)
    params = init_params(kp, C)

    # q_block=128 -> grid (B, 2): exercises the query-tile axis + scratch reuse
    out = attention_forward(x, params, num_heads, q_block=128)
    out = jax.block_until_ready(out)

    ref = attention_reference(x, params, num_heads)
    assert out.shape == (B, HW, C)
    err = float(jnp.max(jnp.abs(out - ref)))
    # tolerance accounts for bf16 matmul operands (f32 accumulation) and the
    # approx EUP reciprocal in the softmax denominator
    assert jnp.allclose(out, ref, atol=2e-2, rtol=2e-2), (
        f"mismatch: max abs err {err}"
    )

    print("KERNEL_OK")
</pallas_src>

<mosaic_0001>
module attributes {stable_mosaic.version = 11 : i64} {
  func.func @_fused_attention_kernel(%arg0: i32, %arg1: i32, %arg2: memref<1x256x32xf32, #tpu.memory_space<vmem>>, %arg3: memref<32x96xbf16, #tpu.memory_space<vmem>>, %arg4: memref<1x96xf32, #tpu.memory_space<vmem>>, %arg5: memref<32x32xbf16, #tpu.memory_space<vmem>>, %arg6: memref<1x32xf32, #tpu.memory_space<vmem>>, %arg7: memref<1x128x32xf32, #tpu.memory_space<vmem>>, %arg8: memref<256x32xbf16, #tpu.memory_space<vmem>>, %arg9: memref<256x32xbf16, #tpu.memory_space<vmem>>, %arg10: memref<256x32xbf16, #tpu.memory_space<vmem>>, %arg11: memref<128x32xbf16, #tpu.memory_space<vmem>>) attributes {dimension_semantics = [#tpu.dimension_semantics<parallel>, #tpu.dimension_semantics<arbitrary>], iteration_bounds = array<i64: 2, 2>, scalar_prefetch = 0 : i64, scratch_operands = 4 : i64, tpu.core_type = #tpu.core_type<tc>, window_params = [{transform_indices = @transform_0, window_bounds = array<i64: 1, 256, 32>}, {pipeline_mode = #tpu.pipeline_mode<synchronous>, transform_indices = @transform_1, window_bounds = array<i64: 32, 96>}, {pipeline_mode = #tpu.pipeline_mode<synchronous>, transform_indices = @transform_2, window_bounds = array<i64: 1, 96>}, {pipeline_mode = #tpu.pipeline_mode<synchronous>, transform_indices = @transform_3, window_bounds = array<i64: 32, 32>}, {pipeline_mode = #tpu.pipeline_mode<synchronous>, transform_indices = @transform_4, window_bounds = array<i64: 1, 32>}, {transform_indices = @transform_5, window_bounds = array<i64: 1, 128, 32>}]} {
    %c0_i32 = arith.constant 0 : i32
    %0 = arith.cmpi eq, %arg1, %c0_i32 : i32
    %1 = arith.extui %0 : i1 to i32
    %c0_i32_0 = arith.constant 0 : i32
    %2 = arith.cmpi ne, %1, %c0_i32_0 : i32
    scf.if %2 {
      %c0_47 = arith.constant 0 : index
      %c0_48 = arith.constant 0 : index
      %c0_49 = arith.constant 0 : index
      %88 = vector.load %arg2[%c0_47, %c0_48, %c0_49] : memref<1x256x32xf32, #tpu.memory_space<vmem>>, vector<1x256x32xf32>
      %89 = vector.shape_cast %88 : vector<1x256x32xf32> to vector<256x32xf32>
      %90 = arith.truncf %89 : vector<256x32xf32> to vector<256x32xbf16>
      %c0_50 = arith.constant 0 : index
      %c0_51 = arith.constant 0 : index
      %91 = vector.load %arg3[%c0_50, %c0_51] : memref<32x96xbf16, #tpu.memory_space<vmem>>, vector<32x96xbf16>
      %cst_52 = arith.constant dense<0.000000e+00> : vector<256x96xf32>
      %92 = tpu.matmul %90, %91, %cst_52 {dimension_numbers = #tpu.dot_dimension_numbers<[1], [0], [0], [1], [0, 0, 1, 1], [], []>} : vector<256x32xbf16>, vector<32x96xbf16>, vector<256x96xf32> -> vector<256x96xf32>
      %c0_53 = arith.constant 0 : index
      %c0_54 = arith.constant 0 : index
      %93 = vector.load %arg4[%c0_53, %c0_54] : memref<1x96xf32, #tpu.memory_space<vmem>>, vector<1x96xf32>
      %94 = vector.broadcast %93 : vector<1x96xf32> to vector<256x96xf32>
      %95 = arith.addf %92, %94 : vector<256x96xf32>
      %96 = vector.extract_strided_slice %95 {offsets = [0, 0], sizes = [256, 32], strides = [1, 1]} : vector<256x96xf32> to vector<256x32xf32>
      %cst_55 = arith.constant 0.176776692 : f32
      %97 = vector.broadcast %cst_55 : f32 to vector<256x32xf32>
      %98 = arith.mulf %96, %97 : vector<256x32xf32>
      %99 = arith.truncf %98 : vector<256x32xf32> to vector<256x32xbf16>
      %c0_56 = arith.constant 0 : index
      %c0_57 = arith.constant 0 : index
      %100 = vector.load %arg8[%c0_56, %c0_57] : memref<256x32xbf16, #tpu.memory_space<vmem>>, vector<256x32xbf16>
      tpu.vector_store %arg8[%c0_56, %c0_57], %99 {strides = array<i32>} : memref<256x32xbf16, #tpu.memory_space<vmem>>, vector<256x32xbf16>,
      %101 = vector.extract_strided_slice %95 {offsets = [0, 32], sizes = [256, 32], strides = [1, 1]} : vector<256x96xf32> to vector<256x32xf32>
      %102 = arith.truncf %101 : vector<256x32xf32> to vector<256x32xbf16>
      %c0_58 = arith.constant 0 : index
      %c0_59 = arith.constant 0 : index
      %103 = vector.load %arg9[%c0_58, %c0_59] : memref<256x32xbf16, #tpu.memory_space<vmem>>, vector<256x32xbf16>
      tpu.vector_store %arg9[%c0_58, %c0_59], %102 {strides = array<i32>} : memref<256x32xbf16, #tpu.memory_space<vmem>>, vector<256x32xbf16>,
      %104 = vector.extract_strided_slice %95 {offsets = [0, 64], sizes = [256, 32], strides = [1, 1]} : vector<256x96xf32> to vector<256x32xf32>
      %105 = arith.truncf %104 : vector<256x32xf32> to vector<256x32xbf16>
      %c0_60 = arith.constant 0 : index
      %c0_61 = arith.constant 0 : index
      %106 = vector.load %arg10[%c0_60, %c0_61] : memref<256x32xbf16, #tpu.memory_space<vmem>>, vector<256x32xbf16>
      tpu.vector_store %arg10[%c0_60, %c0_61], %105 {strides = array<i32>} : memref<256x32xbf16, #tpu.memory_space<vmem>>, vector<256x32xbf16>,
    } else {
    }
    %c128_i32 = arith.constant 128 : i32
    %3 = arith.muli %arg1, %c128_i32 : i32
    %4 = tpu.assume_multiple %3, 128 : i32
    %5 = arith.index_cast %4 : i32 to index
    %c0 = arith.constant 0 : index
    %6 = vector.load %arg8[%5, %c0] : memref<256x32xbf16, #tpu.memory_space<vmem>>, vector<128x32xbf16>
    %7 = vector.extract_strided_slice %6 {offsets = [0, 0], sizes = [128, 8], strides = [1, 1]} : vector<128x32xbf16> to vector<128x8xbf16>
    %c0_1 = arith.constant 0 : index
    %c0_2 = arith.constant 0 : index
    %8 = vector.load %arg9[%c0_1, %c0_2] : memref<256x32xbf16, #tpu.memory_space<vmem>>, vector<256x8xbf16>
    %c0_3 = arith.constant 0 : index
    %c0_4 = arith.constant 0 : index
    %9 = vector.load %arg10[%c0_3, %c0_4] : memref<256x32xbf16, #tpu.memory_space<vmem>>, vector<256x8xbf16>
    %cst = arith.constant dense<0.000000e+00> : vector<128x256xf32>
    %10 = tpu.matmul %7, %8, %cst {dimension_numbers = #tpu.dot_dimension_numbers<[1], [1], [0], [0], [0, 0, 1, 0], [], []>} : vector<128x8xbf16>, vector<256x8xbf16>, vector<128x256xf32> -> vector<128x256xf32>
    %cst_5 = arith.constant dense<0xFF800000> : vector<128xf32>
    %11 = vector.multi_reduction <maximumf>, %10, %cst_5 [1] : vector<128x256xf32> to vector<128xf32>
    %12 = vector.shape_cast %11 : vector<128xf32> to vector<128x1xf32>
    %13 = vector.broadcast %12 : vector<128x1xf32> to vector<128x256xf32>
    %14 = arith.subf %10, %13 : vector<128x256xf32>
    %15 = math.exp %14 : vector<128x256xf32>
    %cst_6 = arith.constant dense<0.000000e+00> : vector<128xf32>
    %16 = vector.multi_reduction <add>, %15, %cst_6 [1] : vector<128x256xf32> to vector<128xf32>
    %17 = vector.shape_cast %16 : vector<128xf32> to vector<128x1xf32>
    %18 = tpu.reciprocal %17 {approx = true} : vector<128x1xf32> -> vector<128x1xf32>
    %19 = vector.broadcast %18 : vector<128x1xf32> to vector<128x256xf32>
    %20 = arith.mulf %15, %19 : vector<128x256xf32>
    %21 = arith.truncf %20 : vector<128x256xf32> to vector<128x256xbf16>
    %cst_7 = arith.constant dense<0.000000e+00> : vector<128x8xf32>
    %22 = tpu.matmul %21, %9, %cst_7 {dimension_numbers = #tpu.dot_dimension_numbers<[1], [0], [0], [1], [0, 0, 1, 1], [], []>} : vector<128x256xbf16>, vector<256x8xbf16>, vector<128x8xf32> -> vector<128x8xf32>
    %23 = arith.truncf %22 : vector<128x8xf32> to vector<128x8xbf16>
    %c0_8 = arith.constant 0 : index
    %c0_9 = arith.constant 0 : index
    %24 = vector.load %arg11[%c0_8, %c0_9] : memref<128x32xbf16, #tpu.memory_space<vmem>>, vector<128x8xbf16>
    tpu.vector_store %arg11[%c0_8, %c0_9], %23 {strides = array<i32>} : memref<128x32xbf16, #tpu.memory_space<vmem>>, vector<128x8xbf16>,
    %25 = vector.extract_strided_slice %6 {offsets = [0, 8], sizes = [128, 8], strides = [1, 1]} : vector<128x32xbf16> to vector<128x8xbf16>
    %c0_10 = arith.constant 0 : index
    %c8 = arith.constant 8 : index
    %26 = vector.load %arg9[%c0_10, %c8] : memref<256x32xbf16, #tpu.memory_space<vmem>>, vector<256x8xbf16>
    %c0_11 = arith.constant 0 : index
    %c8_12 = arith.constant 8 : index
    %27 = vector.load %arg10[%c0_11, %c8_12] : memref<256x32xbf16, #tpu.memory_space<vmem>>, vector<256x8xbf16>
    %cst_13 = arith.constant dense<0.000000e+00> : vector<128x256xf32>
    %28 = tpu.matmul %25, %26, %cst_13 {dimension_numbers = #tpu.dot_dimension_numbers<[1], [1], [0], [0], [0, 0, 1, 0], [], []>} : vector<128x8xbf16>, vector<256x8xbf16>, vector<128x256xf32> -> vector<128x256xf32>
    %cst_14 = arith.constant dense<0xFF800000> : vector<128xf32>
    %29 = vector.multi_reduction <maximumf>, %28, %cst_14 [1] : vector<128x256xf32> to vector<128xf32>
    %30 = vector.shape_cast %29 : vector<128xf32> to vector<128x1xf32>
    %31 = vector.broadcast %30 : vector<128x1xf32> to vector<128x256xf32>
    %32 = arith.subf %28, %31 : vector<128x256xf32>
    %33 = math.exp %32 : vector<128x256xf32>
    %cst_15 = arith.constant dense<0.000000e+00> : vector<128xf32>
    %34 = vector.multi_reduction <add>, %33, %cst_15 [1] : vector<128x256xf32> to vector<128xf32>
    %35 = vector.shape_cast %34 : vector<128xf32> to vector<128x1xf32>
    %36 = tpu.reciprocal %35 {approx = true} : vector<128x1xf32> -> vector<128x1xf32>
    %37 = vector.broadcast %36 : vector<128x1xf32> to vector<128x256xf32>
    %38 = arith.mulf %33, %37 : vector<128x256xf32>
    %39 = arith.truncf %38 : vector<128x256xf32> to vector<128x256xbf16>
    %cst_16 = arith.constant dense<0.000000e+00> : vector<128x8xf32>
    %40 = tpu.matmul %39, %27, %cst_16 {dimension_numbers = #tpu.dot_dimension_numbers<[1], [0], [0], [1], [0, 0, 1, 1], [], []>} : vector<128x256xbf16>, vector<256x8xbf16>, vector<128x8xf32> -> vector<128x8xf32>
    %41 = arith.truncf %40 : vector<128x8xf32> to vector<128x8xbf16>
    %c0_17 = arith.constant 0 : index
    %c8_18 = arith.constant 8 : index
    %42 = vector.load %arg11[%c0_17, %c8_18] : memref<128x32xbf16, #tpu.memory_space<vmem>>, vector<128x8xbf16>
    tpu.vector_store %arg11[%c0_17, %c8_18], %41 {strides = array<i32>} : memref<128x32xbf16, #tpu.memory_space<vmem>>, vector<128x8xbf16>,
    %43 = vector.extract_strided_slice %6 {offsets = [0, 16], sizes = [128, 8], strides = [1, 1]} : vector<128x32xbf16> to vector<128x8xbf16>
    %c0_19 = arith.constant 0 : index
    %c16 = arith.constant 16 : index
    %44 = vector.load %arg9[%c0_19, %c16] : memref<256x32xbf16, #tpu.memory_space<vmem>>, vector<256x8xbf16>
    %c0_20 = arith.constant 0 : index
    %c16_21 = arith.constant 16 : index
    %45 = vector.load %arg10[%c0_20, %c16_21] : memref<256x32xbf16, #tpu.memory_space<vmem>>, vector<256x8xbf16>
    %cst_22 = arith.constant dense<0.000000e+00> : vector<128x256xf32>
    %46 = tpu.matmul %43, %44, %cst_22 {dimension_numbers = #tpu.dot_dimension_numbers<[1], [1], [0], [0], [0, 0, 1, 0], [], []>} : vector<128x8xbf16>, vector<256x8xbf16>, vector<128x256xf32> -> vector<128x256xf32>
    %cst_23 = arith.constant dense<0xFF800000> : vector<128xf32>
    %47 = vector.multi_reduction <maximumf>, %46, %cst_23 [1] : vector<128x256xf32> to vector<128xf32>
    %48 = vector.shape_cast %47 : vector<128xf32> to vector<128x1xf32>
    %49 = vector.broadcast %48 : vector<128x1xf32> to vector<128x256xf32>
    %50 = arith.subf %46, %49 : vector<128x256xf32>
    %51 = math.exp %50 : vector<128x256xf32>
    %cst_24 = arith.constant dense<0.000000e+00> : vector<128xf32>
    %52 = vector.multi_reduction <add>, %51, %cst_24 [1] : vector<128x256xf32> to vector<128xf32>
    %53 = vector.shape_cast %52 : vector<128xf32> to vector<128x1xf32>
    %54 = tpu.reciprocal %53 {approx = true} : vector<128x1xf32> -> vector<128x1xf32>
    %55 = vector.broadcast %54 : vector<128x1xf32> to vector<128x256xf32>
    %56 = arith.mulf %51, %55 : vector<128x256xf32>
    %57 = arith.truncf %56 : vector<128x256xf32> to vector<128x256xbf16>
    %cst_25 = arith.constant dense<0.000000e+00> : vector<128x8xf32>
    %58 = tpu.matmul %57, %45, %cst_25 {dimension_numbers = #tpu.dot_dimension_numbers<[1], [0], [0], [1], [0, 0, 1, 1], [], []>} : vector<128x256xbf16>, vector<256x8xbf16>, vector<128x8xf32> -> vector<128x8xf32>
    %59 = arith.truncf %58 : vector<128x8xf32> to vector<128x8xbf16>
    %c0_26 = arith.constant 0 : index
    %c16_27 = arith.constant 16 : index
    %60 = vector.load %arg11[%c0_26, %c16_27] : memref<128x32xbf16, #tpu.memory_space<vmem>>, vector<128x8xbf16>
    tpu.vector_store %arg11[%c0_26, %c16_27], %59 {strides = array<i32>} : memref<128x32xbf16, #tpu.memory_space<vmem>>, vector<128x8xbf16>,
    %61 = vector.extract_strided_slice %6 {offsets = [0, 24], sizes = [128, 8], strides = [1, 1]} : vector<128x32xbf16> to vector<128x8xbf16>
    %c0_28 = arith.constant 0 : index
    %c24 = arith.constant 24 : index
    %62 = vector.load %arg9[%c0_28, %c24] : memref<256x32xbf16, #tpu.memory_space<vmem>>, vector<256x8xbf16>
    %c0_29 = arith.constant 0 : index
    %c24_30 = arith.constant 24 : index
    %63 = vector.load %arg10[%c0_29, %c24_30] : memref<256x32xbf16, #tpu.memory_space<vmem>>, vector<256x8xbf16>
    %cst_31 = arith.constant dense<0.000000e+00> : vector<128x256xf32>
    %64 = tpu.matmul %61, %62, %cst_31 {dimension_numbers = #tpu.dot_dimension_numbers<[1], [1], [0], [0], [0, 0, 1, 0], [], []>} : vector<128x8xbf16>, vector<256x8xbf16>, vector<128x256xf32> -> vector<128x256xf32>
    %cst_32 = arith.constant dense<0xFF800000> : vector<128xf32>
    %65 = vector.multi_reduction <maximumf>, %64, %cst_32 [1] : vector<128x256xf32> to vector<128xf32>
    %66 = vector.shape_cast %65 : vector<128xf32> to vector<128x1xf32>
    %67 = vector.broadcast %66 : vector<128x1xf32> to vector<128x256xf32>
    %68 = arith.subf %64, %67 : vector<128x256xf32>
    %69 = math.exp %68 : vector<128x256xf32>
    %cst_33 = arith.constant dense<0.000000e+00> : vector<128xf32>
    %70 = vector.multi_reduction <add>, %69, %cst_33 [1] : vector<128x256xf32> to vector<128xf32>
    %71 = vector.shape_cast %70 : vector<128xf32> to vector<128x1xf32>
    %72 = tpu.reciprocal %71 {approx = true} : vector<128x1xf32> -> vector<128x1xf32>
    %73 = vector.broadcast %72 : vector<128x1xf32> to vector<128x256xf32>
    %74 = arith.mulf %69, %73 : vector<128x256xf32>
    %75 = arith.truncf %74 : vector<128x256xf32> to vector<128x256xbf16>
    %cst_34 = arith.constant dense<0.000000e+00> : vector<128x8xf32>
    %76 = tpu.matmul %75, %63, %cst_34 {dimension_numbers = #tpu.dot_dimension_numbers<[1], [0], [0], [1], [0, 0, 1, 1], [], []>} : vector<128x256xbf16>, vector<256x8xbf16>, vector<128x8xf32> -> vector<128x8xf32>
    %77 = arith.truncf %76 : vector<128x8xf32> to vector<128x8xbf16>
    %c0_35 = arith.constant 0 : index
    %c24_36 = arith.constant 24 : index
    %78 = vector.load %arg11[%c0_35, %c24_36] : memref<128x32xbf16, #tpu.memory_space<vmem>>, vector<128x8xbf16>
    tpu.vector_store %arg11[%c0_35, %c24_36], %77 {strides = array<i32>} : memref<128x32xbf16, #tpu.memory_space<vmem>>, vector<128x8xbf16>,
    %c0_37 = arith.constant 0 : index
    %c0_38 = arith.constant 0 : index
    %79 = vector.load %arg11[%c0_37, %c0_38] : memref<128x32xbf16, #tpu.memory_space<vmem>>, vector<128x32xbf16>
    %c0_39 = arith.constant 0 : index
    %c0_40 = arith.constant 0 : index
    %80 = vector.load %arg5[%c0_39, %c0_40] : memref<32x32xbf16, #tpu.memory_space<vmem>>, vector<32x32xbf16>
    %cst_41 = arith.constant dense<0.000000e+00> : vector<128x32xf32>
    %81 = tpu.matmul %79, %80, %cst_41 {dimension_numbers = #tpu.dot_dimension_numbers<[1], [0], [0], [1], [0, 0, 1, 1], [], []>} : vector<128x32xbf16>, vector<32x32xbf16>, vector<128x32xf32> -> vector<128x32xf32>
    %c0_42 = arith.constant 0 : index
    %c0_43 = arith.constant 0 : index
    %82 = vector.load %arg6[%c0_42, %c0_43] : memref<1x32xf32, #tpu.memory_space<vmem>>, vector<1x32xf32>
    %83 = vector.broadcast %82 : vector<1x32xf32> to vector<128x32xf32>
    %84 = arith.addf %81, %83 : vector<128x32xf32>
    %c0_44 = arith.constant 0 : index
    %c0_45 = arith.constant 0 : index
    %c0_46 = arith.constant 0 : index
    %85 = vector.load %arg7[%c0_44, %c0_45, %c0_46] : memref<1x128x32xf32, #tpu.memory_space<vmem>>, vector<1x128x32xf32>
    %86 = vector.shape_cast %85 : vector<1x128x32xf32> to vector<128x32xf32>
    %87 = vector.shape_cast %84 : vector<128x32xf32> to vector<1x128x32xf32>
    tpu.vector_store %arg7[%c0_44, %c0_45, %c0_46], %87 {strides = array<i32>} : memref<1x128x32xf32, #tpu.memory_space<vmem>>, vector<1x128x32xf32>,
    return
  }
  func.func @transform_0(%arg0: i32, %arg1: i32) -> (i32, i32, i32) {
    %c0_i32 = arith.constant 0 : i32
    %c0_i32_0 = arith.constant 0 : i32
    %c0_i32_1 = arith.constant 0 : i32
    return %arg0, %c0_i32, %c0_i32_0 : i32, i32, i32
  }
  func.func @transform_1(%arg0: i32, %arg1: i32) -> (i32, i32) {
    %c0_i32 = arith.constant 0 : i32
    %c0_i32_0 = arith.constant 0 : i32
    %c0_i32_1 = arith.constant 0 : i32
    return %c0_i32, %c0_i32_0 : i32, i32
  }
  func.func @transform_2(%arg0: i32, %arg1: i32) -> (i32, i32) {
    %c0_i32 = arith.constant 0 : i32
    %c0_i32_0 = arith.constant 0 : i32
    %c0_i32_1 = arith.constant 0 : i32
    return %c0_i32, %c0_i32_0 : i32, i32
  }
  func.func @transform_3(%arg0: i32, %arg1: i32) -> (i32, i32) {
    %c0_i32 = arith.constant 0 : i32
    %c0_i32_0 = arith.constant 0 : i32
    %c0_i32_1 = arith.constant 0 : i32
    return %c0_i32, %c0_i32_0 : i32, i32
  }
  func.func @transform_4(%arg0: i32, %arg1: i32) -> (i32, i32) {
    %c0_i32 = arith.constant 0 : i32
    %c0_i32_0 = arith.constant 0 : i32
    %c0_i32_1 = arith.constant 0 : i32
    return %c0_i32, %c0_i32_0 : i32, i32
  }
  func.func @transform_5(%arg0: i32, %arg1: i32) -> (i32, i32, i32) {
    %c0_i32 = arith.constant 0 : i32
    %c0_i32_0 = arith.constant 0 : i32
    return %arg0, %arg1, %c0_i32 : i32, i32, i32
  }
}

</mosaic_0001>

<bundles_post_ra>
// kernel: tpu_custom_call.1
= control target key start
LH: loop header
LB: loop body
LE: loop exit
PB: predicated region body
PF: predicated region fallthrough
CT: control target
= control target key end

     0   :  { %s6190_s18 = smov 0   ;;  %s6192_s19 = smov 0   ;;  %s8645_s0 = inlined_call_operand.vmem [shape: f32[2,256,32], index: 0, kind: input, shape index: {}]   ;;  %s8646_s1 = inlined_call_operand.vmem [shape: bf16[32,96], index: 1, kind: input, shape index: {}]   ;;  %s8647_s2 = inlined_call_operand.vmem [shape: f32[1,96], index: 2, kind: input, shape index: {}]   ;;  %s8648_s3 = inlined_call_operand.vmem [shape: bf16[32,32], index: 3, kind: input, shape index: {}]   ;;  %s8649_s4 = inlined_call_operand.vmem [shape: f32[1,32], index: 4, kind: input, shape index: {}]   ;;  %s8650_s5 = inlined_call_operand.vmem [shape: f32[2,256,32], index: 5, kind: output, shape index: {}]  }
   0x1   :  { %s6194_s20 = smov 0   ;;  %s6196_s21 = smov 0  }
   0x2   :  { %s6198_s22 = smov 0  }
   0x3 LB: > { %s24_s23 = sadd.s32 1, %s6142_s20  ;;  %s27_s24 = sadd.s32 1, %s6146_s21  ;;  %s6150_s22 = sphi %s6198_s22, %s15_s22   ;;  %s6146_s21 = sphi %s6196_s21, %s8809_s21   ;;  %s6142_s20 = sphi %s6194_s20, %s8808_s20   ;;  %s6138_s19 = sphi %s6192_s19, %s8807_s19   ;;  %s6134_s18 = sphi %s6190_s18, %s8806_s18  }
   0x4   : > { %p25_p0 = scmp.ge.s32.totalorder %s24_s23, 2  ;;  %p4814_p1 = scmp.ge.s32.totalorder %s6150_s22, 1 }
   0x5   : > { %p201_p2 = scmp.lt.s32.totalorder %s6150_s22, 5 }
   0x6   : > { %s8811_s23 = smov (%p25_p0, %s24_s23), 0  ;;  %s8813_s24 = smov (!%p25_p0, %s27_s24), %s6146_s21 }
   0x7   : > { %p202_p3 = pnand %p4814_p1, %p201_p2  ;;  %p29_p4 = scmp.ge.s32.totalorder %s8813_s24, 2 }
   0x9   : > { %s8815_s24 = smov (%p29_p4, %s8813_s24), 0  ;;  %205 = sbr.rel (%p202_p3) target bundleno = 2692 (0xa84), region = 40 }
   0xe   : > { %p233_p5 = scmp.lt.s32.totalorder %s6138_s19, 1  ;;  %s4817_s25 = sshll.u32 %s6134_s18, 4 }
   0xf   : > { %p241_p6 = scmp.lt.s32.totalorder %s4817_s25, 31  ;;  %p4820_p7 = scmp.ne.s32.totalorder %s6134_s18, 0 }
  0x10   : > { %s8817_s19 = smov (!%p233_p5, %s6138_s19), 1  ;;  %s6152_s17 = smov (!%p4820_p7), 64  }
  0x11   : > { %s8819_s25 = smov (!%p241_p6, %s4817_s25), 31  ;;  %s5505_s26 = sshll.u32 %s8817_s19, 8 }
  0x12   : > { %s4818_s27 = sshll.u32 %s8817_s19, 5  ;;  %s6226_s30 = scalar_lea.vmem %s8645_s0, %s5505_s26 }
  0x13   : > { %s244_s6 = sadd.s32 %s4818_s27, %s8819_s25  ;;  %252 = sbr.rel (%p4820_p7) target bundleno = 447 (0x1bf), region = 44 }
  0x14   : > { %s4819_s7 = sshll.u32 %s244_s6, 3  ;;  %s6153_s19 = smov (!%p4820_p7), 96  }
  0x15   : > { %s6231_s10 = scalar_lea.vmem %s8650_s5, %s4819_s7 }
  0x18   : > { %v5507_v0 = vld [vmem:[%s8646_s1 + $0x8] sm:$0xff]  ;;  %v5506_v1 = vld [vmem:[%s8646_s1] sm:$0xff]  ;;  %vm321_vm0 = vcmask 261120   ;;  %v255_v14 = vld [vmem:[%s6226_s30 + $0x10] sm:$0xff]  ;;  %vm523_vm1 = vcmask 257024  }
  0x19   : > { %v253_v2 = vld [vmem:[%s6226_s30] sm:$0xff]  ;;  %v254_v3 = vld [vmem:[%s6226_s30 + $0x8] sm:$0xff]  ;;  %376 = vmatpush.bf16.msra.mxu0 %v5507_v0  ;;  %5654 = vmatpush.bf16.msra.mxu1 %v5507_v0  ;;  %v256_v15 = vld [vmem:[%s6226_s30 + $0x18] sm:$0xff] }
  0x1a   : > { %v261_v4 = vld [vmem:[%s6226_s30 + $0x40] sm:$0xff]  ;;  %v262_v5 = vld [vmem:[%s6226_s30 + $0x48] sm:$0xff]  ;;  %5656 = vmatpush.bf16.msra.mxu3 %v5507_v0  ;;  %5655 = vmatpush.bf16.msra.mxu2 %v5507_v0  ;;  %v285_v10 = vpack.c.bf16 %v254_v3, %v253_v2  ;;  %v279_v16 = vld [vmem:[%s6226_s30 + $0xd0] sm:$0xff]  ;;  %v286_v22 = vpack.c.bf16 %v256_v15, %v255_v14 }
  0x1b   : > { %v277_v6 = vld [vmem:[%s6226_s30 + $0xc0] sm:$0xff]  ;;  %v278_v7 = vld [vmem:[%s6226_s30 + $0xc8] sm:$0xff]  ;;  %v289_v11 = vpack.c.bf16 %v262_v5, %v261_v4  ;;  %v263_v17 = vld [vmem:[%s6226_s30 + $0x50] sm:$0xff] }
  0x1c   : > { %v269_v8 = vld [vmem:[%s6226_s30 + $0x80] sm:$0xff]  ;;  %v270_v9 = vld [vmem:[%s6226_s30 + $0x88] sm:$0xff]  ;;  %v297_v12 = vpack.c.bf16 %v278_v7, %v277_v6  ;;  %v264_v18 = vld [vmem:[%s6226_s30 + $0x58] sm:$0xff] }
  0x1d   : > { %377 = vmatpush.bf16.msra.mxu0 %v5506_v1  ;;  %5657 = vmatpush.bf16.msra.mxu1 %v5506_v1  ;;  %v293_v13 = vpack.c.bf16 %v270_v9, %v269_v8  ;;  %v280_v19 = vld [vmem:[%s6226_s30 + $0xd8] sm:$0xff]  ;;  %v271_v20 = vld [vmem:[%s6226_s30 + $0x90] sm:$0xff]  ;;  %v290_v23 = vpack.c.bf16 %v264_v18, %v263_v17  ;;  %v257_v26 = vld [vmem:[%s6226_s30 + $0x20] sm:$0xff] }
  0x1e   : > { %5659 = vmatpush.bf16.msra.mxu3 %v5506_v1  ;;  %5658 = vmatpush.bf16.msra.mxu2 %v5506_v1  ;;  %v272_v21 = vld [vmem:[%s6226_s30 + $0x98] sm:$0xff]  ;;  %v298_v24 = vpack.c.bf16 %v280_v19, %v279_v16  ;;  %v258_v27 = vld [vmem:[%s6226_s30 + $0x28] sm:$0xff]  ;;  %v265_v28 = vld [vmem:[%s6226_s30 + $0x60] sm:$0xff] }
  0x1f   : > { %v294_v25 = vpack.c.bf16 %v272_v21, %v271_v20  ;;  %v266_v29 = vld [vmem:[%s6226_s30 + $0x68] sm:$0xff]  ;;  %v281_v30 = vld [vmem:[%s6226_s30 + $0xe0] sm:$0xff]  ;;  %v287_v34 = vpack.c.bf16 %v258_v27, %v257_v26  ;;  %v259_v38 = vld [vmem:[%s6226_s30 + $0x30] sm:$0xff] }
  0x20   : > { %4829 = vmatmul.msk.bf16.vlgmr.msra.gmra.mxu0 %vm321_vm0, %v285_v10  ;;  %4833 = vmatmul.msk.bf16.vlgmr.msra.gmra.mxu1 %vm321_vm0, %v289_v11  ;;  %v282_v31 = vld [vmem:[%s6226_s30 + $0xe8] sm:$0xff]  ;;  %v273_v32 = vld [vmem:[%s6226_s30 + $0xa0] sm:$0xff]  ;;  %v291_v35 = vpack.c.bf16 %v266_v29, %v265_v28  ;;  %v260_v39 = vld [vmem:[%s6226_s30 + $0x38] sm:$0xff] }
  0x21   : > { %4841 = vmatmul.msk.bf16.vlgmr.msra.gmra.mxu3 %vm321_vm0, %v297_v12  ;;  %4837 = vmatmul.msk.bf16.vlgmr.msra.gmra.mxu2 %vm321_vm0, %v293_v13  ;;  %v274_v33 = vld [vmem:[%s6226_s30 + $0xa8] sm:$0xff]  ;;  %v299_v36 = vpack.c.bf16 %v282_v31, %v281_v30  ;;  %v267_v40 = vld [vmem:[%s6226_s30 + $0x70] sm:$0xff]  ;;  %v268_v41 = vld [vmem:[%s6226_s30 + $0x78] sm:$0xff]  ;;  %v288_v46 = vpack.c.bf16 %v260_v39, %v259_v38 }
  0x22   : > { %v295_v37 = vpack.c.bf16 %v274_v33, %v273_v32  ;;  %v275_v42 = vld [vmem:[%s6226_s30 + $0xb0] sm:$0xff]  ;;  %v276_v43 = vld [vmem:[%s6226_s30 + $0xb8] sm:$0xff]  ;;  %v292_v47 = vpack.c.bf16 %v268_v41, %v267_v40  ;;  %v6291_v50 = vld [vmem:[%s8647_s2] ss:$0 sm:$0xff] }
  0x23   : > { %v283_v44 = vld [vmem:[%s6226_s30 + $0xf0] sm:$0xff]  ;;  %v284_v45 = vld [vmem:[%s6226_s30 + $0xf8] sm:$0xff]  ;;  %v296_v48 = vpack.c.bf16 %v276_v43, %v275_v42 }
  0x24   : > { %v300_v49 = vpack.c.bf16 %v284_v45, %v283_v44 }
  0x30   : > { %4830 = vmatmul.msk.bf16.gmra.mxu0 %vm321_vm0, %v286_v22  ;;  %4834 = vmatmul.msk.bf16.gmra.mxu1 %vm321_vm0, %v290_v23 }
  0x31   : > { %4842 = vmatmul.msk.bf16.gmra.mxu3 %vm321_vm0, %v298_v24  ;;  %4838 = vmatmul.msk.bf16.gmra.mxu2 %vm321_vm0, %v294_v25 }
  0x40   : > { %4831 = vmatmul.msk.bf16.gmra.mxu0 %vm321_vm0, %v287_v34  ;;  %4835 = vmatmul.msk.bf16.gmra.mxu1 %vm321_vm0, %v291_v35 }
  0x41   : > { %4843 = vmatmul.msk.bf16.gmra.mxu3 %vm321_vm0, %v299_v36  ;;  %4839 = vmatmul.msk.bf16.gmra.mxu2 %vm321_vm0, %v295_v37 }
  0x50   : > { %4832 = vmatmul.msk.bf16.gmra.mxu0 %vm321_vm0, %v288_v46  ;;  %4836 = vmatmul.msk.bf16.gmra.mxu1 %vm321_vm0, %v292_v47 }
  0x51   : > { %4840 = vmatmul.msk.bf16.gmra.mxu2 %vm321_vm0, %v296_v48  ;;  %4844 = vmatmul.msk.bf16.gmra.mxu3 %vm321_vm0, %v300_v49 }
  0x9d   : > { %v379_v51 = vpop.f32.mrf.mxu0  ;;  %v399_v52 = vpop.f32.mrf.mxu1 }
  0x9e   : > { %v380_v53 = vadd.f32 %v6291_v50, %v379_v51  ;;  %v400_v54 = vadd.f32 %v6291_v50, %v399_v52 }
  0xa0   : > { %v459_v55 = vmul.f32 0.17677669, %v380_v53  ;;  %v467_v56 = vmul.f32 0.17677669, %v400_v54  ;;  %v564_v57 = vpack.c.bf16 %v400_v54, %v400_v54  ;;  %v556_v58 = vpack.c.bf16 %v380_v53, %v380_v53 }
  0xa2   : > { %v491_v59 = vpack.c.bf16 %v459_v55, %v459_v55  ;;  %v499_v60 = vpack.c.bf16 %v467_v56, %v467_v56  ;;  %764 = vrot.lane.b32.xlu1 %v564_v57, %s6152_s17  ;;  %636 = vrot.lane.b32.xlu2 %v564_v57, %s6153_s19 }
  0xa3   : > { %620 = vrot.lane.b32.xlu0 %v556_v58, %s6153_s19 }
  0xa4   : > { %524 = vst.msk [vmem:[#allocation2] sm:$0xf] %vm523_vm1, %v491_v59  ;;  %v439_v61 = vpop.f32.mrf.mxu3  ;;  %v419_v62 = vpop.f32.mrf.mxu2 }
  0xa5   : > { %532 = vst.msk [vmem:[#allocation2 + $0x20] sm:$0xf] %vm523_vm1, %v499_v60  ;;  %v440_v63 = vadd.f32 %v6291_v50, %v439_v61  ;;  %v381_v0 = vpop.f32.mrf.mxu0  ;;  %v401_v1 = vpop.f32.mrf.mxu1  ;;  %v420_v2 = vadd.f32 %v6291_v50, %v419_v62 }
  0xa6   : > { %v382_v3 = vadd.f32 %v6291_v50, %v381_v0  ;;  %v402_v4 = vadd.f32 %v6291_v50, %v401_v1 }
  0xa7   : > { %v483_v5 = vmul.f32 0.17677669, %v440_v63  ;;  %v580_v6 = vpack.c.bf16 %v440_v63, %v440_v63  ;;  %v475_v7 = vmul.f32 0.17677669, %v420_v2  ;;  %v572_v8 = vpack.c.bf16 %v420_v2, %v420_v2 }
  0xa8   : > { %v460_v9 = vmul.f32 0.17677669, %v382_v3  ;;  %v468_v10 = vmul.f32 0.17677669, %v402_v4  ;;  %v565_v42 = vpack.c.bf16 %v402_v4, %v402_v4  ;;  %v557_v46 = vpack.c.bf16 %v382_v3, %v382_v3 }
  0xa9   : > { %v515_v11 = vpack.c.bf16 %v483_v5, %v483_v5  ;;  %v507_v14 = vpack.c.bf16 %v475_v7, %v475_v7 }
  0xaa   : > { %v492_v12 = vpack.c.bf16 %v460_v9, %v460_v9  ;;  %v500_v13 = vpack.c.bf16 %v468_v10, %v468_v10  ;;  %652 = vrot.lane.b32.xlu1 %v572_v8, %s6153_s19  ;;  %748 = vrot.lane.b32.xlu2 %v556_v58, %s6152_s17 }
  0xab   : > { %548 = vst.msk [vmem:[#allocation2 + $0x60] sm:$0xf] %vm523_vm1, %v515_v11  ;;  %668 = vrot.lane.b32.xlu0 %v580_v6, %s6153_s19 }
  0xac   : > { %525 = vst.msk [vmem:[#allocation2 + $0x4] sm:$0xf] %vm523_vm1, %v492_v12  ;;  %v441_v15 = vpop.f32.mrf.mxu3  ;;  %v421_v16 = vpop.f32.mrf.mxu2 }
  0xad   : > { %533 = vst.msk [vmem:[#allocation2 + $0x24] sm:$0xf] %vm523_vm1, %v500_v13  ;;  %v442_v17 = vadd.f32 %v6291_v50, %v441_v15  ;;  %v422_v18 = vadd.f32 %v6291_v50, %v421_v16  ;;  %v384_v19 = vpop.f32.mrf.mxu0  ;;  %v404_v20 = vpop.f32.mrf.mxu1 }
  0xae   : > { %540 = vst.msk [vmem:[#allocation2 + $0x40] sm:$0xf] %vm523_vm1, %v507_v14  ;;  %v385_v21 = vadd.f32 %v6291_v50, %v384_v19  ;;  %v405_v22 = vadd.f32 %v6291_v50, %v404_v20 }
  0xaf   : > { %v484_v23 = vmul.f32 0.17677669, %v442_v17  ;;  %v476_v24 = vmul.f32 0.17677669, %v422_v18  ;;  %v6315_v25 = vpack.c.bf16 %v442_v17, %v442_v17  ;;  %v573_v43 = vpack.c.bf16 %v422_v18, %v422_v18 }
  0xb0   : > { %v461_v26 = vmul.f32 0.17677669, %v385_v21  ;;  %v469_v27 = vmul.f32 0.17677669, %v405_v22  ;;  %v558_v56 = vpack.c.bf16 %v385_v21, %v385_v21  ;;  %v566_v61 = vpack.c.bf16 %v405_v22, %v405_v22 }
  0xb1   : > { %v516_v28 = vpack.c.bf16 %v484_v23, %v484_v23  ;;  %v508_v29 = vpack.c.bf16 %v476_v24, %v476_v24 }
  0xb2   : > { %670 = vrot.lane.b32.xlu1 %v6315_v25, %s6153_s19  ;;  %796 = vrot.lane.b32.xlu2 %v580_v6, %s6152_s17  ;;  %v493_v30 = vpack.c.bf16 %v461_v26, %v461_v26  ;;  %v501_v31 = vpack.c.bf16 %v469_v27, %v469_v27 }
  0xb3   : > { %549 = vst.msk [vmem:[#allocation2 + $0x64] sm:$0xf] %vm523_vm1, %v516_v28  ;;  %780 = vrot.lane.b32.xlu0 %v572_v8, %s6152_s17 }
  0xb4   : > { %541 = vst.msk [vmem:[#allocation2 + $0x44] sm:$0xf] %vm523_vm1, %v508_v29  ;;  %v444_v32 = vpop.f32.mrf.mxu3  ;;  %v424_v33 = vpop.f32.mrf.mxu2 }
  0xb5   : > { %526 = vst.msk [vmem:[#allocation2 + $0x8] sm:$0xf] %vm523_vm1, %v493_v30  ;;  %v386_v34 = vpop.f32.mrf.mxu0  ;;  %v445_v35 = vadd.f32 %v6291_v50, %v444_v32  ;;  %v406_v36 = vpop.f32.mrf.mxu1  ;;  %v425_v37 = vadd.f32 %v6291_v50, %v424_v33 }
  0xb6   : > { %v6327_v38 = vadd.f32 %v6291_v50, %v386_v34  ;;  %534 = vst.msk [vmem:[#allocation2 + $0x28] sm:$0xf] %vm523_vm1, %v501_v31  ;;  %v407_v39 = vadd.f32 %v6291_v50, %v406_v36 }
  0xb7   : > { %v485_v40 = vmul.f32 0.17677669, %v445_v35  ;;  %v477_v41 = vmul.f32 0.17677669, %v425_v37  ;;  %v582_v62 = vpack.c.bf16 %v445_v35, %v445_v35  ;;  %v574_v3 = vpack.c.bf16 %v425_v37, %v425_v37 }
  0xb8   : > { %v462_v44 = vmul.f32 0.17677669, %v6327_v38  ;;  %v470_v45 = vmul.f32 0.17677669, %v407_v39  ;;  %v567_v14 = vpack.c.bf16 %v407_v39, %v407_v39  ;;  %v559_v23 = vpack.c.bf16 %v6327_v38, %v6327_v38 }
  0xb9   : > { %v517_v47 = vpack.c.bf16 %v485_v40, %v485_v40  ;;  %v509_v51 = vpack.c.bf16 %v477_v41, %v477_v41 }
  0xba   : > { %782 = vrot.lane.b32.xlu1 %v573_v43, %s6152_s17  ;;  %766 = vrot.lane.b32.xlu2 %v565_v42, %s6152_s17  ;;  %v494_v48 = vpack.c.bf16 %v462_v44, %v462_v44  ;;  %v502_v49 = vpack.c.bf16 %v470_v45, %v470_v45 }
  0xbb   : > { %622 = vrot.lane.b32.xlu0 %v557_v46, %s6153_s19  ;;  %550 = vst.msk [vmem:[#allocation2 + $0x68] sm:$0xf] %vm523_vm1, %v517_v47 }
  0xbc   : > { %527 = vst.msk [vmem:[#allocation2 + $0xc] sm:$0xf] %vm523_vm1, %v494_v48  ;;  %v426_v52 = vpop.f32.mrf.mxu2  ;;  %v446_v53 = vpop.f32.mrf.mxu3 }
  0xbd   : > { %535 = vst.msk [vmem:[#allocation2 + $0x2c] sm:$0xf] %vm523_vm1, %v502_v49  ;;  %v6339_v54 = vadd.f32 %v6291_v50, %v426_v52  ;;  %v6342_v55 = vadd.f32 %v6291_v50, %v446_v53  ;;  %v389_v63 = vpop.f32.mrf.mxu0  ;;  %v409_v0 = vpop.f32.mrf.mxu1 }
  0xbe   : > { %542 = vst.msk [vmem:[#allocation2 + $0x48] sm:$0xf] %vm523_vm1, %v509_v51  ;;  %v390_v1 = vadd.f32 %v6291_v50, %v389_v63  ;;  %v410_v2 = vadd.f32 %v6291_v50, %v409_v0 }
  0xbf   : > { %v478_v57 = vmul.f32 0.17677669, %v6339_v54  ;;  %v486_v58 = vmul.f32 0.17677669, %v6342_v55  ;;  %v583_v32 = vpack.c.bf16 %v6342_v55, %v6342_v55  ;;  %v575_v36 = vpack.c.bf16 %v6339_v54, %v6339_v54 }
  0xc0   : > { %v463_v4 = vmul.f32 0.17677669, %v390_v1  ;;  %v471_v5 = vmul.f32 0.17677669, %v410_v2  ;;  %v560_v35 = vpack.c.bf16 %v390_v1, %v390_v1  ;;  %v568_v37 = vpack.c.bf16 %v410_v2, %v410_v2 }
  0xc1   : > { %v510_v59 = vpack.c.bf16 %v478_v57, %v478_v57  ;;  %v518_v60 = vpack.c.bf16 %v486_v58, %v486_v58 }
  0xc2   : > { %624 = vrot.lane.b32.xlu1 %v558_v56, %s6153_s19  ;;  %654 = vrot.lane.b32.xlu2 %v573_v43, %s6153_s19  ;;  %v495_v6 = vpack.c.bf16 %v463_v4, %v463_v4  ;;  %v503_v7 = vpack.c.bf16 %v471_v5, %v471_v5 }
  0xc3   : > { %638 = vrot.lane.b32.xlu0 %v565_v42, %s6153_s19  ;;  %543 = vst.msk [vmem:[#allocation2 + $0x4c] sm:$0xf] %vm523_vm1, %v510_v59 }
  0xc4   : > { %551 = vst.msk [vmem:[#allocation2 + $0x6c] sm:$0xf] %vm523_vm1, %v518_v60  ;;  %v449_v9 = vpop.f32.mrf.mxu3  ;;  %v429_v18 = vpop.f32.mrf.mxu2 }
  0xc5   : > { %528 = vst.msk [vmem:[#allocation2 + $0x10] sm:$0xf] %vm523_vm1, %v495_v6  ;;  %v411_v8 = vpop.f32.mrf.mxu1  ;;  %v450_v11 = vadd.f32 %v6291_v50, %v449_v9  ;;  %v391_v17 = vpop.f32.mrf.mxu0  ;;  %v430_v20 = vadd.f32 %v6291_v50, %v429_v18 }
  0xc6   : > { %536 = vst.msk [vmem:[#allocation2 + $0x30] sm:$0xf] %vm523_vm1, %v503_v7  ;;  %v6364_v10 = vadd.f32 %v6291_v50, %v411_v8  ;;  %v6374_v19 = vadd.f32 %v6291_v50, %v391_v17 }
  0xc7   : > { %v487_v13 = vmul.f32 0.17677669, %v450_v11  ;;  %v584_v38 = vpack.c.bf16 %v450_v11, %v450_v11  ;;  %v576_v48 = vpack.c.bf16 %v430_v20, %v430_v20 }
  0xc8   : > { %v472_v12 = vmul.f32 0.17677669, %v6364_v10  ;;  %v464_v24 = vmul.f32 0.17677669, %v6374_v19  ;;  %v561_v4 = vpack.c.bf16 %v6374_v19, %v6374_v19 }
  0xc9   : > { %v519_v16 = vpack.c.bf16 %v487_v13, %v487_v13 }
  0xca   : > { %640 = vrot.lane.b32.xlu1 %v566_v61, %s6153_s19  ;;  %672 = vrot.lane.b32.xlu2 %v582_v62, %s6153_s19  ;;  %v504_v15 = vpack.c.bf16 %v472_v12, %v472_v12  ;;  %v496_v27 = vpack.c.bf16 %v464_v24, %v464_v24 }
  0xcb   : > { %750 = vrot.lane.b32.xlu0 %v557_v46, %s6152_s17  ;;  %552 = vst.msk [vmem:[#allocation2 + $0x70] sm:$0xf] %vm523_vm1, %v519_v16 }
  0xcc   : > { %537 = vst.msk [vmem:[#allocation2 + $0x34] sm:$0xf] %vm523_vm1, %v504_v15  ;;  %v451_v21 = vpop.f32.mrf.mxu3  ;;  %v431_v30 = vpop.f32.mrf.mxu2 }
  0xcd   : > { %v6378_v22 = vadd.f32 %v6291_v50, %v451_v21  ;;  %529 = vst.msk [vmem:[#allocation2 + $0x14] sm:$0xf] %vm523_vm1, %v496_v27  ;;  %v6391_v31 = vadd.f32 %v6291_v50, %v431_v30  ;;  %v394_v39 = vpop.f32.mrf.mxu0  ;;  %v414_v40 = vpop.f32.mrf.mxu1 }
  0xce   : > { %v6406_v41 = vadd.f32 %v6291_v50, %v394_v39  ;;  %v6409_v42 = vadd.f32 %v6291_v50, %v414_v40 }
  0xcf   : > { %v488_v26 = vmul.f32 0.17677669, %v6378_v22  ;;  %v480_v33 = vmul.f32 0.17677669, %v6391_v31  ;;  %v577_v18 = vpack.c.bf16 %v6391_v31, %v6391_v31 }
  0xd0   : > { %v465_v43 = vmul.f32 0.17677669, %v6406_v41  ;;  %v473_v44 = vmul.f32 0.17677669, %v6409_v42  ;;  %v570_v17 = vpack.c.bf16 %v6409_v42, %v6409_v42 }
  0xd1   : > { %v520_v29 = vpack.c.bf16 %v488_v26, %v488_v26  ;;  %v512_v34 = vpack.c.bf16 %v480_v33, %v480_v33 }
  0xd2   : > { %752 = vrot.lane.b32.xlu1 %v558_v56, %s6152_s17  ;;  %784 = vrot.lane.b32.xlu2 %v574_v3, %s6152_s17  ;;  %v497_v46 = vpack.c.bf16 %v465_v43, %v465_v43  ;;  %v505_v47 = vpack.c.bf16 %v473_v44, %v473_v44 }
  0xd3   : > { %798 = vrot.lane.b32.xlu0 %v6315_v25, %s6152_s17  ;;  %v479_v25 = vmul.f32 0.17677669, %v430_v20  ;;  %553 = vst.msk [vmem:[#allocation2 + $0x74] sm:$0xf] %vm523_vm1, %v520_v29 }
  0xd4   : > { %545 = vst.msk [vmem:[#allocation2 + $0x54] sm:$0xf] %vm523_vm1, %v512_v34  ;;  %v434_v54 = vpop.f32.mrf.mxu2  ;;  %v454_v55 = vpop.f32.mrf.mxu3 }
  0xd5   : > { %v511_v28 = vpack.c.bf16 %v479_v25, %v479_v25  ;;  %530 = vst.msk [vmem:[#allocation2 + $0x18] sm:$0xf] %vm523_vm1, %v497_v46  ;;  %v396_v49 = vpop.f32.mrf.mxu0  ;;  %v416_v51 = vpop.f32.mrf.mxu1  ;;  %v435_v56 = vadd.f32 %v6291_v50, %v434_v54  ;;  %v6427_v57 = vadd.f32 %v6291_v50, %v454_v55 }
  0xd6   : > { %538 = vst.msk [vmem:[#allocation2 + $0x38] sm:$0xf] %vm523_vm1, %v505_v47  ;;  %v6420_v52 = vadd.f32 %v6291_v50, %v396_v49  ;;  %v6423_v53 = vadd.f32 %v6291_v50, %v416_v51 }
  0xd7   : > { %544 = vst.msk [vmem:[#allocation2 + $0x50] sm:$0xf] %vm523_vm1, %v511_v28  ;;  %v481_v60 = vmul.f32 0.17677669, %v435_v56  ;;  %v586_v27 = vpack.c.bf16 %v6427_v57, %v6427_v57 }
  0xd8   : > { %v466_v58 = vmul.f32 0.17677669, %v6420_v52  ;;  %v474_v59 = vmul.f32 0.17677669, %v6423_v53  ;;  %v563_v28 = vpack.c.bf16 %v6420_v52, %v6420_v52 }
  0xd9   : > { %v513_v1 = vpack.c.bf16 %v481_v60, %v481_v60 }
  0xda   : > { %800 = vrot.lane.b32.xlu1 %v582_v62, %s6152_s17  ;;  %642 = vrot.lane.b32.xlu2 %v567_v14, %s6153_s19  ;;  %v498_v63 = vpack.c.bf16 %v466_v58, %v466_v58  ;;  %v506_v0 = vpack.c.bf16 %v474_v59, %v474_v59 }
  0xdb   : > { %768 = vrot.lane.b32.xlu0 %v566_v61, %s6152_s17  ;;  %v489_v61 = vmul.f32 0.17677669, %v6427_v57  ;;  %546 = vst.msk [vmem:[#allocation2 + $0x58] sm:$0xf] %vm523_vm1, %v513_v1 }
  0xdc   : > { %531 = vst.msk [vmem:[#allocation2 + $0x1c] sm:$0xf] %vm523_vm1, %v498_v63  ;;  %v436_v5 = vpop.f32.mrf.mxu2  ;;  %v456_v6 = vpop.f32.mrf.mxu3 }
  0xdd   : > { %v521_v2 = vpack.c.bf16 %v489_v61, %v489_v61  ;;  %539 = vst.msk [vmem:[#allocation2 + $0x3c] sm:$0xf] %vm523_vm1, %v506_v0  ;;  %v6445_v7 = vadd.f32 %v6291_v50, %v436_v5  ;;  %v457_v8 = vadd.f32 %v6291_v50, %v456_v6 }
  0xdf   : > { %554 = vst.msk [vmem:[#allocation2 + $0x78] sm:$0xf] %vm523_vm1, %v521_v2  ;;  %v482_v9 = vmul.f32 0.17677669, %v6445_v7  ;;  %v587_v33 = vpack.c.bf16 %v457_v8, %v457_v8 }
  0xe1   : > { %v514_v12 = vpack.c.bf16 %v482_v9, %v482_v9 }
  0xe2   : > { %626 = vrot.lane.b32.xlu1 %v559_v23, %s6153_s19  ;;  %754 = vrot.lane.b32.xlu2 %v559_v23, %s6152_s17  ;;  %v562_v23 = vpack.c.bf16 %v6406_v41, %v6406_v41 }
  0xe3   : > { %656 = vrot.lane.b32.xlu0 %v574_v3, %s6153_s19  ;;  %v569_v3 = vpack.c.bf16 %v6364_v10, %v6364_v10  ;;  %v490_v10 = vmul.f32 0.17677669, %v457_v8  ;;  %547 = vst.msk [vmem:[#allocation2 + $0x5c] sm:$0xf] %vm523_vm1, %v514_v12 }
  0xe5   : > { %v522_v13 = vpack.c.bf16 %v490_v10, %v490_v10 }
  0xe7   : > { %555 = vst.msk [vmem:[#allocation2 + $0x7c] sm:$0xf] %vm523_vm1, %v522_v13 }
  0xea   : > { %770 = vrot.lane.b32.xlu1 %v567_v14, %s6152_s17  ;;  %802 = vrot.lane.b32.xlu2 %v583_v32, %s6152_s17  ;;  %v6456_v14 = vpack.c.bf16 %v6378_v22, %v6378_v22  ;;  %v578_v22 = vpack.c.bf16 %v435_v56, %v435_v56 }
  0xeb   : > { %674 = vrot.lane.b32.xlu0 %v583_v32, %s6153_s19  ;;  %v571_v32 = vpack.c.bf16 %v6423_v53, %v6423_v53 }
  0xf2   : > { %658 = vrot.lane.b32.xlu1 %v575_v36, %s6153_s19  ;;  %628 = vrot.lane.b32.xlu2 %v560_v35, %s6153_s19 }
  0xf3   : > { %786 = vrot.lane.b32.xlu0 %v575_v36, %s6152_s17 }
  0xfa   : > { %676 = vrot.lane.b32.xlu1 %v584_v38, %s6153_s19  ;;  %772 = vrot.lane.b32.xlu2 %v568_v37, %s6152_s17 }
  0xfb   : > { %644 = vrot.lane.b32.xlu0 %v568_v37, %s6153_s19  ;;  %v579_v37 = vpack.c.bf16 %v6445_v7, %v6445_v7 }
  0xfc   : > { %v637_v45 = vpop.permute.xlu2 %636 }
  0xfd   : > { %724 = vst.msk [vmem:[#allocation3 + $0x20] sm:$0xf] %vm523_vm1, %v637_v45 }
 0x102   : > { %788 = vrot.lane.b32.xlu1 %v576_v48, %s6152_s17  ;;  %660 = vrot.lane.b32.xlu2 %v576_v48, %s6153_s19 }
 0x103   : > { %756 = vrot.lane.b32.xlu0 %v560_v35, %s6152_s17 }
 0x104   : > { %v749_v62 = vpop.permute.xlu2 %748 }
 0x105   : > { %844 = vst.msk [vmem:[#allocation4] sm:$0xf] %vm523_vm1, %v749_v62 }
 0x10a   : > { %646 = vrot.lane.b32.xlu1 %v569_v3, %s6153_s19  ;;  %630 = vrot.lane.b32.xlu2 %v561_v4, %s6153_s19 }
 0x10b   : > { %804 = vrot.lane.b32.xlu0 %v584_v38, %s6152_s17 }
 0x10c   : > { %v797_v11 = vpop.permute.xlu2 %796 }
 0x10d   : > { %868 = vst.msk [vmem:[#allocation4 + $0x60] sm:$0xf] %vm523_vm1, %v797_v11 }
 0x112   : > { %758 = vrot.lane.b32.xlu1 %v561_v4, %s6152_s17  ;;  %678 = vrot.lane.b32.xlu2 %v6456_v14, %s6153_s19 }
 0x113   : > { %774 = vrot.lane.b32.xlu0 %v569_v3, %s6152_s17 }
 0x114   : > { %v765_v50 = vpop.permute.xlu1 %764  ;;  %v767_v15 = vpop.permute.xlu2 %766 }
 0x115   : > { %852 = vst.msk [vmem:[#allocation4 + $0x20] sm:$0xf] %vm523_vm1, %v765_v50  ;;  %v621_v16 = vpop.permute.xlu0 %620 }
 0x116   : > { %853 = vst.msk [vmem:[#allocation4 + $0x24] sm:$0xf] %vm523_vm1, %v767_v15 }
 0x117   : > { %716 = vst.msk [vmem:[#allocation3] sm:$0xf] %vm523_vm1, %v621_v16 }
 0x11a   : > { %776 = vrot.lane.b32.xlu1 %v570_v17, %s6152_s17  ;;  %790 = vrot.lane.b32.xlu2 %v577_v18, %s6152_s17 }
 0x11b   : > { %662 = vrot.lane.b32.xlu0 %v577_v18, %s6153_s19 }
 0x11c   : > { %v653_v19 = vpop.permute.xlu1 %652  ;;  %v655_v20 = vpop.permute.xlu2 %654 }
 0x11d   : > { %732 = vst.msk [vmem:[#allocation3 + $0x40] sm:$0xf] %vm523_vm1, %v653_v19  ;;  %v669_v21 = vpop.permute.xlu0 %668 }
 0x11e   : > { %733 = vst.msk [vmem:[#allocation3 + $0x44] sm:$0xf] %vm523_vm1, %v655_v20 }
 0x11f   : > { %740 = vst.msk [vmem:[#allocation3 + $0x60] sm:$0xf] %vm523_vm1, %v669_v21 }
 0x122   : > { %664 = vrot.lane.b32.xlu1 %v578_v22, %s6153_s19  ;;  %648 = vrot.lane.b32.xlu2 %v570_v17, %s6153_s19 }
 0x123   : > { %632 = vrot.lane.b32.xlu0 %v562_v23, %s6153_s19 }
 0x124   : > { %v671_v24 = vpop.permute.xlu1 %670  ;;  %v673_v25 = vpop.permute.xlu2 %672 }
 0x125   : > { %741 = vst.msk [vmem:[#allocation3 + $0x64] sm:$0xf] %vm523_vm1, %v671_v24  ;;  %v781_v26 = vpop.permute.xlu0 %780 }
 0x126   : > { %742 = vst.msk [vmem:[#allocation3 + $0x68] sm:$0xf] %vm523_vm1, %v673_v25 }
 0x127   : > { %860 = vst.msk [vmem:[#allocation4 + $0x40] sm:$0xf] %vm523_vm1, %v781_v26 }
 0x12a   : > { %634 = vrot.lane.b32.xlu1 %v563_v28, %s6153_s19  ;;  %760 = vrot.lane.b32.xlu2 %v562_v23, %s6152_s17 }
 0x12b   : > { %680 = vrot.lane.b32.xlu0 %v586_v27, %s6153_s19 }
 0x12c   : > { %v783_v29 = vpop.permute.xlu1 %782  ;;  %v785_v30 = vpop.permute.xlu2 %784 }
 0x12d   : > { %861 = vst.msk [vmem:[#allocation4 + $0x44] sm:$0xf] %vm523_vm1, %v783_v29  ;;  %v623_v31 = vpop.permute.xlu0 %622 }
 0x12e   : > { %862 = vst.msk [vmem:[#allocation4 + $0x48] sm:$0xf] %vm523_vm1, %v785_v30 }
 0x12f   : > { %717 = vst.msk [vmem:[#allocation3 + $0x4] sm:$0xf] %vm523_vm1, %v623_v31 }
 0x132   : > { %682 = vrot.lane.b32.xlu1 %v587_v33, %s6153_s19  ;;  %778 = vrot.lane.b32.xlu2 %v571_v32, %s6152_s17 }
 0x133   : > { %792 = vrot.lane.b32.xlu0 %v578_v22, %s6152_s17 }
 0x134   : > { %v625_v34 = vpop.permute.xlu1 %624  ;;  %v643_v35 = vpop.permute.xlu2 %642 }
 0x135   : > { %718 = vst.msk [vmem:[#allocation3 + $0x8] sm:$0xf] %vm523_vm1, %v625_v34  ;;  %v639_v36 = vpop.permute.xlu0 %638 }
 0x136   : > { %727 = vst.msk [vmem:[#allocation3 + $0x2c] sm:$0xf] %vm523_vm1, %v643_v35 }
 0x137   : > { %725 = vst.msk [vmem:[#allocation3 + $0x24] sm:$0xf] %vm523_vm1, %v639_v36 }
 0x13a   : > { %794 = vrot.lane.b32.xlu1 %v579_v37, %s6152_s17  ;;  %666 = vrot.lane.b32.xlu2 %v579_v37, %s6153_s19 }
 0x13b   : > { %650 = vrot.lane.b32.xlu0 %v571_v32, %s6153_s19 }
 0x13c   : > { %v641_v38 = vpop.permute.xlu1 %640  ;;  %v755_v39 = vpop.permute.xlu2 %754 }
 0x13d   : > { %726 = vst.msk [vmem:[#allocation3 + $0x28] sm:$0xf] %vm523_vm1, %v641_v38  ;;  %v751_v40 = vpop.permute.xlu0 %750 }
 0x13e   : > { %847 = vst.msk [vmem:[#allocation4 + $0xc] sm:$0xf] %vm523_vm1, %v755_v39 }
 0x13f   : > { %845 = vst.msk [vmem:[#allocation4 + $0x4] sm:$0xf] %vm523_vm1, %v751_v40 }
 0x142   : > { %806 = vrot.lane.b32.xlu1 %v6456_v14, %s6152_s17  ;;  %808 = vrot.lane.b32.xlu2 %v586_v27, %s6152_s17 }
 0x143   : > { %762 = vrot.lane.b32.xlu0 %v563_v28, %s6152_s17 }
 0x144   : > { %v753_v41 = vpop.permute.xlu1 %752  ;;  %v803_v42 = vpop.permute.xlu2 %802 }
 0x145   : > { %846 = vst.msk [vmem:[#allocation4 + $0x8] sm:$0xf] %vm523_vm1, %v753_v41  ;;  %v799_v43 = vpop.permute.xlu0 %798 }
 0x146   : > { %871 = vst.msk [vmem:[#allocation4 + $0x6c] sm:$0xf] %vm523_vm1, %v803_v42 }
 0x147   : > { %869 = vst.msk [vmem:[#allocation4 + $0x64] sm:$0xf] %vm523_vm1, %v799_v43 }
 0x14b   : > { %810 = vrot.lane.b32.xlu0 %v587_v33, %s6152_s17 }
 0x14c   : > { %v801_v44 = vpop.permute.xlu1 %800  ;;  %v629_v45 = vpop.permute.xlu2 %628 }
 0x14d   : > { %870 = vst.msk [vmem:[#allocation4 + $0x68] sm:$0xf] %vm523_vm1, %v801_v44  ;;  %v769_v46 = vpop.permute.xlu0 %768 }
 0x14e   : > { %720 = vst.msk [vmem:[#allocation3 + $0x10] sm:$0xf] %vm523_vm1, %v629_v45 }
 0x14f   : > { %854 = vst.msk [vmem:[#allocation4 + $0x28] sm:$0xf] %vm523_vm1, %v769_v46 }
 0x154   : > { %v627_v47 = vpop.permute.xlu1 %626  ;;  %v773_v48 = vpop.permute.xlu2 %772 }
 0x155   : > { %719 = vst.msk [vmem:[#allocation3 + $0xc] sm:$0xf] %vm523_vm1, %v627_v47  ;;  %v657_v49 = vpop.permute.xlu0 %656 }
 0x156   : > { %856 = vst.msk [vmem:[#allocation4 + $0x30] sm:$0xf] %vm523_vm1, %v773_v48 }
 0x157   : > { %734 = vst.msk [vmem:[#allocation3 + $0x48] sm:$0xf] %vm523_vm1, %v657_v49 }
 0x15c   : > { %v771_v51 = vpop.permute.xlu1 %770  ;;  %v661_v52 = vpop.permute.xlu2 %660 }
 0x15d   : > { %855 = vst.msk [vmem:[#allocation4 + $0x2c] sm:$0xf] %vm523_vm1, %v771_v51  ;;  %v675_v53 = vpop.permute.xlu0 %674 }
 0x15e   : > { %736 = vst.msk [vmem:[#allocation3 + $0x50] sm:$0xf] %vm523_vm1, %v661_v52 }
 0x15f   : > { %743 = vst.msk [vmem:[#allocation3 + $0x6c] sm:$0xf] %vm523_vm1, %v675_v53 }
 0x164   : > { %v659_v54 = vpop.permute.xlu1 %658  ;;  %v631_v55 = vpop.permute.xlu2 %630 }
 0x165   : > { %735 = vst.msk [vmem:[#allocation3 + $0x4c] sm:$0xf] %vm523_vm1, %v659_v54  ;;  %v787_v56 = vpop.permute.xlu0 %786 }
 0x166   : > { %721 = vst.msk [vmem:[#allocation3 + $0x14] sm:$0xf] %vm523_vm1, %v631_v55 }
 0x167   : > { %863 = vst.msk [vmem:[#allocation4 + $0x4c] sm:$0xf] %vm523_vm1, %v787_v56 }
 0x16c   : > { %v677_v57 = vpop.permute.xlu1 %676  ;;  %v679_v58 = vpop.permute.xlu2 %678 }
 0x16d   : > { %744 = vst.msk [vmem:[#allocation3 + $0x70] sm:$0xf] %vm523_vm1, %v677_v57  ;;  %v645_v59 = vpop.permute.xlu0 %644 }
 0x16e   : > { %745 = vst.msk [vmem:[#allocation3 + $0x74] sm:$0xf] %vm523_vm1, %v679_v58 }
 0x16f   : > { %728 = vst.msk [vmem:[#allocation3 + $0x30] sm:$0xf] %vm523_vm1, %v645_v59 }
 0x174   : > { %v789_v60 = vpop.permute.xlu1 %788  ;;  %v791_v61 = vpop.permute.xlu2 %790 }
 0x175   : > { %864 = vst.msk [vmem:[#allocation4 + $0x50] sm:$0xf] %vm523_vm1, %v789_v60  ;;  %v757_v62 = vpop.permute.xlu0 %756 }
 0x176   : > { %865 = vst.msk [vmem:[#allocation4 + $0x54] sm:$0xf] %vm523_vm1, %v791_v61 }
 0x177   : > { %848 = vst.msk [vmem:[#allocation4 + $0x10] sm:$0xf] %vm523_vm1, %v757_v62 }
 0x17c   : > { %v647_v63 = vpop.permute.xlu1 %646  ;;  %v649_v0 = vpop.permute.xlu2 %648 }
 0x17d   : > { %729 = vst.msk [vmem:[#allocation3 + $0x34] sm:$0xf] %vm523_vm1, %v647_v63  ;;  %v805_v1 = vpop.permute.xlu0 %804 }
 0x17e   : > { %730 = vst.msk [vmem:[#allocation3 + $0x38] sm:$0xf] %vm523_vm1, %v649_v0 }
 0x17f   : > { %872 = vst.msk [vmem:[#allocation4 + $0x70] sm:$0xf] %vm523_vm1, %v805_v1 }
 0x184   : > { %v759_v2 = vpop.permute.xlu1 %758  ;;  %v761_v3 = vpop.permute.xlu2 %760 }
 0x185   : > { %849 = vst.msk [vmem:[#allocation4 + $0x14] sm:$0xf] %vm523_vm1, %v759_v2  ;;  %v775_v4 = vpop.permute.xlu0 %774 }
 0x186   : > { %850 = vst.msk [vmem:[#allocation4 + $0x18] sm:$0xf] %vm523_vm1, %v761_v3 }
 0x187   : > { %857 = vst.msk [vmem:[#allocation4 + $0x34] sm:$0xf] %vm523_vm1, %v775_v4 }
 0x18c   : > { %v777_v5 = vpop.permute.xlu1 %776  ;;  %v779_v6 = vpop.permute.xlu2 %778 }
 0x18d   : > { %858 = vst.msk [vmem:[#allocation4 + $0x38] sm:$0xf] %vm523_vm1, %v777_v5  ;;  %v663_v7 = vpop.permute.xlu0 %662 }
 0x18e   : > { %859 = vst.msk [vmem:[#allocation4 + $0x3c] sm:$0xf] %vm523_vm1, %v779_v6 }
 0x18f   : > { %737 = vst.msk [vmem:[#allocation3 + $0x54] sm:$0xf] %vm523_vm1, %v663_v7 }
 0x194   : > { %v665_v8 = vpop.permute.xlu1 %664  ;;  %v667_v9 = vpop.permute.xlu2 %666 }
 0x195   : > { %738 = vst.msk [vmem:[#allocation3 + $0x58] sm:$0xf] %vm523_vm1, %v665_v8  ;;  %v633_v10 = vpop.permute.xlu0 %632 }
 0x196   : > { %739 = vst.msk [vmem:[#allocation3 + $0x5c] sm:$0xf] %vm523_vm1, %v667_v9 }
 0x197   : > { %722 = vst.msk [vmem:[#allocation3 + $0x18] sm:$0xf] %vm523_vm1, %v633_v10 }
 0x19c   : > { %v635_v11 = vpop.permute.xlu1 %634  ;;  %v809_v12 = vpop.permute.xlu2 %808 }
 0x19d   : > { %723 = vst.msk [vmem:[#allocation3 + $0x1c] sm:$0xf] %vm523_vm1, %v635_v11  ;;  %v681_v13 = vpop.permute.xlu0 %680 }
 0x19e   : > { %874 = vst.msk [vmem:[#allocation4 + $0x78] sm:$0xf] %vm523_vm1, %v809_v12 }
 0x19f   : > { %746 = vst.msk [vmem:[#allocation3 + $0x78] sm:$0xf] %vm523_vm1, %v681_v13 }
 0x1a4   : > { %v683_v14 = vpop.permute.xlu1 %682 }
 0x1a5   : > { %747 = vst.msk [vmem:[#allocation3 + $0x7c] sm:$0xf] %vm523_vm1, %v683_v14  ;;  %v793_v50 = vpop.permute.xlu0 %792 }
 0x1a6   : > { %866 = vst.msk [vmem:[#allocation4 + $0x58] sm:$0xf] %vm523_vm1, %v793_v50 }
 0x1ac   : > { %v795_v15 = vpop.permute.xlu1 %794 }
 0x1ad   : > { %867 = vst.msk [vmem:[#allocation4 + $0x5c] sm:$0xf] %vm523_vm1, %v795_v15  ;;  %v651_v16 = vpop.permute.xlu0 %650 }
 0x1ae   : > { %731 = vst.msk [vmem:[#allocation3 + $0x3c] sm:$0xf] %vm523_vm1, %v651_v16 }
 0x1b4   : > { %v807_v17 = vpop.permute.xlu1 %806 }
 0x1b5   : > { %873 = vst.msk [vmem:[#allocation4 + $0x74] sm:$0xf] %vm523_vm1, %v807_v17  ;;  %v763_v18 = vpop.permute.xlu0 %762 }
 0x1b6   : > { %851 = vst.msk [vmem:[#allocation4 + $0x1c] sm:$0xf] %vm523_vm1, %v763_v18 }
 0x1bd   : > { %v811_v19 = vpop.permute.xlu0 %810 }
 0x1be   : > { %875 = vst.msk [vmem:[#allocation4 + $0x7c] sm:$0xf] %vm523_vm1, %v811_v19 }
 0x1bf PF: > { %v5523_v20 = vld [vmem:[#allocation3 + $0x38] sm:$0xff]  ;;  %vm1081_vm2 = vcmask 64512   ;;  %v5522_v24 = vld [vmem:[#allocation3 + $0x30] sm:$0xff]  ;;  %v5521_v28 = vld [vmem:[#allocation3 + $0x28] sm:$0xff]  ;;  %s4845_s25 = sshll.u32 %s6134_s18, 7  ;;  %s6154_s18 = smov 120  }
 0x1c0   : > { %v5531_v21 = vld [vmem:[#allocation3 + $0x78] sm:$0xff]  ;;  %v1128_v22 = vsel %vm1081_vm2, %v5523_v20, 0  ;;  %v5530_v25 = vld [vmem:[#allocation3 + $0x70] sm:$0xff]  ;;  %v1125_v26 = vsel %vm1081_vm2, %v5522_v24, 0  ;;  %v5529_v29 = vld [vmem:[#allocation3 + $0x68] sm:$0xff]  ;;  %v1122_v30 = vsel %vm1081_vm2, %v5521_v28, 0 }
 0x1c1   : > { %v1152_v23 = vsel %vm1081_vm2, %v5531_v21, 0  ;;  %1154 = vmatpush.bf16.xpose.msra.mxu0 %v1128_v22  ;;  %v1149_v27 = vsel %vm1081_vm2, %v5530_v25, 0  ;;  %v1146_v31 = vsel %vm1081_vm2, %v5529_v29, 0  ;;  %v5520_v32 = vld [vmem:[#allocation3 + $0x20] sm:$0xff]  ;;  %v5519_v36 = vld [vmem:[#allocation3 + $0x18] sm:$0xff]  ;;  %v5518_v40 = vld [vmem:[#allocation3 + $0x10] sm:$0xff] }
 0x1c2   : > { %1203 = vmatpush.bf16.xpose.msra.mxu1 %v1152_v23  ;;  %v5528_v33 = vld [vmem:[#allocation3 + $0x60] sm:$0xff]  ;;  %v1119_v34 = vsel %vm1081_vm2, %v5520_v32, 0  ;;  %v5527_v37 = vld [vmem:[#allocation3 + $0x58] sm:$0xff]  ;;  %v1116_v38 = vsel %vm1081_vm2, %v5519_v36, 0  ;;  %v5526_v41 = vld [vmem:[#allocation3 + $0x50] sm:$0xff]  ;;  %v1113_v42 = vsel %vm1081_vm2, %v5518_v40, 0 }
 0x1c3   : > { %v1143_v35 = vsel %vm1081_vm2, %v5528_v33, 0  ;;  %v1140_v39 = vsel %vm1081_vm2, %v5527_v37, 0  ;;  %v1137_v43 = vsel %vm1081_vm2, %v5526_v41, 0  ;;  %v5517_v44 = vld [vmem:[#allocation3 + $0x8] sm:$0xff]  ;;  %v5516_v48 = vld [vmem:[#allocation3] sm:$0xff]  ;;  %s877_s26 = sshra.s32 %s4845_s25, 3 }
 0x1c4   : > { %v5525_v45 = vld [vmem:[#allocation3 + $0x48] sm:$0xff]  ;;  %v1110_v46 = vsel %vm1081_vm2, %v5517_v44, 0  ;;  %v5524_v49 = vld [vmem:[#allocation3 + $0x40] sm:$0xff]  ;;  %v1107_v51 = vsel %vm1081_vm2, %v5516_v48, 0  ;;  %s4846_s27 = sshll.u32 %s877_s26, 2  ;;  %s6155_s29 = smov 112  }
 0x1c5   : > { %v1134_v47 = vsel %vm1081_vm2, %v5525_v45, 0  ;;  %v1131_v52 = vsel %vm1081_vm2, %v5524_v49, 0  ;;  %s6575_s28 = scalar_lea.vmem [#allocation2], %s4846_s27  ;;  %s6156_s30 = smov 104   ;;  %vm1718_vm3 = vcmask 60416   ;;  %vm2659_vm4 = vcmask 126016  }
 0x1c6   : > { %v6578_v53 = vld [vmem:[%s6575_s28] sm:$0xff]  ;;  %v6585_v54 = vld [vmem:[%s6575_s28 + $0x8] sm:$0xff]  ;;  %v6592_v55 = vld [vmem:[%s6575_s28 + $0x10] sm:$0xff]  ;;  %s6157_s6 = smov 8   ;;  %s6158_s7 = smov 16   ;;  %vm3600_vm5 = vcmask 191616  }
 0x1c7   : > { %v6599_v56 = vld [vmem:[%s6575_s28 + $0x18] sm:$0xff]  ;;  %v6606_v57 = vld [vmem:[%s6575_s28 + $0x20] sm:$0xff]  ;;  %v6613_v58 = vld [vmem:[%s6575_s28 + $0x28] sm:$0xff]  ;;  %s6159_s8 = smov 24   ;;  %vm4541_vm6 = vcmask 257216   ;;  %vm4634_vm7 = vcmask 261120  }
 0x1c8   : > { %v6620_v59 = vld [vmem:[%s6575_s28 + $0x30] sm:$0xff]  ;;  %v6627_v60 = vld [vmem:[%s6575_s28 + $0x38] sm:$0xff] }
 0x1c9   : > { %1155 = vmatpush.bf16.xpose.msra.mxu0 %v1125_v26 }
 0x1ca   : > { %1204 = vmatpush.bf16.xpose.msra.mxu1 %v1149_v27 }
 0x1d1   : > { %1156 = vmatpush.bf16.xpose.msra.mxu0 %v1122_v30 }
 0x1d2   : > { %1205 = vmatpush.bf16.xpose.msra.mxu1 %v1146_v31 }
 0x1d9   : > { %1157 = vmatpush.bf16.xpose.msra.mxu0 %v1119_v34 }
 0x1da   : > { %1206 = vmatpush.bf16.xpose.msra.mxu1 %v1143_v35 }
 0x1e1   : > { %1158 = vmatpush.bf16.xpose.msra.mxu0 %v1116_v38 }
 0x1e2   : > { %1207 = vmatpush.bf16.xpose.msra.mxu1 %v1140_v39 }
 0x1e9   : > { %1159 = vmatpush.bf16.xpose.msra.mxu0 %v1113_v42 }
 0x1ea   : > { %1208 = vmatpush.bf16.xpose.msra.mxu1 %v1137_v43 }
 0x1f1   : > { %1160 = vmatpush.bf16.xpose.msra.mxu0 %v1110_v46 }
 0x1f2   : > { %1209 = vmatpush.bf16.xpose.msra.mxu1 %v1134_v47 }
 0x1f9   : > { %1161 = vmatpush.bf16.xpose.msra.mxu0 %v1107_v51 }
 0x1fa   : > { %1210 = vmatpush.bf16.xpose.msra.mxu1 %v1131_v52 }
 0x200   : > { %4943 = vmatmul.msk.bf16.vlgmr.msra.gmra.mxu0 %vm1081_vm2, %v6578_v53 }
 0x201   : > { %4951 = vmatmul.msk.bf16.vlgmr.msra.gmra.mxu1 %vm1081_vm2, %v6578_v53 }
 0x210   : > { %4944 = vmatmul.msk.bf16.gmra.mxu0 %vm1081_vm2, %v6585_v54 }
 0x211   : > { %4952 = vmatmul.msk.bf16.gmra.mxu1 %vm1081_vm2, %v6585_v54 }
 0x220   : > { %4945 = vmatmul.msk.bf16.gmra.mxu0 %vm1081_vm2, %v6592_v55 }
 0x221   : > { %4953 = vmatmul.msk.bf16.gmra.mxu1 %vm1081_vm2, %v6592_v55 }
 0x230   : > { %4946 = vmatmul.msk.bf16.gmra.mxu0 %vm1081_vm2, %v6599_v56 }
 0x231   : > { %4954 = vmatmul.msk.bf16.gmra.mxu1 %vm1081_vm2, %v6599_v56 }
 0x240   : > { %4947 = vmatmul.msk.bf16.gmra.mxu0 %vm1081_vm2, %v6606_v57 }
 0x241   : > { %4955 = vmatmul.msk.bf16.gmra.mxu1 %vm1081_vm2, %v6606_v57 }
 0x250   : > { %4948 = vmatmul.msk.bf16.gmra.mxu0 %vm1081_vm2, %v6613_v58 }
 0x251   : > { %4956 = vmatmul.msk.bf16.gmra.mxu1 %vm1081_vm2, %v6613_v58 }
 0x260   : > { %4949 = vmatmul.msk.bf16.gmra.mxu0 %vm1081_vm2, %v6620_v59 }
 0x261   : > { %4957 = vmatmul.msk.bf16.gmra.mxu1 %vm1081_vm2, %v6620_v59 }
 0x270   : > { %4950 = vmatmul.msk.bf16.gmra.mxu0 %vm1081_vm2, %v6627_v60 }
 0x271   : > { %4958 = vmatmul.msk.bf16.gmra.mxu1 %vm1081_vm2, %v6627_v60 }
 0x27d   : > { %v6633_v61 = vpop.f32.mrf.mxu0 }
 0x27e   : > { %v6635_v62 = vpop.f32.mrf.mxu1 }
 0x27f   : > { %v1252_v31 = vmax.f32 %v6633_v61, %v6635_v62 }
 0x285   : > { %v6637_v63 = vpop.f32.mrf.mxu0 }
 0x286   : > { %v6639_v0 = vpop.f32.mrf.mxu1 }
 0x287   : > { %v1255_v1 = vmax.f32 %v6637_v63, %v6639_v0 }
 0x289   : > { %1256 = vmax.xlane.f32.xlu2 %v1255_v1 }
 0x28d   : > { %v6643_v2 = vpop.f32.mrf.mxu0 }
 0x28e   : > { %v6645_v3 = vpop.f32.mrf.mxu1 }
 0x28f   : > { %v1258_v4 = vmax.f32 %v6643_v2, %v6645_v3 }
 0x291   : > { %1259 = vmax.xlane.f32.xlu2 %v1258_v4 }
 0x295   : > { %v6649_v5 = vpop.f32.mrf.mxu0 }
 0x296   : > { %v6651_v6 = vpop.f32.mrf.mxu1 }
 0x297   : > { %v1261_v23 = vmax.f32 %v6649_v5, %v6651_v6 }
 0x29d   : > { %v6653_v7 = vpop.f32.mrf.mxu0 }
 0x29e   : > { %v6655_v8 = vpop.f32.mrf.mxu1 }
 0x29f   : > { %v1264_v27 = vmax.f32 %v6653_v7, %v6655_v8 }
 0x2a5   : > { %v6657_v9 = vpop.f32.mrf.mxu0 }
 0x2a6   : > { %v6659_v10 = vpop.f32.mrf.mxu1 }
 0x2a7   : > { %v1267_v35 = vmax.f32 %v6657_v9, %v6659_v10 }
 0x2ad   : > { %v6661_v11 = vpop.f32.mrf.mxu0 }
 0x2ae   : > { %v6663_v12 = vpop.f32.mrf.mxu1 }
 0x2af   : > { %v1270_v39 = vmax.f32 %v6661_v11, %v6663_v12 }
 0x2b5   : > { %v6665_v13 = vpop.f32.mrf.mxu0 }
 0x2b6   : > { %v6667_v14 = vpop.f32.mrf.mxu1 }
 0x2b7   : > { %v1273_v50 = vmax.f32 %v6665_v13, %v6667_v14 }
 0x2b9   : > { %1274 = vmax.xlane.f32.xlu2 %v1273_v50 }
 0x2bd   : > { %v6671_v15 = vpop.f32.mrf.mxu0 }
 0x2be   : > { %v6673_v16 = vpop.f32.mrf.mxu1 }
 0x2bf   : > { %v1276_v17 = vmax.f32 %v6671_v15, %v6673_v16 }
 0x2c1   : > { %1277 = vmax.xlane.f32.xlu0 %v1276_v17 }
 0x2c5   : > { %v6677_v18 = vpop.f32.mrf.mxu0 }
 0x2c6   : > { %v6679_v19 = vpop.f32.mrf.mxu1 }
 0x2c7   : > { %v1279_v20 = vmax.f32 %v6677_v18, %v6679_v19 }
 0x2c9   : > { %1280 = vmax.xlane.f32.xlu0 %v1279_v20 }
 0x2cd   : > { %v6683_v21 = vpop.f32.mrf.mxu0 }
 0x2ce   : > { %v6685_v22 = vpop.f32.mrf.mxu1 }
 0x2cf   : > { %v1282_v24 = vmax.f32 %v6683_v21, %v6685_v22 }
 0x2d1   : > { %1262 = vmax.xlane.f32.xlu0 %v1261_v23  ;;  %1283 = vmax.xlane.f32.xlu1 %v1282_v24 }
 0x2d5   : > { %v6691_v25 = vpop.f32.mrf.mxu0 }
 0x2d6   : > { %v6693_v26 = vpop.f32.mrf.mxu1 }
 0x2d7   : > { %v1285_v28 = vmax.f32 %v6691_v25, %v6693_v26 }
 0x2d9   : > { %1265 = vmax.xlane.f32.xlu0 %v1264_v27  ;;  %1286 = vmax.xlane.f32.xlu1 %v1285_v28 }
 0x2dd   : > { %v6699_v29 = vpop.f32.mrf.mxu0 }
 0x2de   : > { %v6701_v30 = vpop.f32.mrf.mxu1 }
 0x2df   : > { %v1288_v32 = vmax.f32 %v6699_v29, %v6701_v30 }
 0x2e1   : > { %1253 = vmax.xlane.f32.xlu1 %v1252_v31  ;;  %1289 = vmax.xlane.f32.xlu2 %v1288_v32 }
 0x2e5   : > { %v6707_v33 = vpop.f32.mrf.mxu0 }
 0x2e6   : > { %v6709_v34 = vpop.f32.mrf.mxu1 }
 0x2e7   : > { %v1291_v36 = vmax.f32 %v6707_v33, %v6709_v34 }
 0x2e9   : > { %1268 = vmax.xlane.f32.xlu1 %v1267_v35  ;;  %1292 = vmax.xlane.f32.xlu2 %v1291_v36 }
 0x2ed   : > { %v6715_v37 = vpop.f32.mrf.mxu0 }
 0x2ee   : > { %v6717_v38 = vpop.f32.mrf.mxu1 }
 0x2ef   : > { %v1294_v40 = vmax.f32 %v6715_v37, %v6717_v38 }
 0x2f1   : > { %1271 = vmax.xlane.f32.xlu1 %v1270_v39  ;;  %1295 = vmax.xlane.f32.xlu0 %v1294_v40 }
 0x2f5   : > { %v6723_v41 = vpop.f32.mrf.mxu0 }
 0x2f6   : > { %v6725_v42 = vpop.f32.mrf.mxu1 }
 0x2f7   : > { %v1297_v43 = vmax.f32 %v6723_v41, %v6725_v42 }
 0x2f9   : > { %1298 = vmax.xlane.f32.xlu1 %v1297_v43 }
 0x2fc   : > { %v1257_v44 = vpop.xlane.xlu2 %1256 }
 0x2fd   : > { %v1302_v45 = vsub.f32 %v6637_v63, %v1257_v44  ;;  %v1303_v46 = vsub.f32 %v6639_v0, %v1257_v44 }
 0x2ff   : > { %v1336_v47 = vmul.f32 1.442695, %v1302_v45  ;;  %v1338_v48 = vmul.f32 1.442695, %v1303_v46 }
 0x301   : > { %5720 = vpow2.f32 %v1336_v47 }
 0x302   : > { %5722 = vpow2.f32 %v1338_v48 }
 0x304   : > { %v1260_v49 = vpop.xlane.xlu2 %1259 }
 0x305   : > { %v1304_v51 = vsub.f32 %v6643_v2, %v1260_v49  ;;  %v1305_v52 = vsub.f32 %v6645_v3, %v1260_v49 }
 0x307   : > { %v6733_v1 = vpop.eup %5720  ;;  %v1340_v4 = vmul.f32 1.442695, %v1304_v51  ;;  %v1342_v50 = vmul.f32 1.442695, %v1305_v52 }
 0x308   : > { %v6735_v17 = vpop.eup %5722 }
 0x309   : > { %5724 = vpow2.f32 %v1340_v4  ;;  %v1399_v63 = vadd.f32 %v6735_v17, %v6733_v1 }
 0x30a   : > { %5726 = vpow2.f32 %v1342_v50 }
 0x30b   : > { %1400 = vadd.xlane.f32.xlu1 %v1399_v63 }
 0x30f   : > { %v6739_v0 = vpop.eup %5724 }
 0x310   : > { %v6741_v20 = vpop.eup %5726 }
 0x311   : > { %v1402_v2 = vadd.f32 %v6741_v20, %v6739_v0 }
 0x313   : > { %1403 = vadd.xlane.f32.xlu2 %v1402_v2 }
 0x334   : > { %v1278_v3 = vpop.xlane.xlu0 %1277 }
 0x335   : > { %v1316_v23 = vsub.f32 %v6671_v15, %v1278_v3  ;;  %v1317_v24 = vsub.f32 %v6673_v16, %v1278_v3  ;;  %v6757_v15 = vpop.xlane.xlu2 %1274 }
 0x337   : > { %v1364_v27 = vmul.f32 1.442695, %v1316_v23  ;;  %v1366_v28 = vmul.f32 1.442695, %v1317_v24 }
 0x339   : > { %5728 = vpow2.f32 %v1364_v27 }
 0x33a   : > { %5730 = vpow2.f32 %v1366_v28 }
 0x33c   : > { %v6747_v31 = vpop.xlane.xlu0 %1280 }
 0x33f   : > { %v6749_v32 = vpop.eup %5728 }
 0x340   : > { %v6751_v35 = vpop.eup %5730 }
 0x341   : > { %v1420_v36 = vadd.f32 %v6751_v35, %v6749_v32 }
 0x343   : > { %1421 = vadd.xlane.f32.xlu2 %v1420_v36 }
 0x344   : > { %v1263_v39 = vpop.xlane.xlu0 %1262  ;;  %v6755_v40 = vpop.xlane.xlu1 %1283 }
 0x345   : > { %v1306_v63 = vsub.f32 %v6649_v5, %v1263_v39 }
 0x347   : > { %v1344_v27 = vmul.f32 1.442695, %v1306_v63 }
 0x34c   : > { %v1266_v16 = vpop.xlane.xlu0 %1265  ;;  %v1287_v43 = vpop.xlane.xlu1 %1286 }
 0x34d   : > { %v1322_v44 = vsub.f32 %v6691_v25, %v1287_v43  ;;  %v1323_v45 = vsub.f32 %v6693_v26, %v1287_v43  ;;  %v1308_v46 = vsub.f32 %v6653_v7, %v1266_v16  ;;  %v1309_v48 = vsub.f32 %v6655_v8, %v1266_v16 }
 0x34e   : > { %v1307_v26 = vsub.f32 %v6651_v6, %v1263_v39 }
 0x34f   : > { %v1376_v47 = vmul.f32 1.442695, %v1322_v44  ;;  %v1378_v49 = vmul.f32 1.442695, %v1323_v45  ;;  %v1348_v51 = vmul.f32 1.442695, %v1308_v46  ;;  %v1318_v44 = vsub.f32 %v6677_v18, %v6747_v31 }
 0x350   : > { %v1350_v52 = vmul.f32 1.442695, %v1309_v48  ;;  %v1346_v5 = vmul.f32 1.442695, %v1307_v26  ;;  %v1319_v48 = vsub.f32 %v6679_v19, %v6747_v31 }
 0x351   : > { %5732 = vpow2.f32 %v1376_v47 }
 0x352   : > { %5734 = vpow2.f32 %v1378_v49  ;;  %v1315_v49 = vsub.f32 %v6667_v14, %v6757_v15  ;;  %v1370_v31 = vmul.f32 1.442695, %v1319_v48  ;;  %v1320_v14 = vsub.f32 %v6683_v21, %v6755_v40  ;;  %v5555_v48 = vld [vmem:[#allocation3 + $0x38] sm:$0xff] }
 0x353   : > { %5736 = vpow2.f32 %v1348_v51  ;;  %v1368_v51 = vmul.f32 1.442695, %v1318_v44 }
 0x354   : > { %v1254_v4 = vpop.xlane.xlu1 %1253  ;;  %v1290_v50 = vpop.xlane.xlu2 %1289  ;;  %5738 = vpow2.f32 %v1350_v52  ;;  %v1362_v63 = vmul.f32 1.442695, %v1315_v49  ;;  %v5554_v49 = vld [vmem:[#allocation3 + $0x30] sm:$0xff] }
 0x355   : > { %v1300_v2 = vsub.f32 %v6633_v61, %v1254_v4  ;;  %v1301_v25 = vsub.f32 %v6635_v62, %v1254_v4  ;;  %v1324_v8 = vsub.f32 %v6699_v29, %v1290_v50  ;;  %v1325_v23 = vsub.f32 %v6701_v30, %v1290_v50 }
 0x357   : > { %v1332_v7 = vmul.f32 1.442695, %v1300_v2  ;;  %v1334_v3 = vmul.f32 1.442695, %v1301_v25  ;;  %v6769_v24 = vpop.eup %5732  ;;  %v1380_v61 = vmul.f32 1.442695, %v1324_v8  ;;  %v1321_v25 = vsub.f32 %v6685_v22, %v6755_v40 }
 0x358   : > { %v6771_v28 = vpop.eup %5734  ;;  %v1382_v6 = vmul.f32 1.442695, %v1325_v23 }
 0x359   : > { %5740 = vpow2.f32 %v1332_v7  ;;  %v1429_v62 = vadd.f32 %v6771_v28, %v6769_v24  ;;  %v6775_v39 = vpop.eup %5736  ;;  %v1374_v8 = vmul.f32 1.442695, %v1321_v25  ;;  %v5558_v25 = vld [vmem:[#allocation3 + $0x50] sm:$0xff] }
 0x35a   : > { %5742 = vpow2.f32 %v1334_v3  ;;  %v6779_v16 = vpop.eup %5738  ;;  %v1372_v3 = vmul.f32 1.442695, %v1320_v14  ;;  %v5553_v14 = vld [vmem:[#allocation3 + $0x28] sm:$0xff] }
 0x35b   : > { %5744 = vpow2.f32 %v1344_v27  ;;  %1430 = vadd.xlane.f32.xlu1 %v1429_v62  ;;  %v1408_v52 = vadd.f32 %v6779_v16, %v6775_v39 }
 0x35c   : > { %v1269_v36 = vpop.xlane.xlu1 %1268  ;;  %5746 = vpow2.f32 %v1346_v5 }
 0x35d   : > { %v1310_v29 = vsub.f32 %v6657_v9, %v1269_v36  ;;  %v1311_v30 = vsub.f32 %v6659_v10, %v1269_v36  ;;  %5748 = vpow2.f32 %v1380_v61  ;;  %v1314_v9 = vsub.f32 %v6665_v13, %v6757_v15 }
 0x35e   : > { %5750 = vpow2.f32 %v1382_v6 }
 0x35f   : > { %v6781_v43 = vpop.eup %5740  ;;  %v1352_v45 = vmul.f32 1.442695, %v1310_v29  ;;  %v1354_v46 = vmul.f32 1.442695, %v1311_v30  ;;  %v1360_v13 = vmul.f32 1.442695, %v1314_v9 }
 0x360   : > { %v6785_v47 = vpop.eup %5742 }
 0x361   : > { %5752 = vpow2.f32 %v1352_v45  ;;  %v1396_v10 = vadd.f32 %v6785_v47, %v6781_v43  ;;  %v6795_v18 = vpop.eup %5744 }
 0x362   : > { %5754 = vpow2.f32 %v1354_v46  ;;  %v6799_v19 = vpop.eup %5746 }
 0x363   : > { %1397 = vadd.xlane.f32.xlu0 %v1396_v10  ;;  %v6801_v4 = vpop.eup %5748  ;;  %1409 = vadd.xlane.f32.xlu1 %v1408_v52  ;;  %5756 = vpow2.f32 %v1368_v51  ;;  %v1405_v7 = vadd.f32 %v6799_v19, %v6795_v18  ;;  %v5562_v10 = vld [vmem:[#allocation3 + $0x70] sm:$0xff]  ;;  %v5561_v51 = vld [vmem:[#allocation3 + $0x68] sm:$0xff]  ;;  %v5552_v52 = vld [vmem:[#allocation3 + $0x20] sm:$0xff] }
 0x364   : > { %v6803_v50 = vpop.eup %5750  ;;  %5758 = vpow2.f32 %v1370_v31  ;;  %v1272_v23 = vpop.xlane.xlu1 %1271  ;;  %v5563_v31 = vld [vmem:[#allocation3 + $0x78] sm:$0xff] }
 0x365   : > { %5760 = vpow2.f32 %v1360_v13  ;;  %v1432_v21 = vadd.f32 %v6803_v50, %v6801_v4  ;;  %v1312_v5 = vsub.f32 %v6661_v11, %v1272_v23  ;;  %v1313_v62 = vsub.f32 %v6663_v12, %v1272_v23  ;;  %v5551_v13 = vld [vmem:[#allocation3 + $0x18] sm:$0xff]  ;;  %v5537_v23 = vld [vmem:[#allocation4 + $0x28] sm:$0xff] }
 0x366   : > { %5762 = vpow2.f32 %v1362_v63  ;;  %v5559_v63 = vld [vmem:[#allocation3 + $0x58] sm:$0xff] }
 0x367   : > { %v6805_v2 = vpop.eup %5752  ;;  %5764 = vpow2.f32 %v1372_v3  ;;  %v1356_v36 = vmul.f32 1.442695, %v1312_v5  ;;  %v1358_v30 = vmul.f32 1.442695, %v1313_v62  ;;  %v5560_v3 = vld [vmem:[#allocation3 + $0x60] sm:$0xff]  ;;  %v5550_v62 = vld [vmem:[#allocation3 + $0x10] sm:$0xff] }
 0x368   : > { %v6809_v15 = vpop.eup %5754  ;;  %5766 = vpow2.f32 %v1374_v8  ;;  %v5548_v8 = vld [vmem:[#allocation3] sm:$0xff] }
 0x369   : > { %v1411_v26 = vadd.f32 %v6809_v15, %v6805_v2  ;;  %v6819_v27 = vpop.eup %5756  ;;  %5768 = vpow2.f32 %v1356_v36  ;;  %v5556_v5 = vld [vmem:[#allocation3 + $0x40] sm:$0xff]  ;;  %v5535_v36 = vld [vmem:[#allocation4 + $0x18] sm:$0xff] }
 0x36a   : > { %v6821_v22 = vpop.eup %5758  ;;  %5770 = vpow2.f32 %v1358_v30  ;;  %v5534_v30 = vld [vmem:[#allocation4 + $0x10] sm:$0xff] }
 0x36b   : > { %1412 = vadd.xlane.f32.xlu2 %v1411_v26  ;;  %1406 = vadd.xlane.f32.xlu0 %v1405_v7  ;;  %v6823_v40 = vpop.eup %5760  ;;  %v1423_v6 = vadd.f32 %v6821_v22, %v6819_v27  ;;  %v5539_v26 = vld [vmem:[#allocation4 + $0x38] sm:$0xff]  ;;  %v5549_v7 = vld [vmem:[#allocation3 + $0x8] sm:$0xff] }
 0x36c   : > { %1433 = vadd.xlane.f32.xlu1 %v1432_v21  ;;  %v6826_v61 = vpop.eup %5762  ;;  %1604 = vmatpush.bf16.msra.mxu2 %v5539_v26  ;;  %v5538_v21 = vld [vmem:[#allocation4 + $0x30] sm:$0xff] }
 0x36d   : > { %v1417_v29 = vadd.f32 %v6826_v61, %v6823_v40  ;;  %v6833_v44 = vpop.eup %5764  ;;  %5660 = vmatpush.bf16.msra.mxu3 %v5539_v26  ;;  %v5545_v26 = vld [vmem:[#allocation4 + $0x68] sm:$0xff] }
 0x36e   : > { %v6835_v45 = vpop.eup %5766 }
 0x36f   : > { %v1426_v11 = vadd.f32 %v6835_v45, %v6833_v44  ;;  %v6839_v12 = vpop.eup %5768 }
 0x370   : > { %v6841_v46 = vpop.eup %5770  ;;  %1605 = vmatpush.bf16.msra.mxu2 %v5538_v21 }
 0x371   : > { %v1414_v9 = vadd.f32 %v6841_v46, %v6839_v12  ;;  %5661 = vmatpush.bf16.msra.mxu3 %v5538_v21 }
 0x373   : > { %1424 = vadd.xlane.f32.xlu0 %v1423_v6  ;;  %v5536_v6 = vld [vmem:[#allocation4 + $0x20] sm:$0xff] }
 0x374   : > { %1418 = vadd.xlane.f32.xlu1 %v1417_v29  ;;  %1606 = vmatpush.bf16.msra.mxu2 %v5537_v23  ;;  %v5557_v29 = vld [vmem:[#allocation3 + $0x48] sm:$0xff] }
 0x375   : > { %5662 = vmatpush.bf16.msra.mxu3 %v5537_v23 }
 0x378   : > { %1607 = vmatpush.bf16.msra.mxu2 %v5536_v6 }
 0x379   : > { %5663 = vmatpush.bf16.msra.mxu3 %v5536_v6  ;;  %v5584_v6 = vld [vmem:[#allocation3 + $0x20] sm:$0xff] }
 0x37b   : > { %1427 = vadd.xlane.f32.xlu0 %v1426_v11  ;;  %v5533_v11 = vld [vmem:[#allocation4 + $0x8] sm:$0xff] }
 0x37c   : > { %1608 = vmatpush.bf16.msra.mxu2 %v5535_v36 }
 0x37d   : > { %5664 = vmatpush.bf16.msra.mxu3 %v5535_v36 }
 0x380   : > { %1609 = vmatpush.bf16.msra.mxu2 %v5534_v30 }
 0x381   : > { %5665 = vmatpush.bf16.msra.mxu3 %v5534_v30 }
 0x383   : > { %1909 = vrot.lane.b32.xlu2 %v5555_v48, %s6154_s18  ;;  %1415 = vadd.xlane.f32.xlu0 %v1414_v9  ;;  %v5587_v48 = vld [vmem:[#allocation3 + $0x38] sm:$0xff]  ;;  %v6870_v9 = vpop.xlane.xlu1 %1298 }
 0x384   : > { %1610 = vmatpush.bf16.msra.mxu2 %v5533_v11 }
 0x385   : > { %5666 = vmatpush.bf16.msra.mxu3 %v5533_v11 }
 0x38b   : > { %1923 = vrot.lane.b32.xlu2 %v5562_v10, %s6154_s18  ;;  %v1293_v10 = vpop.xlane.xlu2 %1292 }
 0x38c   : > { %v1327_v23 = vsub.f32 %v6709_v34, %v1293_v10 }
 0x38d   : > { %1907 = vrot.lane.b32.xlu1 %v5554_v49, %s6154_s18  ;;  %v1401_v49 = vpop.xlane.xlu1 %1400 }
 0x38e   : > { %5772 = vrcp.f32 %v1401_v49 }
 0x393   : > { %1921 = vrot.lane.b32.xlu2 %v5561_v51, %s6154_s18  ;;  %v5595_v51 = vld [vmem:[#allocation3 + $0x78] sm:$0xff] }
 0x395   : > { %1903 = vrot.lane.b32.xlu1 %v5552_v52, %s6154_s18  ;;  %v5547_v52 = vld [vmem:[#allocation4 + $0x78] sm:$0xff] }
 0x397   : > { %1925 = vrot.lane.b32.xlu0 %v5563_v31, %s6154_s18  ;;  %v6875_v31 = vpop.xlane.xlu0 %1295 }
 0x39b   : > { %1901 = vrot.lane.b32.xlu2 %v5551_v13, %s6154_s18  ;;  %v1404_v13 = vpop.xlane.xlu2 %1403 }
 0x39d   : > { %1917 = vrot.lane.b32.xlu1 %v5559_v63, %s6154_s18 }
 0x39f   : > { %1905 = vrot.lane.b32.xlu0 %v5553_v14, %s6154_s18  ;;  %v5546_v14 = vld [vmem:[#allocation4 + $0x70] sm:$0xff] }
 0x3a3   : > { %1915 = vrot.lane.b32.xlu2 %v5558_v25, %s6154_s18  ;;  %v1326_v25 = vsub.f32 %v6707_v33, %v1293_v10  ;;  %v5543_v33 = vld [vmem:[#allocation4 + $0x58] sm:$0xff] }
 0x3a5   : > { %1897 = vrot.lane.b32.xlu1 %v5549_v7, %s6154_s18  ;;  %v1384_v21 = vmul.f32 1.442695, %v1326_v25 }
 0x3a7   : > { %1919 = vrot.lane.b32.xlu0 %v5560_v3, %s6154_s18 }
 0x3ab   : > { %1895 = vrot.lane.b32.xlu2 %v5548_v8, %s6154_s18  ;;  %v5544_v8 = vld [vmem:[#allocation4 + $0x60] sm:$0xff] }
 0x3ad   : > { %1911 = vrot.lane.b32.xlu1 %v5556_v5, %s6154_s18  ;;  %v5773_v5 = vpop.eup %5772 }
 0x3ae   : > { %v1462_v30 = vmul.f32 %v5773_v5, %v6733_v1  ;;  %v6890_v34 = vmul.f32 %v5773_v5, %v6735_v17  ;;  %v5541_v17 = vld [vmem:[#allocation4 + $0x48] sm:$0xff] }
 0x3af   : > { %1899 = vrot.lane.b32.xlu0 %v5550_v62, %s6154_s18 }
 0x3b3   : > { %1801 = vrot.lane.b32.xlu2 %v6585_v54, %s6154_s18  ;;  %v5586_v54 = vld [vmem:[#allocation3 + $0x30] sm:$0xff] }
 0x3b5   : > { %1803 = vrot.lane.b32.xlu1 %v6592_v55, %s6154_s18  ;;  %v5532_v55 = vld [vmem:[#allocation4] sm:$0xff] }
 0x3b6   : > { %1611 = vmatpush.bf16.msra.mxu2 %v5532_v55  ;;  %5667 = vmatpush.bf16.msra.mxu3 %v5532_v55  ;;  %v1422_v7 = vpop.xlane.xlu2 %1421 }
 0x3b7   : > { %1913 = vrot.lane.b32.xlu0 %v5557_v29, %s6154_s18  ;;  %v1386_v29 = vmul.f32 1.442695, %v1327_v23 }
 0x3ba   : > { %1653 = vmatpush.bf16.msrb.mxu3 %v5547_v52 }
 0x3bb   : > { %1807 = vrot.lane.b32.xlu2 %v6606_v57, %s6154_s18 }
 0x3bd   : > { %2850 = vrot.lane.b32.xlu1 %v5587_v48, %s6155_s29 }
 0x3be   : > { %1654 = vmatpush.bf16.msrb.mxu3 %v5546_v14 }
 0x3bf   : > { %1799 = vrot.lane.b32.xlu0 %v6578_v53, %s6154_s18 }
 0x3c2   : > { %1655 = vmatpush.bf16.msrb.mxu3 %v5545_v26 }
 0x3c3   : > { %2848 = vrot.lane.b32.xlu2 %v5586_v54, %s6155_s29 }
 0x3c6   : > { %1656 = vmatpush.bf16.msrb.mxu3 %v5544_v8 }
 0x3c7   : > { %1805 = vrot.lane.b32.xlu0 %v6599_v56, %s6154_s18 }
 0x3ca   : > { %1657 = vmatpush.bf16.msrb.mxu3 %v5543_v33 }
 0x3ce   : > { %v6878_v63 = vpop.xlane.xlu1 %1430 }
 0x3cf   : > { %2866 = vrot.lane.b32.xlu0 %v5595_v51, %s6155_s29 }
 0x3d6   : > { %v1398_v3 = vpop.xlane.xlu0 %1397  ;;  %v1410_v62 = vpop.xlane.xlu1 %1409 }
 0x3d7   : > { %5774 = vrcp.f32 %v1398_v3  ;;  %1809 = vrot.lane.b32.xlu0 %v6613_v58, %s6154_s18 }
 0x3d8   : > { %5776 = vpow2.f32 %v1384_v21 }
 0x3d9   : > { %5778 = vrcp.f32 %v1410_v62 }
 0x3da   : > { %5780 = vrcp.f32 %v1404_v13 }
 0x3dd   : > { %v5775_v36 = vpop.eup %5774 }
 0x3de   : > { %v1413_v11 = vpop.xlane.xlu2 %1412  ;;  %v1407_v48 = vpop.xlane.xlu0 %1406  ;;  %v1460_v58 = vmul.f32 %v5775_v36, %v6781_v43  ;;  %v6887_v54 = vmul.f32 %v5775_v36, %v6785_v47  ;;  %v5542_v43 = vld [vmem:[#allocation4 + $0x50] sm:$0xff]  ;;  %v5583_v47 = vld [vmem:[#allocation3 + $0x18] sm:$0xff] }
 0x3df   : > { %5782 = vrcp.f32 %v1413_v11  ;;  %2844 = vrot.lane.b32.xlu0 %v5584_v6, %s6155_s29  ;;  %v6895_v10 = vpop.eup %5776  ;;  %1658 = vmatpush.bf16.msrb.mxu3 %v5542_v43  ;;  %v6913_v5 = vpop.xlane.xlu1 %1433  ;;  %v5540_v6 = vld [vmem:[#allocation4 + $0x40] sm:$0xff] }
 0x3e0   : > { %5784 = vrcp.f32 %v1407_v48  ;;  %v1492_v55 = vpack.c.bf16 %v1462_v30, %v1460_v58  ;;  %v1493_v1 = vpack.c.bf16 %v6890_v34, %v6887_v54  ;;  %v5779_v49 = vpop.eup %5778 }
 0x3e1   : > { %5786 = vpow2.f32 %v1386_v29  ;;  %v5781_v51 = vpop.eup %5780  ;;  %v6898_v26 = vmul.f32 %v5779_v49, %v6779_v16 }
 0x3e2   : > { %1612 = vmatmul.bf16.vlgmr.msra.gmra.mxu2 %v1492_v55  ;;  %5788 = vrcp.f32 %v1422_v7  ;;  %v6908_v23 = vmul.f32 %v5781_v51, %v6741_v20  ;;  %v1464_v36 = vmul.f32 %v5781_v51, %v6739_v0 }
 0x3e3   : > { %1659 = vmatpush.bf16.msrb.mxu3 %v5541_v17 }
 0x3e5   : > { %v5783_v52 = vpop.eup %5782 }
 0x3e6   : > { %v5785_v13 = vpop.eup %5784  ;;  %v1910_v14 = vpop.permute.xlu2 %1909  ;;  %v6901_v3 = vmul.f32 %v5783_v52, %v6809_v15 }
 0x3e7   : > { %v1425_v25 = vpop.xlane.xlu0 %1424  ;;  %v6903_v21 = vpop.eup %5786  ;;  %2842 = vrot.lane.b32.xlu0 %v5583_v47, %s6155_s29  ;;  %v1973_v8 = vsel %vm1081_vm2, %v1910_v14, 0  ;;  %v6911_v7 = vmul.f32 %v5785_v13, %v6799_v19  ;;  %v1466_v20 = vmul.f32 %v5785_v13, %v6795_v18  ;;  %1660 = vmatpush.bf16.msrb.mxu3 %v5540_v6  ;;  %v1470_v13 = vmul.f32 %v5783_v52, %v6805_v2 }
 0x3e8   : > { %5790 = vrcp.f32 %v1425_v25  ;;  %1999 = vmatpush.bf16.xpose.msrb.mxu2 %v1973_v8  ;;  %v1497_v16 = vpack.c.bf16 %v6901_v3, %v6898_v26  ;;  %v1435_v62 = vadd.f32 %v6903_v21, %v6895_v10  ;;  %v5789_v33 = vpop.eup %5788  ;;  %v1330_v8 = vsub.f32 %v6723_v41, %v6870_v9  ;;  %v5620_v26 = vld [vmem:[#allocation3 + $0x40] sm:$0xff]  ;;  %v7190_v3 = vld [vmem:[%s6575_s28 + $0x38] sm:$0xff] }
 0x3e9   : > { %v1495_v15 = vpack.c.bf16 %v6911_v7, %v6908_v23  ;;  %5792 = vrcp.f32 %v6878_v63  ;;  %v1476_v30 = vmul.f32 %v5789_v33, %v6749_v32  ;;  %v6927_v48 = vmul.f32 %v5789_v33, %v6751_v35  ;;  %v1419_v63 = vpop.xlane.xlu1 %1418  ;;  %v5568_v7 = vld [vmem:[#allocation4 + $0x20] sm:$0xff] }
 0x3ea   : > { %v1494_v55 = vpack.c.bf16 %v1466_v20, %v1464_v36 }
 0x3ec   : > { %1436 = vadd.xlane.f32.xlu2 %v1435_v62 }
 0x3ee   : > { %v5791_v19 = vpop.eup %5790  ;;  %v1924_v51 = vpop.permute.xlu2 %1923 }
 0x3ef   : > { %v1428_v29 = vpop.xlane.xlu0 %1427  ;;  %v1478_v11 = vmul.f32 %v5791_v19, %v6819_v27  ;;  %v6930_v58 = vmul.f32 %v5791_v19, %v6821_v22  ;;  %v5793_v0 = vpop.eup %5792  ;;  %v1392_v19 = vmul.f32 1.442695, %v1330_v8 }
 0x3f0   : > { %5794 = vrcp.f32 %v1428_v29  ;;  %v6938_v35 = vmul.f32 %v5793_v0, %v6771_v28  ;;  %v1468_v28 = vmul.f32 %v5779_v49, %v6775_v39  ;;  %v1482_v62 = vmul.f32 %v5793_v0, %v6769_v24 }
 0x3f1   : > { %v1500_v18 = vpack.c.bf16 %v1478_v11, %v1476_v30  ;;  %v1501_v43 = vpack.c.bf16 %v6930_v58, %v6927_v48  ;;  %5796 = vrcp.f32 %v1419_v63 }
 0x3f2   : > { %1617 = vmatmul.bf16.gmra.mxu2 %v1494_v55  ;;  %v1496_v2 = vpack.c.bf16 %v1470_v13, %v1468_v28 }
 0x3f3   : > { %1632 = vmatmul.bf16.vlgmr.msra.gmra.mxu3 %v1500_v18 }
 0x3f6   : > { %v5795_v47 = vpop.eup %5794  ;;  %v1922_v24 = vpop.permute.xlu2 %1921 }
 0x3f7   : > { %v1416_v32 = vpop.xlane.xlu0 %1415  ;;  %v6935_v27 = vmul.f32 %v5795_v47, %v6835_v45  ;;  %v5797_v17 = vpop.eup %5796  ;;  %v1480_v14 = vmul.f32 %v5795_v47, %v6833_v44  ;;  %v1331_v45 = vsub.f32 %v6725_v42, %v6870_v9  ;;  %v5585_v44 = vld [vmem:[#allocation3 + $0x28] sm:$0xff] }
 0x3f8   : > { %5798 = vrcp.f32 %v1416_v32  ;;  %v6954_v33 = vmul.f32 %v5797_v17, %v6826_v61  ;;  %v1474_v11 = vmul.f32 %v5797_v17, %v6823_v40  ;;  %v1994_v32 = vsel %vm1081_vm2, %v1924_v51, 0 }
 0x3f9   : > { %v1503_v22 = vpack.c.bf16 %v6938_v35, %v6935_v27  ;;  %v1502_v52 = vpack.c.bf16 %v1482_v62, %v1480_v14  ;;  %v1394_v9 = vmul.f32 1.442695, %v1331_v45  ;;  %5800 = vpow2.f32 %v1392_v19 }
 0x3fa   : > { %v1328_v40 = vsub.f32 %v6715_v37, %v6875_v31  ;;  %v1329_v17 = vsub.f32 %v6717_v38, %v6875_v31  ;;  %v5594_v37 = vld [vmem:[#allocation3 + $0x70] sm:$0xff] }
 0x3fb   : > { %5802 = vpow2.f32 %v1394_v9  ;;  %2864 = vrot.lane.b32.xlu1 %v5594_v37, %s6155_s29 }
 0x3fc   : > { %v1388_v45 = vmul.f32 1.442695, %v1328_v40  ;;  %v1390_v28 = vmul.f32 1.442695, %v1329_v17  ;;  %v5592_v17 = vld [vmem:[#allocation3 + $0x60] sm:$0xff] }
 0x3fe   : > { %v5799_v25 = vpop.eup %5798  ;;  %v1902_v30 = vpop.permute.xlu2 %1901  ;;  %5804 = vpow2.f32 %v1388_v45 }
 0x3ff   : > { %v6951_v6 = vmul.f32 %v5799_v25, %v6841_v46  ;;  %v1908_v20 = vpop.permute.xlu1 %1907  ;;  %v6961_v49 = vpop.eup %5800  ;;  %v1472_v29 = vmul.f32 %v5799_v25, %v6839_v12  ;;  %v1991_v25 = vsel %vm1081_vm2, %v1922_v24, 0  ;;  %5806 = vpow2.f32 %v1390_v28 }
 0x400   : > { %v1970_v42 = vsel %vm1081_vm2, %v1908_v20, 0  ;;  %5808 = vrcp.f32 %v6913_v5 }
 0x401   : > { %v1499_v41 = vpack.c.bf16 %v6954_v33, %v6951_v6  ;;  %2000 = vmatpush.bf16.xpose.msrb.mxu2 %v1970_v42  ;;  %v6963_v36 = vpop.eup %5802  ;;  %v1498_v18 = vpack.c.bf16 %v1474_v11, %v1472_v29  ;;  %v5590_v29 = vld [vmem:[#allocation3 + $0x50] sm:$0xff] }
 0x402   : > { %1622 = vmatmul.bf16.gmra.mxu2 %v1496_v2  ;;  %v1441_v55 = vadd.f32 %v6963_v36, %v6961_v49  ;;  %v1961_v2 = vsel %vm1081_vm2, %v1902_v30, 0 }
 0x403   : > { %1637 = vmatmul.bf16.gmra.mxu3 %v1502_v52 }
 0x404   : > { %2846 = vrot.lane.b32.xlu2 %v5585_v44, %s6155_s29  ;;  %v6982_v31 = vpop.eup %5804 }
 0x405   : > { %v6984_v44 = vpop.eup %5806 }
 0x406   : > { %v1916_v13 = vpop.permute.xlu2 %1915  ;;  %v1438_v42 = vadd.f32 %v6984_v44, %v6982_v31 }
 0x407   : > { %v1904_v39 = vpop.permute.xlu1 %1903 }
 0x408   : > { %v1964_v12 = vsel %vm1081_vm2, %v1904_v39, 0 }
 0x409   : > { %v1926_v61 = vpop.permute.xlu0 %1925 }
 0x40a   : > { %v1997_v46 = vsel %vm1081_vm2, %v1926_v61, 0  ;;  %v1982_v61 = vsel %vm1081_vm2, %v1916_v13, 0  ;;  %v5589_v13 = vld [vmem:[#allocation3 + $0x48] sm:$0xff] }
 0x40b   : > { %2048 = vmatpush.bf16.xpose.msra.mxu3 %v1997_v46  ;;  %v5593_v46 = vld [vmem:[#allocation3 + $0x68] sm:$0xff] }
 0x40c   : > { %2862 = vrot.lane.b32.xlu1 %v5593_v46, %s6155_s29  ;;  %v7054_v46 = vld [vmem:[%s6575_s28 + $0x8] sm:$0xff] }
 0x40e   : > { %v1896_v62 = vpop.permute.xlu2 %1895 }
 0x40f   : > { %v1918_v63 = vpop.permute.xlu1 %1917 }
 0x410   : > { %v1985_v19 = vsel %vm1081_vm2, %v1918_v63, 0 }
 0x411   : > { %v1906_v0 = vpop.permute.xlu0 %1905  ;;  %1442 = vadd.xlane.f32.xlu0 %v1441_v55 }
 0x412   : > { %1627 = vmatmul.bf16.gmra.mxu2 %v1498_v18  ;;  %v1967_v47 = vsel %vm1081_vm2, %v1906_v0, 0  ;;  %v1952_v0 = vsel %vm1081_vm2, %v1896_v62, 0  ;;  %v5627_v62 = vld [vmem:[#allocation3 + $0x78] sm:$0xff] }
 0x413   : > { %2001 = vmatpush.bf16.xpose.msrb.mxu2 %v1967_v47  ;;  %2049 = vmatpush.bf16.xpose.msra.mxu3 %v1994_v32 }
 0x414   : > { %1811 = vrot.lane.b32.xlu1 %v6620_v59, %s6154_s18  ;;  %v5581_v59 = vld [vmem:[#allocation3 + $0x8] sm:$0xff] }
 0x416   : > { %v6990_v9 = vpop.permute.xlu2 %1801 }
 0x417   : > { %v1898_v14 = vpop.permute.xlu1 %1897 }
 0x418   : > { %v1955_v39 = vsel %vm1081_vm2, %v1898_v14, 0  ;;  %v5582_v14 = vld [vmem:[#allocation3 + $0x10] sm:$0xff] }
 0x419   : > { %v1920_v8 = vpop.permute.xlu0 %1919 }
 0x41a   : > { %v1988_v51 = vsel %vm1081_vm2, %v1920_v8, 0  ;;  %v5619_v8 = vld [vmem:[#allocation3 + $0x38] sm:$0xff] }
 0x41b   : > { %2002 = vmatpush.bf16.xpose.msrb.mxu2 %v1964_v12  ;;  %2050 = vmatpush.bf16.xpose.msra.mxu3 %v1991_v25 }
 0x41c   : > { %2840 = vrot.lane.b32.xlu1 %v5582_v14, %s6155_s29  ;;  %v5570_v14 = vld [vmem:[#allocation4 + $0x30] sm:$0xff] }
 0x41e   : > { %v6998_v11 = vpop.permute.xlu2 %1807 }
 0x41f   : > { %v6979_v52 = vpop.permute.xlu1 %1911 }
 0x421   : > { %v1900_v38 = vpop.permute.xlu0 %1899 }
 0x422   : > { %v1958_v20 = vsel %vm1081_vm2, %v1900_v38, 0 }
 0x423   : > { %2003 = vmatpush.bf16.xpose.msrb.mxu2 %v1961_v2  ;;  %2051 = vmatpush.bf16.xpose.msra.mxu3 %v1988_v51 }
 0x424   : > { %2838 = vrot.lane.b32.xlu1 %v5581_v59, %s6155_s29  ;;  %v5578_v59 = vld [vmem:[#allocation4 + $0x70] sm:$0xff] }
 0x425   : > { %2856 = vrot.lane.b32.xlu0 %v5590_v29, %s6155_s29 }
 0x426   : > { %v2849_v32 = vpop.permute.xlu2 %2848 }
 0x427   : > { %v6992_v24 = vpop.permute.xlu1 %1803  ;;  %v2911_v12 = vsel %vm1081_vm2, %v2849_v32, 0  ;;  %v7073_v32 = vld [vmem:[%s6575_s28 + $0x28] sm:$0xff] }
 0x429   : > { %v1914_v30 = vpop.permute.xlu0 %1913 }
 0x42a   : > { %v1979_v18 = vsel %vm1081_vm2, %v1914_v30, 0  ;;  %v7061_v30 = vld [vmem:[%s6575_s28 + $0x10] sm:$0xff] }
 0x42b   : > { %2004 = vmatpush.bf16.xpose.msrb.mxu2 %v1958_v20  ;;  %2052 = vmatpush.bf16.xpose.msra.mxu3 %v1985_v19 }
 0x42d   : > { %1439 = vadd.xlane.f32.xlu2 %v1438_v42  ;;  %2854 = vrot.lane.b32.xlu0 %v5589_v13, %s6155_s29  ;;  %v5624_v13 = vld [vmem:[#allocation3 + $0x60] sm:$0xff] }
 0x42f   : > { %v2851_v55 = vpop.permute.xlu1 %2850 }
 0x430   : > { %v2914_v63 = vsel %vm1081_vm2, %v2851_v55, 0  ;;  %v5579_v55 = vld [vmem:[#allocation4 + $0x78] sm:$0xff] }
 0x431   : > { %v7005_v47 = vpop.permute.xlu0 %1799 }
 0x433   : > { %2005 = vmatpush.bf16.xpose.msrb.mxu2 %v1955_v39  ;;  %2053 = vmatpush.bf16.xpose.msra.mxu3 %v1982_v61  ;;  %v5588_v39 = vld [vmem:[#allocation3 + $0x40] sm:$0xff]  ;;  %v5571_v61 = vld [vmem:[#allocation4 + $0x38] sm:$0xff] }
 0x434   : > { %2852 = vrot.lane.b32.xlu1 %v5588_v39, %s6155_s29  ;;  %v7108_v39 = vld [vmem:[%s6575_s28 + $0x30] sm:$0xff] }
 0x435   : > { %2740 = vrot.lane.b32.xlu0 %v6578_v53, %s6155_s29  ;;  %v5591_v53 = vld [vmem:[#allocation3 + $0x58] sm:$0xff] }
 0x439   : > { %v7014_v40 = vpop.permute.xlu0 %1805 }
 0x43b   : > { %2006 = vmatpush.bf16.xpose.msrb.mxu2 %v1952_v0  ;;  %2054 = vmatpush.bf16.xpose.msra.mxu3 %v1979_v18  ;;  %v5618_v18 = vld [vmem:[#allocation3 + $0x30] sm:$0xff]  ;;  %v1976_v0 = vsel %vm1081_vm2, %v6979_v52, 0 }
 0x43c   : > { %2744 = vrot.lane.b32.xlu1 %v7061_v30, %s6155_s29 }
 0x43d   : > { %2746 = vrot.lane.b32.xlu0 %v6599_v56, %s6155_s29  ;;  %v5809_v56 = vpop.eup %5808 }
 0x43e   : > { %v1484_v2 = vmul.f32 %v5809_v56, %v6801_v4  ;;  %v7038_v37 = vmul.f32 %v5809_v56, %v6803_v50 }
 0x441   : > { %v7021_v25 = vpop.permute.xlu0 %2866 }
 0x442   : > { %5087 = vmatmul.msk.bf16.vlgmr.msrb.gmra.mxu2 %vm1081_vm2, %v7005_v47 }
 0x443   : > { %2940 = vmatpush.bf16.xpose.msra.mxu2 %v2914_v63  ;;  %v5616_v63 = vld [vmem:[#allocation3 + $0x20] sm:$0xff]  ;;  %2055 = vmatpush.bf16.xpose.msra.mxu3 %v1976_v0 }
 0x444   : > { %3789 = vrot.lane.b32.xlu1 %v5618_v18, %s6156_s30  ;;  %v5566_v18 = vld [vmem:[#allocation4 + $0x10] sm:$0xff] }
 0x445   : > { %2860 = vrot.lane.b32.xlu2 %v5592_v17, %s6155_s29  ;;  %2748 = vrot.lane.b32.xlu0 %v6606_v57, %s6155_s29 }
 0x449   : > { %v7028_v28 = vpop.permute.xlu0 %1809 }
 0x44b   : > { %2941 = vmatpush.bf16.xpose.msra.mxu2 %v2911_v12 }
 0x44c   : > { %2750 = vrot.lane.b32.xlu1 %v7073_v32, %s6155_s29 }
 0x44d   : > { %2858 = vrot.lane.b32.xlu2 %v5591_v53, %s6155_s29  ;;  %3791 = vrot.lane.b32.xlu0 %v5619_v8, %s6156_s30  ;;  %v5615_v53 = vld [vmem:[#allocation3 + $0x18] sm:$0xff] }
 0x451   : > { %v2845_v4 = vpop.permute.xlu0 %2844 }
 0x452   : > { %5088 = vmatmul.msk.bf16.gmra.mxu2 %vm1081_vm2, %v6990_v9  ;;  %v2905_v50 = vsel %vm1081_vm2, %v2845_v4, 0 }
 0x454   : > { %2445 = vrot.lane.b32.xlu1 %v5570_v14, %s6154_s18  ;;  %v2938_v14 = vsel %vm1081_vm2, %v7021_v25, 0 }
 0x455   : > { %1813 = vrot.lane.b32.xlu2 %v6627_v60, %s6154_s18  ;;  %3807 = vrot.lane.b32.xlu0 %v5627_v62, %s6156_s30  ;;  %v5617_v60 = vld [vmem:[#allocation3 + $0x28] sm:$0xff]  ;;  %v5576_v62 = vld [vmem:[#allocation4 + $0x60] sm:$0xff] }
 0x45c   : > { %3783 = vrot.lane.b32.xlu1 %v5615_v53, %s6156_s30  ;;  %v5626_v53 = vld [vmem:[#allocation3 + $0x70] sm:$0xff] }
 0x45d   : > { %3787 = vrot.lane.b32.xlu0 %v5617_v60, %s6156_s30 }
 0x45f   : > { %v1437_v45 = vpop.xlane.xlu2 %1436 }
 0x460   : > { %5810 = vrcp.f32 %v1437_v45  ;;  %v5577_v45 = vld [vmem:[#allocation4 + $0x68] sm:$0xff] }
 0x462   : > { %5089 = vmatmul.msk.bf16.gmra.mxu2 %vm1081_vm2, %v6992_v24 }
 0x464   : > { %2457 = vrot.lane.b32.xlu1 %v5576_v62, %s6154_s18  ;;  %v5625_v62 = vld [vmem:[#allocation3 + $0x68] sm:$0xff] }
 0x465   : > { %2447 = vrot.lane.b32.xlu0 %v5571_v61, %s6154_s18  ;;  %v7079_v12 = vpop.f32.mrf.mxu2 }
 0x466   : > { %v5811_v51 = vpop.eup %5810 }
 0x467   : > { %v2847_v57 = vpop.permute.xlu2 %2846  ;;  %v1486_v5 = vmul.f32 %v5811_v51, %v6895_v10  ;;  %v7041_v38 = vmul.f32 %v5811_v51, %v6903_v21  ;;  %v5580_v10 = vld [vmem:[#allocation3] sm:$0xff]  ;;  %v2843_v21 = vpop.permute.xlu0 %2842 }
 0x468   : > { %v2908_v20 = vsel %vm1081_vm2, %v2847_v57, 0  ;;  %2836 = vrot.lane.b32.xlu2 %v5580_v10, %s6155_s29  ;;  %v2902_v29 = vsel %vm1081_vm2, %v2843_v21, 0 }
 0x469   : > { %2942 = vmatpush.bf16.xpose.msra.mxu2 %v2908_v20  ;;  %v1504_v19 = vpack.c.bf16 %v1486_v5, %v1484_v2  ;;  %v1505_v42 = vpack.c.bf16 %v7041_v38, %v7038_v37 }
 0x46b   : > { %1642 = vmatmul.bf16.gmra.mxu3 %v1504_v19 }
 0x46d   : > { %2463 = vrot.lane.b32.xlu0 %v5579_v55, %s6154_s18  ;;  %v7084_v17 = vpop.f32.mrf.mxu2  ;;  %v7086_v8 = vpop.permute.xlu1 %2864  ;;  %v5575_v55 = vld [vmem:[#allocation4 + $0x58] sm:$0xff] }
 0x470   : > { %2742 = vrot.lane.b32.xlu2 %v7054_v46, %s6155_s29 }
 0x471   : > { %2943 = vmatpush.bf16.xpose.msra.mxu2 %v2905_v50 }
 0x472   : > { %5090 = vmatmul.msk.bf16.gmra.mxu2 %vm1081_vm2, %v7014_v40 }
 0x475   : > { %3785 = vrot.lane.b32.xlu0 %v5616_v63, %s6156_s30  ;;  %v7092_v5 = vpop.f32.mrf.mxu2 }
 0x478   : > { %3805 = vrot.lane.b32.xlu2 %v5626_v53, %s6156_s30 }
 0x479   : > { %2944 = vmatpush.bf16.xpose.msra.mxu2 %v2902_v29 }
 0x47d   : > { %3801 = vrot.lane.b32.xlu0 %v5624_v13, %s6156_s30 }
 0x47e   : > { %v7090_v57 = vpop.permute.xlu1 %2862 }
 0x480   : > { %3803 = vrot.lane.b32.xlu2 %v5625_v62, %s6156_s30  ;;  %v6108_v62 = vld [vmem:[%s6575_s28] sm:$0xff] }
 0x482   : > { %5091 = vmatmul.msk.bf16.gmra.mxu2 %vm1081_vm2, %v6998_v11 }
 0x484   : > { %v1443_v52 = vpop.xlane.xlu0 %1442 }
 0x485   : > { %2461 = vrot.lane.b32.xlu0 %v5578_v59, %s6154_s18  ;;  %5812 = vrcp.f32 %v1443_v52 }
 0x48b   : > { %v5813_v51 = vpop.eup %5812 }
 0x48c   : > { %v1490_v19 = vmul.f32 %v5813_v51, %v6961_v49  ;;  %v7101_v10 = vmul.f32 %v5813_v51, %v6963_v36  ;;  %v7112_v49 = vpop.permute.xlu1 %1811  ;;  %v7117_v36 = vpop.f32.mrf.mxu2 }
 0x48d   : > { %2459 = vrot.lane.b32.xlu0 %v5577_v45, %s6154_s18  ;;  %v5614_v45 = vld [vmem:[#allocation3 + $0x10] sm:$0xff] }
 0x492   : > { %5092 = vmatmul.msk.bf16.gmra.mxu2 %vm1081_vm2, %v7028_v28 }
 0x494   : > { %v7127_v0 = vpop.f32.mrf.mxu2  ;;  %v2841_v13 = vpop.permute.xlu1 %2840 }
 0x495   : > { %2752 = vrot.lane.b32.xlu0 %v7108_v39, %s6155_s29  ;;  %v2899_v52 = vsel %vm1081_vm2, %v2841_v13, 0  ;;  %v5613_v13 = vld [vmem:[#allocation3 + $0x8] sm:$0xff] }
 0x496   : > { %2945 = vmatpush.bf16.xpose.msra.mxu2 %v2899_v52  ;;  %v5572_v52 = vld [vmem:[#allocation4 + $0x40] sm:$0xff] }
 0x497   : > { %v7103_v50 = vpop.permute.xlu0 %2856 }
 0x49c   : > { %v2839_v54 = vpop.permute.xlu1 %2838 }
 0x49d   : > { %v2896_v25 = vsel %vm1081_vm2, %v2839_v54, 0 }
 0x49e   : > { %2946 = vmatpush.bf16.xpose.msra.mxu2 %v2896_v25 }
 0x49f   : > { %v7122_v29 = vpop.permute.xlu0 %2854 }
 0x4a0   : > { %v1440_v56 = vpop.xlane.xlu2 %1439 }
 0x4a1   : > { %5814 = vrcp.f32 %v1440_v56  ;;  %v5565_v56 = vld [vmem:[#allocation4 + $0x8] sm:$0xff] }
 0x4a2   : > { %5093 = vmatmul.msk.bf16.gmra.mxu2 %vm1081_vm2, %v7112_v49 }
 0x4a7   : > { %v5815_v2 = vpop.eup %5814  ;;  %v7135_v59 = vpop.permute.xlu0 %2740 }
 0x4a8   : > { %v1488_v20 = vmul.f32 %v5815_v2, %v6982_v31  ;;  %v7098_v4 = vmul.f32 %v5815_v2, %v6984_v44  ;;  %v5567_v31 = vld [vmem:[#allocation4 + $0x18] sm:$0xff]  ;;  %v7119_v61 = vpop.permute.xlu2 %2860  ;;  %v5622_v2 = vld [vmem:[#allocation3 + $0x50] sm:$0xff] }
 0x4a9   : > { %2439 = vrot.lane.b32.xlu1 %v5567_v31, %s6154_s18  ;;  %v5623_v44 = vld [vmem:[#allocation3 + $0x58] sm:$0xff]  ;;  %v2929_v27 = vsel %vm1081_vm2, %v7119_v61, 0 }
 0x4aa   : > { %v1506_v60 = vpack.c.bf16 %v1490_v19, %v1488_v20  ;;  %v1507_v21 = vpack.c.bf16 %v7101_v10, %v7098_v4  ;;  %3799 = vrot.lane.b32.xlu0 %v5623_v44, %s6156_s30  ;;  %v5573_v20 = vld [vmem:[#allocation4 + $0x48] sm:$0xff]  ;;  %v2920_v4 = vsel %vm1081_vm2, %v7122_v29, 0 }
 0x4ab   : > { %v5569_v44 = vld [vmem:[#allocation4 + $0x28] sm:$0xff] }
 0x4ac   : > { %1647 = vmatmul.bf16.gmra.mxu3 %v1506_v60  ;;  %2443 = vrot.lane.b32.xlu2 %v5569_v44, %s6154_s18 }
 0x4af   : > { %v7145_v34 = vpop.permute.xlu0 %2746 }
 0x4b0   : > { %v7125_v63 = vpop.permute.xlu2 %2858 }
 0x4b1   : > { %2455 = vrot.lane.b32.xlu1 %v5575_v55, %s6154_s18  ;;  %v5621_v55 = vld [vmem:[#allocation3 + $0x48] sm:$0xff]  ;;  %v2926_v61 = vsel %vm1081_vm2, %v7125_v63, 0  ;;  %v2923_v63 = vsel %vm1081_vm2, %v7103_v50, 0  ;;  %v5564_v50 = vld [vmem:[#allocation4] sm:$0xff] }
 0x4b2   : > { %2437 = vrot.lane.b32.xlu0 %v5566_v18, %s6154_s18 }
 0x4b4   : > { %2441 = vrot.lane.b32.xlu2 %v5568_v7, %s6154_s18 }
 0x4b7   : > { %v7156_v60 = vpop.permute.xlu0 %2748 }
 0x4b8   : > { %v7140_v51 = vpop.permute.xlu2 %1813 }
 0x4b9   : > { %3781 = vrot.lane.b32.xlu1 %v5614_v45, %s6156_s30  ;;  %5094 = vmatmul.msk.bf16.gmra.mxu2 %vm1081_vm2, %v7140_v51 }
 0x4ba   : > { %2435 = vrot.lane.b32.xlu0 %v5565_v56, %s6154_s18  ;;  %v5574_v56 = vld [vmem:[#allocation4 + $0x50] sm:$0xff] }
 0x4bc   : > { %1661 = vmatmul.bf16.vlgmr.msrb.gmra.mxu3 %v1493_v1  ;;  %v7147_v1 = vpop.f32.mrf.mxu2  ;;  %2453 = vrot.lane.b32.xlu2 %v5574_v56, %s6154_s18 }
 0x4bd   : > { %2989 = vmatpush.bf16.xpose.msrb.mxu3 %v2938_v14 }
 0x4bf   : > { %v3792_v14 = vpop.permute.xlu0 %3791 }
 0x4c0   : > { %v3855_v23 = vsel %vm1081_vm2, %v3792_v14, 0  ;;  %v7211_v14 = vpop.f32.mrf.mxu3 }
 0x4c1   : > { %3797 = vrot.lane.b32.xlu1 %v5622_v2, %s6156_s30 }
 0x4c2   : > { %v2837_v19 = vpop.permute.xlu2 %2836  ;;  %2451 = vrot.lane.b32.xlu0 %v5573_v20, %s6154_s18 }
 0x4c3   : > { %v2893_v31 = vsel %vm1081_vm2, %v2837_v19, 0  ;;  %v6110_v19 = vld [vmem:[%s6575_s28 + $0x18] sm:$0xff] }
 0x4c4   : > { %2947 = vmatpush.bf16.xpose.msra.mxu2 %v2893_v31  ;;  %v7159_v18 = vpop.f32.mrf.mxu2  ;;  %2754 = vrot.lane.b32.xlu2 %v7190_v3, %s6155_s29 }
 0x4c7   : > { %v7175_v45 = vpop.permute.xlu0 %3807 }
 0x4c9   : > { %3795 = vrot.lane.b32.xlu1 %v5621_v55, %s6156_s30 }
 0x4ca   : > { %3779 = vrot.lane.b32.xlu0 %v5613_v13, %s6156_s30  ;;  %v7180_v25 = vpop.permute.xlu2 %2742 }
 0x4cb   : > { %5231 = vmatmul.msk.bf16.vlgmr.msra.gmra.mxu2 %vm1081_vm2, %v7135_v59 }
 0x4cc   : > { %1666 = vmatmul.bf16.gmra.mxu3 %v1495_v15  ;;  %v5612_v15 = vld [vmem:[#allocation3] sm:$0xff]  ;;  %3881 = vmatpush.bf16.xpose.msrb.mxu2 %v3855_v23  ;;  %v7169_v53 = vpop.f32.mrf.mxu2  ;;  %v7224_v23 = vpop.f32.mrf.mxu3 }
 0x4cd   : > { %2433 = vrot.lane.b32.xlu2 %v5564_v50, %s6154_s18  ;;  %v5610_v50 = vld [vmem:[#allocation4 + $0x70] sm:$0xff] }
 0x4cf   : > { %v7184_v2 = vpop.permute.xlu0 %3787 }
 0x4d0   : > { %v3849_v37 = vsel %vm1081_vm2, %v7184_v2, 0 }
 0x4d1   : > { %3777 = vrot.lane.b32.xlu1 %v5612_v15, %s6156_s30  ;;  %v5603_v15 = vld [vmem:[#allocation4 + $0x38] sm:$0xff] }
 0x4d2   : > { %2449 = vrot.lane.b32.xlu0 %v5572_v52, %s6154_s18 }
 0x4d4   : > { %v7178_v54 = vpop.f32.mrf.mxu2 }
 0x4d7   : > { %v2448_v31 = vpop.permute.xlu0 %2447 }
 0x4d8   : > { %2481 = vmatpush.bf16.msrb.mxu0 %v2448_v31 }
 0x4d9   : > { %3793 = vrot.lane.b32.xlu1 %v5620_v26, %s6156_s30 }
 0x4da   : > { %3681 = vrot.lane.b32.xlu0 %v6108_v62, %s6156_s30 }
 0x4db   : > { %5232 = vmatmul.msk.bf16.gmra.mxu2 %vm1081_vm2, %v7180_v25 }
 0x4dc   : > { %1671 = vmatmul.bf16.gmra.mxu3 %v1497_v16  ;;  %v7194_v16 = vpop.permute.xlu1 %2852  ;;  %v7196_v20 = vpop.f32.mrf.mxu2 }
 0x4df   : > { %v2464_v13 = vpop.permute.xlu0 %2463 }
 0x4e0   : > { %2530 = vmatpush.bf16.msrb.mxu1 %v2464_v13 }
 0x4e1   : > { %3683 = vrot.lane.b32.xlu1 %v7054_v46, %s6156_s30 }
 0x4e2   : > { %3687 = vrot.lane.b32.xlu0 %v6110_v19, %s6156_s30  ;;  %v5602_v19 = vld [vmem:[#allocation4 + $0x30] sm:$0xff] }
 0x4e4   : > { %v7205_v44 = vpop.permute.xlu1 %2744  ;;  %v7207_v55 = vpop.f32.mrf.mxu2 }
 0x4e7   : > { %v3786_v33 = vpop.permute.xlu0 %3785 }
 0x4e9   : > { %3685 = vrot.lane.b32.xlu1 %v7061_v30, %s6156_s30 }
 0x4ea   : > { %3388 = vrot.lane.b32.xlu0 %v5603_v15, %s6155_s29 }
 0x4eb   : > { %5233 = vmatmul.msk.bf16.gmra.mxu2 %vm1081_vm2, %v7205_v44 }
 0x4ec   : > { %1676 = vmatmul.bf16.gmra.mxu3 %v1499_v41  ;;  %v3790_v6 = vpop.permute.xlu1 %3789  ;;  %v2935_v41 = vsel %vm1081_vm2, %v7086_v8, 0  ;;  %v7220_v46 = vpop.f32.mrf.mxu2  ;;  %v2932_v8 = vsel %vm1081_vm2, %v7090_v57, 0 }
 0x4ed   : > { %2990 = vmatpush.bf16.xpose.msrb.mxu3 %v2935_v41  ;;  %v3852_v31 = vsel %vm1081_vm2, %v3790_v6, 0 }
 0x4ee   : > { %3882 = vmatpush.bf16.xpose.msrb.mxu2 %v3852_v31 }
 0x4ef   : > { %v7228_v30 = vpop.permute.xlu0 %3801 }
 0x4f1   : > { %3691 = vrot.lane.b32.xlu1 %v7073_v32, %s6156_s30 }
 0x4f2   : > { %3386 = vrot.lane.b32.xlu0 %v5602_v19, %s6155_s29 }
 0x4f4   : > { %v7226_v7 = vpop.permute.xlu1 %2750  ;;  %v7232_v48 = vpop.f32.mrf.mxu2 }
 0x4f5   : > { %2991 = vmatpush.bf16.xpose.msrb.mxu3 %v2932_v8  ;;  %v5601_v8 = vld [vmem:[#allocation4 + $0x28] sm:$0xff] }
 0x4f6   : > { %3883 = vmatpush.bf16.xpose.msrb.mxu2 %v3849_v37 }
 0x4f7   : > { %v2462_v32 = vpop.permute.xlu0 %2461 }
 0x4f8   : > { %2531 = vmatpush.bf16.msrb.mxu1 %v2462_v32 }
 0x4fa   : > { %3384 = vrot.lane.b32.xlu0 %v5601_v8, %s6155_s29 }
 0x4fb   : > { %5234 = vmatmul.msk.bf16.gmra.mxu2 %vm1081_vm2, %v7145_v34 }
 0x4fc   : > { %1681 = vmatmul.bf16.gmra.mxu3 %v1501_v43  ;;  %v2446_v58 = vpop.permute.xlu1 %2445  ;;  %v7234_v43 = vpop.f32.mrf.mxu3 }
 0x4fd   : > { %2482 = vmatpush.bf16.msrb.mxu0 %v2446_v58  ;;  %v7242_v56 = vpop.f32.mrf.mxu2  ;;  %2992 = vmatpush.bf16.xpose.msrb.mxu3 %v2929_v27  ;;  %v3846_v27 = vsel %vm1081_vm2, %v3786_v33, 0  ;;  %v5611_v33 = vld [vmem:[#allocation4 + $0x78] sm:$0xff] }
 0x4fe   : > { %3884 = vmatpush.bf16.xpose.msrb.mxu2 %v3846_v27  ;;  %3404 = vrot.lane.b32.xlu1 %v5611_v33, %s6155_s29 }
 0x4ff   : > { %v2460_v26 = vpop.permute.xlu0 %2459 }
 0x500   : > { %2532 = vmatpush.bf16.msrb.mxu1 %v2460_v26  ;;  %v5609_v26 = vld [vmem:[#allocation4 + $0x68] sm:$0xff] }
 0x502   : > { %3400 = vrot.lane.b32.xlu0 %v5609_v26, %s6155_s29 }
 0x504   : > { %v3784_v52 = vpop.permute.xlu1 %3783  ;;  %v7244_v62 = vpop.f32.mrf.mxu3 }
 0x505   : > { %v7258_v13 = vpop.f32.mrf.mxu2  ;;  %2993 = vmatpush.bf16.xpose.msrb.mxu3 %v2926_v61  ;;  %v3843_v61 = vsel %vm1081_vm2, %v3784_v52, 0  ;;  %v6111_v52 = vld [vmem:[%s6575_s28 + $0x20] sm:$0xff] }
 0x506   : > { %3885 = vmatpush.bf16.xpose.msrb.mxu2 %v3843_v61  ;;  %3689 = vrot.lane.b32.xlu2 %v6111_v52, %s6156_s30 }
 0x507   : > { %v7260_v41 = vpop.permute.xlu0 %2752 }
 0x50a   : > { %3693 = vrot.lane.b32.xlu0 %v7108_v39, %s6156_s30 }
 0x50b   : > { %5235 = vmatmul.msk.bf16.gmra.mxu2 %vm1081_vm2, %v7156_v60 }
 0x50c   : > { %1686 = vmatmul.bf16.gmra.mxu3 %v1503_v22  ;;  %v2458_v35 = vpop.permute.xlu1 %2457  ;;  %v7250_v22 = vpop.permute.xlu2 %3805 }
 0x50d   : > { %2533 = vmatpush.bf16.msrb.mxu1 %v2458_v35  ;;  %v7252_v57 = vpop.f32.mrf.mxu3  ;;  %v7276_v6 = vpop.f32.mrf.mxu2  ;;  %2994 = vmatpush.bf16.xpose.msrb.mxu3 %v2923_v63 }
 0x50e   : > { %3402 = vrot.lane.b32.xlu2 %v5610_v50, %s6155_s29  ;;  %v5598_v50 = vld [vmem:[#allocation4 + $0x10] sm:$0xff] }
 0x514   : > { %v7265_v58 = vpop.permute.xlu2 %3803 }
 0x515   : > { %v7287_v31 = vpop.f32.mrf.mxu2  ;;  %2995 = vmatpush.bf16.xpose.msrb.mxu3 %v2920_v4 }
 0x51b   : > { %v2440_v32 = vpop.permute.xlu1 %2439  ;;  %5236 = vmatmul.msk.bf16.gmra.mxu2 %vm1081_vm2, %v7226_v7 }
 0x51c   : > { %1691 = vmatmul.bf16.gmra.mxu3 %v1505_v42  ;;  %v7269_v38 = vpop.permute.xlu0 %3799  ;;  %v7274_v42 = vpop.f32.mrf.mxu3 }
 0x51d   : > { %v2444_v2 = vpop.permute.xlu2 %2443  ;;  %v7300_v29 = vpop.f32.mrf.mxu2 }
 0x51e   : > { %2483 = vmatpush.bf16.msrb.mxu0 %v2444_v2 }
 0x523   : > { %v2456_v15 = vpop.permute.xlu1 %2455 }
 0x524   : > { %v2438_v35 = vpop.permute.xlu0 %2437  ;;  %2534 = vmatpush.bf16.msrb.mxu1 %v2456_v15  ;;  %v5608_v15 = vld [vmem:[#allocation4 + $0x60] sm:$0xff] }
 0x525   : > { %v2442_v10 = vpop.permute.xlu2 %2441  ;;  %3398 = vrot.lane.b32.xlu0 %v5608_v15, %s6155_s29 }
 0x526   : > { %2484 = vmatpush.bf16.msrb.mxu0 %v2442_v10 }
 0x52a   : > { %2485 = vmatpush.bf16.msrb.mxu0 %v2440_v32 }
 0x52b   : > { %5237 = vmatmul.msk.bf16.gmra.mxu2 %vm1081_vm2, %v7260_v41 }
 0x52c   : > { %1696 = vmatmul.bf16.gmra.mxu3 %v1507_v21  ;;  %v3782_v21 = vpop.permute.xlu1 %3781  ;;  %v2436_v8 = vpop.permute.xlu0 %2435 }
 0x52d   : > { %v2454_v63 = vpop.permute.xlu2 %2453  ;;  %v3840_v26 = vsel %vm1081_vm2, %v3782_v21, 0  ;;  %v5599_v21 = vld [vmem:[#allocation4 + $0x18] sm:$0xff] }
 0x52e   : > { %2535 = vmatpush.bf16.msrb.mxu1 %v2454_v63  ;;  %3886 = vmatpush.bf16.xpose.msrb.mxu2 %v3840_v26  ;;  %v5600_v63 = vld [vmem:[#allocation4 + $0x20] sm:$0xff] }
 0x52f   : > { %v7285_v19 = vpop.f32.mrf.mxu3  ;;  %2486 = vmatpush.bf16.msrb.mxu0 %v2438_v35  ;;  %v7319_v35 = vpop.f32.mrf.mxu2  ;;  %3380 = vrot.lane.b32.xlu0 %v5599_v21, %s6155_s29 }
 0x530   : > { %3382 = vrot.lane.b32.xlu2 %v5600_v63, %s6155_s29  ;;  %v5597_v63 = vld [vmem:[#allocation4 + $0x8] sm:$0xff] }
 0x533   : > { %2487 = vmatpush.bf16.msrb.mxu0 %v2436_v8 }
 0x534   : > { %v7306_v2 = vpop.permute.xlu1 %3797  ;;  %v2452_v39 = vpop.permute.xlu0 %2451 }
 0x535   : > { %2536 = vmatpush.bf16.msrb.mxu1 %v2452_v39  ;;  %v7313_v4 = vpop.permute.xlu2 %2754 }
 0x537   : > { %v7298_v37 = vpop.f32.mrf.mxu3 }
 0x538   : > { %3378 = vrot.lane.b32.xlu2 %v5598_v50, %s6155_s29 }
 0x53b   : > { %5238 = vmatmul.msk.bf16.gmra.mxu2 %vm1081_vm2, %v7313_v4 }
 0x53c   : > { %5095 = vmatmul.msk.bf16.vlgmr.msra.gmra.mxu3 %vm1081_vm2, %v7005_v47  ;;  %v7315_v10 = vpop.permute.xlu1 %3795  ;;  %v3780_v33 = vpop.permute.xlu0 %3779 }
 0x53f   : > { %v1662_v27 = vpop.f32.mrf.mxu3 }
 0x540   : > { %v1663_v32 = vadd.f32 %v1662_v27, %v7079_v12  ;;  %v3837_v12 = vsel %vm1081_vm2, %v3780_v33, 0  ;;  %3376 = vrot.lane.b32.xlu2 %v5597_v63, %s6155_s29 }
 0x541   : > { %3887 = vmatpush.bf16.xpose.msrb.mxu2 %v3837_v12 }
 0x542   : > { %v1702_v47 = vpack.c.bf16 %v1663_v32, %v1663_v32  ;;  %v7329_v32 = vpop.f32.mrf.mxu2 }
 0x544   : > { %1719 = vst.msk [vmem:[#allocation5] sm:$0xf] %vm1718_vm3, %v1702_v47  ;;  %v3778_v15 = vpop.permute.xlu1 %3777  ;;  %v2450_v26 = vpop.permute.xlu0 %2449 }
 0x545   : > { %v3834_v39 = vsel %vm1081_vm2, %v3778_v15, 0  ;;  %2537 = vmatpush.bf16.msrb.mxu1 %v2450_v26  ;;  %v5606_v15 = vld [vmem:[#allocation4 + $0x50] sm:$0xff]  ;;  %v5605_v26 = vld [vmem:[#allocation4 + $0x48] sm:$0xff] }
 0x546   : > { %3394 = vrot.lane.b32.xlu0 %v5606_v15, %s6155_s29  ;;  %v5635_v15 = vld [vmem:[#allocation4 + $0x38] sm:$0xff] }
 0x547   : > { %v1664_v61 = vpop.f32.mrf.mxu3 }
 0x548   : > { %v1665_v8 = vadd.f32 %v1664_v61, %v7084_v17  ;;  %3695 = vrot.lane.b32.xlu2 %v7190_v3, %s6156_s30  ;;  %v3876_v3 = vsel %vm1081_vm2, %v7250_v22, 0 }
 0x549   : > { %3888 = vmatpush.bf16.xpose.msrb.mxu2 %v3834_v39 }
 0x54a   : > { %v1703_v52 = vpack.c.bf16 %v1665_v8, %v1665_v8  ;;  %v7340_v61 = vpop.f32.mrf.mxu2 }
 0x54c   : > { %1720 = vst.msk [vmem:[#allocation5 + $0x4] sm:$0xf] %vm1718_vm3, %v1703_v52  ;;  %5096 = vmatmul.msk.bf16.gmra.mxu3 %vm1081_vm2, %v6990_v9  ;;  %v5607_v9 = vld [vmem:[#allocation4 + $0x58] sm:$0xff]  ;;  %v7334_v21 = vpop.permute.xlu0 %3681  ;;  %v2917_v52 = vsel %vm1081_vm2, %v7194_v16, 0 }
 0x54d   : > { %3396 = vrot.lane.b32.xlu1 %v5607_v9, %s6155_s29  ;;  %2996 = vmatpush.bf16.xpose.msrb.mxu3 %v2917_v52  ;;  %v5604_v9 = vld [vmem:[#allocation4 + $0x40] sm:$0xff] }
 0x54f   : > { %v1667_v27 = vpop.f32.mrf.mxu3 }
 0x550   : > { %v1668_v17 = vadd.f32 %v1667_v27, %v7092_v5  ;;  %5375 = vmatmul.msk.bf16.vlgmr.msrb.gmra.mxu2 %vm1081_vm2, %v7334_v21  ;;  %v3879_v5 = vsel %vm1081_vm2, %v7175_v45, 0  ;;  %3390 = vrot.lane.b32.xlu2 %v5604_v9, %s6155_s29  ;;  %v3870_v9 = vsel %vm1081_vm2, %v7228_v30, 0  ;;  %v2434_v30 = vpop.permute.xlu2 %2433 }
 0x551   : > { %2488 = vmatpush.bf16.msrb.mxu0 %v2434_v30 }
 0x552   : > { %v1704_v47 = vpack.c.bf16 %v1668_v17, %v1668_v17  ;;  %v7355_v27 = vpop.f32.mrf.mxu2 }
 0x554   : > { %1721 = vst.msk [vmem:[#allocation5 + $0x8] sm:$0xf] %vm1718_vm3, %v1704_v47 }
 0x555   : > { %3930 = vmatpush.bf16.xpose.msra.mxu3 %v3879_v5  ;;  %3392 = vrot.lane.b32.xlu1 %v5605_v26, %s6155_s29  ;;  %v5596_v5 = vld [vmem:[#allocation4] sm:$0xff] }
 0x556   : > { %3374 = vrot.lane.b32.xlu0 %v5596_v5, %s6155_s29 }
 0x557   : > { %v1669_v33 = vpop.f32.mrf.mxu3 }
 0x558   : > { %v1670_v12 = vadd.f32 %v1669_v33, %v7117_v36  ;;  %v7350_v36 = vpop.permute.xlu1 %3793 }
 0x55a   : > { %v1705_v8 = vpack.c.bf16 %v1670_v12, %v1670_v12 }
 0x55c   : > { %1722 = vst.msk [vmem:[#allocation5 + $0xc] sm:$0xf] %vm1718_vm3, %v1705_v8  ;;  %5097 = vmatmul.msk.bf16.gmra.mxu3 %vm1081_vm2, %v6992_v24  ;;  %v5643_v8 = vld [vmem:[#allocation4 + $0x78] sm:$0xff] }
 0x55d   : > { %3931 = vmatpush.bf16.xpose.msra.mxu3 %v3876_v3  ;;  %4345 = vrot.lane.b32.xlu2 %v5643_v8, %s6156_s30 }
 0x55e   : > { %4329 = vrot.lane.b32.xlu0 %v5635_v15, %s6156_s30 }
 0x55f   : > { %v1672_v45 = vpop.f32.mrf.mxu3 }
 0x560   : > { %v1673_v16 = vadd.f32 %v1672_v45, %v7127_v0  ;;  %v7360_v24 = vpop.permute.xlu1 %3683  ;;  %v7366_v0 = vpop.f32.mrf.mxu2  ;;  %v5641_v45 = vld [vmem:[#allocation4 + $0x68] sm:$0xff] }
 0x561   : > { %5376 = vmatmul.msk.bf16.gmra.mxu2 %vm1081_vm2, %v7360_v24 }
 0x562   : > { %v1706_v39 = vpack.c.bf16 %v1673_v16, %v1673_v16 }
 0x564   : > { %1723 = vst.msk [vmem:[#allocation5 + $0x10] sm:$0xf] %vm1718_vm3, %v1706_v39 }
 0x565   : > { %4341 = vrot.lane.b32.xlu2 %v5641_v45, %s6156_s30 }
 0x567   : > { %v1674_v17 = vpop.f32.mrf.mxu3 }
 0x568   : > { %v1675_v47 = vadd.f32 %v1674_v17, %v7147_v1  ;;  %v7377_v52 = vpop.permute.xlu1 %3685  ;;  %v7381_v22 = vpop.f32.mrf.mxu2 }
 0x569   : > { %8690 = vst [vmem:[#allocation6_spill] sm:$0xff] %v7381_v22 }
 0x56a   : > { %v1707_v50 = vpack.c.bf16 %v1675_v47, %v1675_v47  ;;  %v5634_v47 = vld [vmem:[#allocation4 + $0x30] sm:$0xff] }
 0x56b   : > { %4327 = vrot.lane.b32.xlu0 %v5634_v47, %s6156_s30 }
 0x56c   : > { %1724 = vst.msk [vmem:[#allocation5 + $0x14] sm:$0xf] %vm1718_vm3, %v1707_v50  ;;  %5098 = vmatmul.msk.bf16.gmra.mxu3 %vm1081_vm2, %v7014_v40  ;;  %v3873_v40 = vsel %vm1081_vm2, %v7265_v58, 0  ;;  %v7391_v58 = vpop.permute.xlu0 %3687 }
 0x56d   : > { %3932 = vmatpush.bf16.xpose.msra.mxu3 %v3873_v40 }
 0x56f   : > { %v1677_v33 = vpop.f32.mrf.mxu3 }
 0x570   : > { %v1678_v12 = vadd.f32 %v1677_v33, %v7159_v18  ;;  %v7393_v39 = vpop.f32.mrf.mxu2  ;;  %v5633_v33 = vld [vmem:[#allocation4 + $0x28] sm:$0xff] }
 0x571   : > { %5377 = vmatmul.msk.bf16.gmra.mxu2 %vm1081_vm2, %v7377_v52 }
 0x572   : > { %v1708_v1 = vpack.c.bf16 %v1678_v12, %v1678_v12 }
 0x573   : > { %4325 = vrot.lane.b32.xlu0 %v5633_v33, %s6156_s30 }
 0x574   : > { %1725 = vst.msk [vmem:[#allocation5 + $0x18] sm:$0xf] %vm1718_vm3, %v1708_v1 }
 0x575   : > { %3933 = vmatpush.bf16.xpose.msra.mxu3 %v3870_v9 }
 0x577   : > { %v1679_v18 = vpop.f32.mrf.mxu3 }
 0x578   : > { %v1680_v63 = vadd.f32 %v1679_v18, %v7169_v53  ;;  %v5642_v53 = vld [vmem:[#allocation4 + $0x70] sm:$0xff]  ;;  %v7404_v12 = vpop.f32.mrf.mxu2 }
 0x579   : > { %4343 = vrot.lane.b32.xlu1 %v5642_v53, %s6156_s30  ;;  %v3867_v53 = vsel %vm1081_vm2, %v7269_v38, 0 }
 0x57a   : > { %v1709_v26 = vpack.c.bf16 %v1680_v63, %v1680_v63  ;;  %v7414_v63 = vpop.permute.xlu2 %3689 }
 0x57c   : > { %1726 = vst.msk [vmem:[#allocation5 + $0x1c] sm:$0xf] %vm1718_vm3, %v1709_v26  ;;  %5099 = vmatmul.msk.bf16.gmra.mxu3 %vm1081_vm2, %v6998_v11  ;;  %v3389_v11 = vpop.permute.xlu0 %3388 }
 0x57d   : > { %3422 = vmatpush.bf16.msra.mxu0 %v3389_v11  ;;  %3934 = vmatpush.bf16.xpose.msra.mxu3 %v3867_v53 }
 0x57f   : > { %v1682_v16 = vpop.f32.mrf.mxu3 }
 0x580   : > { %v1683_v17 = vadd.f32 %v1682_v16, %v7211_v14 }
 0x581   : > { %5378 = vmatmul.msk.bf16.gmra.mxu2 %vm1081_vm2, %v7391_v58 }
 0x582   : > { %v1710_v50 = vpack.c.bf16 %v1683_v17, %v1683_v17  ;;  %v7424_v17 = vpop.permute.xlu1 %3691  ;;  %v3403_v9 = vpop.permute.xlu2 %3402 }
 0x584   : > { %1727 = vst.msk [vmem:[#allocation5 + $0x20] sm:$0xf] %vm1718_vm3, %v1710_v50  ;;  %v3387_v40 = vpop.permute.xlu0 %3386 }
 0x585   : > { %3423 = vmatpush.bf16.msra.mxu0 %v3387_v40 }
 0x587   : > { %v1684_v3 = vpop.f32.mrf.mxu3 }
 0x588   : > { %v1685_v14 = vadd.f32 %v1684_v3, %v7224_v23  ;;  %v7411_v23 = vpop.f32.mrf.mxu2 }
 0x589   : > { %8691 = vst [vmem:[#allocation7_spill] sm:$0xff] %v7411_v23 }
 0x58a   : > { %v1711_v5 = vpack.c.bf16 %v1685_v14, %v1685_v14  ;;  %v3405_v14 = vpop.permute.xlu1 %3404 }
 0x58b   : > { %3471 = vmatpush.bf16.msra.mxu1 %v3405_v14 }
 0x58c   : > { %1728 = vst.msk [vmem:[#allocation5 + $0x24] sm:$0xf] %vm1718_vm3, %v1711_v5  ;;  %5100 = vmatmul.msk.bf16.gmra.mxu3 %vm1081_vm2, %v7028_v28  ;;  %v3385_v26 = vpop.permute.xlu0 %3384  ;;  %v3864_v5 = vsel %vm1081_vm2, %v7306_v2, 0 }
 0x58d   : > { %3424 = vmatpush.bf16.msra.mxu0 %v3385_v26  ;;  %3935 = vmatpush.bf16.xpose.msra.mxu3 %v3864_v5 }
 0x58f   : > { %v1687_v1 = vpop.f32.mrf.mxu3  ;;  %3472 = vmatpush.bf16.msra.mxu1 %v3403_v9 }
 0x590   : > { %v1688_v8 = vadd.f32 %v1687_v1, %v7234_v43  ;;  %v7422_v43 = vpop.f32.mrf.mxu2 }
 0x591   : > { %5379 = vmatmul.msk.bf16.gmra.mxu2 %vm1081_vm2, %v7414_v63  ;;  %8692 = vst [vmem:[#allocation8_spill] sm:$0xff] %v7422_v43 }
 0x592   : > { %v1712_v18 = vpack.c.bf16 %v1688_v8, %v1688_v8 }
 0x594   : > { %1729 = vst.msk [vmem:[#allocation5 + $0x28] sm:$0xf] %vm1718_vm3, %v1712_v18  ;;  %v3401_v50 = vpop.permute.xlu0 %3400  ;;  %v3861_v18 = vsel %vm1081_vm2, %v7315_v10, 0 }
 0x595   : > { %3473 = vmatpush.bf16.msra.mxu1 %v3401_v50  ;;  %3936 = vmatpush.bf16.xpose.msra.mxu3 %v3861_v18 }
 0x597   : > { %v1689_v15 = vpop.f32.mrf.mxu3 }
 0x598   : > { %v1690_v28 = vadd.f32 %v1689_v15, %v7244_v62  ;;  %v7435_v33 = vpop.f32.mrf.mxu2 }
 0x599   : > { %8693 = vst [vmem:[#allocation9_spill] sm:$0xff] %v7435_v33 }
 0x59a   : > { %v1713_v45 = vpack.c.bf16 %v1690_v28, %v1690_v28 }
 0x59c   : > { %1730 = vst.msk [vmem:[#allocation5 + $0x2c] sm:$0xf] %vm1718_vm3, %v1713_v45  ;;  %5101 = vmatmul.msk.bf16.gmra.mxu3 %vm1081_vm2, %v7112_v49  ;;  %v7433_v3 = vpop.permute.xlu0 %3693 }
 0x59f   : > { %v1692_v16 = vpop.f32.mrf.mxu3 }
 0x5a0   : > { %v1693_v47 = vadd.f32 %v1692_v16, %v7252_v57  ;;  %v3383_v57 = vpop.permute.xlu2 %3382  ;;  %v7445_v15 = vpop.f32.mrf.mxu2 }
 0x5a1   : > { %5380 = vmatmul.msk.bf16.gmra.mxu2 %vm1081_vm2, %v7424_v17  ;;  %3425 = vmatpush.bf16.msra.mxu0 %v3383_v57  ;;  %8694 = vst [vmem:[#allocation10_spill] sm:$0xff] %v7445_v15 }
 0x5a2   : > { %v1714_v62 = vpack.c.bf16 %v1693_v47, %v1693_v47 }
 0x5a4   : > { %1731 = vst.msk [vmem:[#allocation5 + $0x30] sm:$0xf] %vm1718_vm3, %v1714_v62  ;;  %v3399_v1 = vpop.permute.xlu0 %3398 }
 0x5a5   : > { %3474 = vmatpush.bf16.msra.mxu1 %v3399_v1 }
 0x5a7   : > { %v1694_v11 = vpop.f32.mrf.mxu3 }
 0x5a8   : > { %v1695_v49 = vadd.f32 %v1694_v11, %v7274_v42  ;;  %v3379_v40 = vpop.permute.xlu2 %3378  ;;  %v7454_v10 = vpop.f32.mrf.mxu2 }
 0x5aa   : > { %v1715_v38 = vpack.c.bf16 %v1695_v49, %v1695_v49 }
 0x5ac   : > { %1732 = vst.msk [vmem:[#allocation5 + $0x34] sm:$0xf] %vm1718_vm3, %v1715_v38  ;;  %5102 = vmatmul.msk.bf16.gmra.mxu3 %vm1081_vm2, %v7140_v51 }
 0x5af   : > { %v1697_v42 = vpop.f32.mrf.mxu3 }
 0x5b0   : > { %v1698_v30 = vadd.f32 %v1697_v42, %v7285_v19  ;;  %v3381_v19 = vpop.permute.xlu0 %3380  ;;  %v3377_v26 = vpop.permute.xlu2 %3376 }
 0x5b1   : > { %5381 = vmatmul.msk.bf16.gmra.mxu2 %vm1081_vm2, %v7433_v3  ;;  %3426 = vmatpush.bf16.msra.mxu0 %v3381_v19  ;;  %v7464_v47 = vpop.f32.mrf.mxu2 }
 0x5b2   : > { %v1716_v8 = vpack.c.bf16 %v1698_v30, %v1698_v30 }
 0x5b4   : > { %1733 = vst.msk [vmem:[#allocation5 + $0x38] sm:$0xf] %vm1718_vm3, %v1716_v8 }
 0x5b5   : > { %3427 = vmatpush.bf16.msra.mxu0 %v3379_v40 }
 0x5b7   : > { %v1699_v51 = vpop.f32.mrf.mxu3 }
 0x5b8   : > { %v1700_v2 = vadd.f32 %v1699_v51, %v7298_v37  ;;  %v3858_v37 = vsel %vm1081_vm2, %v7350_v36, 0  ;;  %v7462_v53 = vpop.permute.xlu2 %3695  ;;  %v3395_v9 = vpop.permute.xlu0 %3394 }
 0x5b9   : > { %3428 = vmatpush.bf16.msra.mxu0 %v3377_v26  ;;  %3937 = vmatpush.bf16.xpose.msra.mxu3 %v3858_v37 }
 0x5ba   : > { %v1717_v28 = vpack.c.bf16 %v1700_v2, %v1700_v2 }
 0x5bc   : > { %1734 = vst.msk [vmem:[#allocation5 + $0x3c] sm:$0xf] %vm1718_vm3, %v1717_v28  ;;  %5239 = vmatmul.msk.bf16.vlgmr.msrb.gmra.mxu3 %vm1081_vm2, %v7135_v59 }
 0x5bf   : > { %v7456_v45 = vpop.f32.mrf.mxu3  ;;  %v3397_v62 = vpop.permute.xlu1 %3396 }
 0x5c0   : > { %v2097_v16 = vmax.f32 %v7178_v54, %v7456_v45  ;;  %3475 = vmatpush.bf16.msra.mxu1 %v3397_v62  ;;  %v3391_v14 = vpop.permute.xlu2 %3390 }
 0x5c1   : > { %5382 = vmatmul.msk.bf16.gmra.mxu2 %vm1081_vm2, %v7462_v53 }
 0x5c2   : > { %2098 = vmax.xlane.f32.xlu2 %v2097_v16 }
 0x5c4   : > { %3476 = vmatpush.bf16.msra.mxu1 %v3395_v9 }
 0x5c7   : > { %v7466_v50 = vpop.f32.mrf.mxu3  ;;  %v3393_v49 = vpop.permute.xlu1 %3392 }
 0x5c8   : > { %v2100_v59 = vmax.f32 %v7196_v20, %v7466_v50  ;;  %3477 = vmatpush.bf16.msra.mxu1 %v3393_v49  ;;  %v3375_v51 = vpop.permute.xlu0 %3374 }
 0x5c9   : > { %3429 = vmatpush.bf16.msra.mxu0 %v3375_v51 }
 0x5ca   : > { %2101 = vmax.xlane.f32.xlu1 %v2100_v59  ;;  %v7528_v59 = vpop.permute.xlu2 %4345 }
 0x5cc   : > { %5240 = vmatmul.msk.bf16.gmra.mxu3 %vm1081_vm2, %v7180_v25  ;;  %3478 = vmatpush.bf16.msra.mxu1 %v3391_v14 }
 0x5cf   : > { %v7474_v36 = vpop.f32.mrf.mxu3 }
 0x5d0   : > { %v2103_v11 = vmax.f32 %v7207_v55, %v7474_v36  ;;  %v7532_v9 = vpop.permute.xlu0 %4329 }
 0x5d2   : > { %2104 = vmax.xlane.f32.xlu0 %v2103_v11 }
 0x5d7   : > { %v7478_v38 = vpop.f32.mrf.mxu3 }
 0x5d8   : > { %v2106_v57 = vmax.f32 %v7220_v46, %v7478_v38 }
 0x5da   : > { %2107 = vmax.xlane.f32.xlu2 %v2106_v57 }
 0x5dc   : > { %5241 = vmatmul.msk.bf16.gmra.mxu3 %vm1081_vm2, %v7205_v44 }
 0x5dd   : > { %v7544_v57 = vpop.permute.xlu0 %4327 }
 0x5df   : > { %v7484_v25 = vpop.f32.mrf.mxu3 }
 0x5e0   : > { %v2109_v5 = vmax.f32 %v7232_v48, %v7484_v25 }
 0x5e2   : > { %2110 = vmax.xlane.f32.xlu1 %v2109_v5 }
 0x5e7   : > { %v7488_v42 = vpop.f32.mrf.mxu3 }
 0x5e8   : > { %v2112_v30 = vmax.f32 %v7242_v56, %v7488_v42 }
 0x5ea   : > { %2113 = vmax.xlane.f32.xlu2 %v2112_v30 }
 0x5eb   : > { %v7546_v5 = vpop.permute.xlu1 %4343 }
 0x5ec   : > { %5242 = vmatmul.msk.bf16.gmra.mxu3 %vm1081_vm2, %v7145_v34 }
 0x5ef   : > { %v7494_v1 = vpop.f32.mrf.mxu3 }
 0x5f0   : > { %v2115_v44 = vmax.f32 %v7258_v13, %v7494_v1 }
 0x5f2   : > { %2116 = vmax.xlane.f32.xlu0 %v2115_v44 }
 0x5f7   : > { %v7498_v8 = vpop.f32.mrf.mxu3 }
 0x5f8   : > { %v2118_v40 = vmax.f32 %v7276_v6, %v7498_v8 }
 0x5fa   : > { %2119 = vmax.xlane.f32.xlu2 %v2118_v40 }
 0x5fc   : > { %5243 = vmatmul.msk.bf16.gmra.mxu3 %vm1081_vm2, %v7156_v60 }
 0x5ff   : > { %v7504_v18 = vpop.f32.mrf.mxu3 }
 0x600   : > { %v2121_v34 = vmax.f32 %v7287_v31, %v7504_v18 }
 0x602   : > { %2122 = vmax.xlane.f32.xlu2 %v2121_v34 }
 0x607   : > { %v7508_v2 = vpop.f32.mrf.mxu3 }
 0x608   : > { %v2124_v19 = vmax.f32 %v7300_v29, %v7508_v2 }
 0x60a   : > { %2125 = vmax.xlane.f32.xlu0 %v2124_v19 }
 0x60c   : > { %5244 = vmatmul.msk.bf16.gmra.mxu3 %vm1081_vm2, %v7226_v7 }
 0x60f   : > { %v7514_v28 = vpop.f32.mrf.mxu3 }
 0x610   : > { %v2127_v60 = vmax.f32 %v7319_v35, %v7514_v28 }
 0x612   : > { %2128 = vmax.xlane.f32.xlu2 %v2127_v60  ;;  %v7554_v60 = vpop.permute.xlu0 %4325 }
 0x617   : > { %v7518_v26 = vpop.f32.mrf.mxu3 }
 0x618   : > { %v2130_v16 = vmax.f32 %v7329_v32, %v7518_v26 }
 0x61a   : > { %2131 = vmax.xlane.f32.xlu2 %v2130_v16 }
 0x61c   : > { %5245 = vmatmul.msk.bf16.gmra.mxu3 %vm1081_vm2, %v7260_v41  ;;  %v7538_v41 = vpop.permute.xlu2 %4341 }
 0x61f   : > { %v7524_v37 = vpop.f32.mrf.mxu3 }
 0x620   : > { %v2133_v7 = vmax.f32 %v7340_v61, %v7524_v37 }
 0x622   : > { %2134 = vmax.xlane.f32.xlu2 %v2133_v7 }
 0x627   : > { %v7530_v62 = vpop.f32.mrf.mxu3 }
 0x628   : > { %v2136_v11 = vmax.f32 %v7355_v27, %v7530_v62 }
 0x62a   : > { %2137 = vmax.xlane.f32.xlu2 %v2136_v11 }
 0x62c   : > { %5246 = vmatmul.msk.bf16.gmra.mxu3 %vm1081_vm2, %v7313_v4 }
 0x62f   : > { %v7540_v49 = vpop.f32.mrf.mxu3 }
 0x630   : > { %v2139_v14 = vmax.f32 %v7366_v0, %v7540_v49 }
 0x632   : > { %2140 = vmax.xlane.f32.xlu2 %v2139_v14 }
 0x635   : > { %v2099_v30 = vpop.xlane.xlu2 %2098 }
 0x636   : > { %v2145_v44 = vsub.f32 %v7178_v54, %v2099_v30  ;;  %v2146_v40 = vsub.f32 %v7456_v45, %v2099_v30 }
 0x637   : > { %v7550_v34 = vpop.f32.mrf.mxu3 }
 0x638   : > { %8695 = vst [vmem:[#allocation11_spill] sm:$0xff] %v7550_v34  ;;  %v2177_v4 = vmul.f32 1.442695, %v2145_v44  ;;  %v2179_v51 = vmul.f32 1.442695, %v2146_v40  ;;  %v2142_v19 = vmax.f32 %v7381_v22, %v7550_v34 }
 0x63a   : > { %5816 = vpow2.f32 %v2177_v4  ;;  %2143 = vmax.xlane.f32.xlu1 %v2142_v19 }
 0x63b   : > { %5818 = vpow2.f32 %v2179_v51 }
 0x63c   : > { %5383 = vmatmul.msk.bf16.vlgmr.msra.gmra.mxu3 %vm1081_vm2, %v7334_v21 }
 0x63d   : > { %v2102_v16 = vpop.xlane.xlu1 %2101 }
 0x63e   : > { %v2147_v54 = vsub.f32 %v7196_v20, %v2102_v16  ;;  %v2148_v45 = vsub.f32 %v7466_v50, %v2102_v16 }
 0x63f   : > { %v7560_v7 = vpop.f32.mrf.mxu3 }
 0x640   : > { %v7562_v11 = vpop.eup %5816  ;;  %v3038_v14 = vmax.f32 %v7393_v39, %v7560_v7  ;;  %v2181_v44 = vmul.f32 1.442695, %v2147_v54  ;;  %v2183_v21 = vmul.f32 1.442695, %v2148_v45 }
 0x641   : > { %v7566_v30 = vpop.eup %5818 }
 0x642   : > { %3039 = vmax.xlane.f32.xlu2 %v3038_v14  ;;  %v2241_v40 = vadd.f32 %v7566_v30, %v7562_v11  ;;  %5820 = vpow2.f32 %v2181_v44 }
 0x643   : > { %5822 = vpow2.f32 %v2183_v21 }
 0x644   : > { %2242 = vadd.xlane.f32.xlu1 %v2241_v40 }
 0x645   : > { %v2105_v4 = vpop.xlane.xlu0 %2104 }
 0x646   : > { %v2149_v20 = vsub.f32 %v7207_v55, %v2105_v4  ;;  %v2150_v50 = vsub.f32 %v7474_v36, %v2105_v4 }
 0x647   : > { %v7572_v51 = vpop.f32.mrf.mxu3 }
 0x648   : > { %v3041_v19 = vmax.f32 %v7404_v12, %v7572_v51  ;;  %v2185_v16 = vmul.f32 1.442695, %v2149_v20  ;;  %v2187_v54 = vmul.f32 1.442695, %v2150_v50  ;;  %v7576_v14 = vpop.eup %5820 }
 0x649   : > { %v7580_v45 = vpop.eup %5822 }
 0x64a   : > { %3042 = vmax.xlane.f32.xlu2 %v3041_v19  ;;  %5824 = vpow2.f32 %v2185_v16  ;;  %v2244_v50 = vadd.f32 %v7580_v45, %v7576_v14 }
 0x64b   : > { %5826 = vpow2.f32 %v2187_v54 }
 0x64c   : > { %5384 = vmatmul.msk.bf16.gmra.mxu3 %vm1081_vm2, %v7360_v24 }
 0x64d   : > { %v2108_v44 = vpop.xlane.xlu2 %2107 }
 0x64e   : > { %v2151_v55 = vsub.f32 %v7220_v46, %v2108_v44  ;;  %v2152_v36 = vsub.f32 %v7478_v38, %v2108_v44 }
 0x64f   : > { %v7584_v40 = vpop.f32.mrf.mxu3 }
 0x650   : > { %8696 = vst [vmem:[#allocation12_spill] sm:$0xff] %v7584_v40  ;;  %v2189_v21 = vmul.f32 1.442695, %v2151_v55  ;;  %v2191_v4 = vmul.f32 1.442695, %v2152_v36  ;;  %v3044_v20 = vmax.f32 %v7411_v23, %v7584_v40  ;;  %v7590_v24 = vpop.eup %5824  ;;  %v5632_v23 = vld [vmem:[#allocation4 + $0x20] sm:$0xff] }
 0x651   : > { %v7592_v46 = vpop.eup %5826 }
 0x652   : > { %5828 = vpow2.f32 %v2189_v21  ;;  %3045 = vmax.xlane.f32.xlu1 %v3044_v20  ;;  %2245 = vadd.xlane.f32.xlu2 %v2244_v50  ;;  %8697 = vst [vmem:[#allocation13_spill] sm:$0xff] %v7592_v46  ;;  %v2247_v21 = vadd.f32 %v7592_v46, %v7590_v24 }
 0x653   : > { %5830 = vpow2.f32 %v2191_v4 }
 0x655   : > { %v2111_v38 = vpop.xlane.xlu1 %2110 }
 0x656   : > { %v2153_v19 = vsub.f32 %v7232_v48, %v2111_v38  ;;  %v2154_v16 = vsub.f32 %v7484_v25, %v2111_v38 }
 0x657   : > { %v7596_v54 = vpop.f32.mrf.mxu3 }
 0x658   : > { %8698 = vst [vmem:[#allocation14_spill] sm:$0xff] %v7596_v54  ;;  %v7598_v44 = vpop.eup %5828  ;;  %v2193_v55 = vmul.f32 1.442695, %v2153_v19  ;;  %v2195_v36 = vmul.f32 1.442695, %v2154_v16  ;;  %v3047_v16 = vmax.f32 %v7422_v43, %v7596_v54 }
 0x659   : > { %v7602_v20 = vpop.eup %5830 }
 0x65a   : > { %8699 = vst [vmem:[#allocation15_spill] sm:$0xff] %v7602_v20  ;;  %5832 = vpow2.f32 %v2193_v55  ;;  %2248 = vadd.xlane.f32.xlu1 %v2247_v21  ;;  %v2250_v4 = vadd.f32 %v7602_v20, %v7598_v44 }
 0x65b   : > { %5834 = vpow2.f32 %v2195_v36 }
 0x65c   : > { %2251 = vadd.xlane.f32.xlu2 %v2250_v4  ;;  %5385 = vmatmul.msk.bf16.gmra.mxu3 %vm1081_vm2, %v7377_v52  ;;  %v7624_v4 = vpop.f32.mrf.mxu2 }
 0x65d   : > { %v2114_v48 = vpop.xlane.xlu2 %2113 }
 0x65e   : > { %v2155_v25 = vsub.f32 %v7242_v56, %v2114_v48  ;;  %v2156_v50 = vsub.f32 %v7488_v42, %v2114_v48 }
 0x65f   : > { %v7610_v38 = vpop.f32.mrf.mxu3 }
 0x660   : > { %8700 = vst [vmem:[#allocation16_spill] sm:$0xff] %v7610_v38  ;;  %v7612_v19 = vpop.eup %5832  ;;  %v3050_v55 = vmax.f32 %v7435_v33, %v7610_v38  ;;  %v2197_v21 = vmul.f32 1.442695, %v2155_v25  ;;  %v2199_v52 = vmul.f32 1.442695, %v2156_v50 }
 0x661   : > { %8701 = vst [vmem:[#allocation17_spill] sm:$0xff] %v7612_v19  ;;  %v7618_v36 = vpop.eup %5834 }
 0x662   : > { %8702 = vst [vmem:[#allocation18_spill] sm:$0xff] %v7618_v36  ;;  %3048 = vmax.xlane.f32.xlu1 %v3047_v16  ;;  %3051 = vmax.xlane.f32.xlu0 %v3050_v55  ;;  %v2253_v56 = vadd.f32 %v7618_v36, %v7612_v19  ;;  %5836 = vpow2.f32 %v2197_v21 }
 0x663   : > { %5838 = vpow2.f32 %v2199_v52  ;;  %v5631_v52 = vld [vmem:[#allocation4 + $0x18] sm:$0xff] }
 0x664   : > { %2254 = vadd.xlane.f32.xlu2 %v2253_v56  ;;  %v7638_v55 = vpop.f32.mrf.mxu2 }
 0x667   : > { %v7622_v42 = vpop.f32.mrf.mxu3 }
 0x668   : > { %8703 = vst [vmem:[#allocation19_spill] sm:$0xff] %v7622_v42  ;;  %v3053_v48 = vmax.f32 %v7445_v15, %v7622_v42  ;;  %v7628_v40 = vpop.eup %5836 }
 0x669   : > { %8704 = vst [vmem:[#allocation20_spill] sm:$0xff] %v7628_v40  ;;  %v7632_v25 = vpop.eup %5838 }
 0x66a   : > { %3054 = vmax.xlane.f32.xlu0 %v3053_v48  ;;  %8705 = vst [vmem:[#allocation21_spill] sm:$0xff] %v7632_v25  ;;  %v2256_v50 = vadd.f32 %v7632_v25, %v7628_v40  ;;  %v5640_v48 = vld [vmem:[#allocation4 + $0x60] sm:$0xff] }
 0x66c   : > { %5386 = vmatmul.msk.bf16.gmra.mxu3 %vm1081_vm2, %v7391_v58  ;;  %v7643_v42 = vpop.f32.mrf.mxu2 }
 0x66d   : > { %v2120_v21 = vpop.xlane.xlu2 %2119 }
 0x66f   : > { %v7634_v16 = vpop.f32.mrf.mxu3 }
 0x672   : > { %2257 = vadd.xlane.f32.xlu0 %v2256_v50 }
 0x674   : > { %v7652_v50 = vpop.f32.mrf.mxu2 }
 0x675   : > { %v2123_v58 = vpop.xlane.xlu2 %2122 }
 0x676   : > { %v2162_v46 = vsub.f32 %v7504_v18, %v2123_v58 }
 0x677   : > { %v7640_v56 = vpop.f32.mrf.mxu3 }
 0x678   : > { %v3059_v18 = vmax.f32 %v7464_v47, %v7640_v56 }
 0x67b   : > { %4321 = vrot.lane.b32.xlu1 %v5631_v52, %s6156_s30 }
 0x67c   : > { %4339 = vrot.lane.b32.xlu2 %v5640_v48, %s6156_s30  ;;  %5387 = vmatmul.msk.bf16.gmra.mxu3 %vm1081_vm2, %v7414_v63  ;;  %v2117_v48 = vpop.xlane.xlu0 %2116  ;;  %v7663_v63 = vpop.f32.mrf.mxu2 }
 0x67d   : > { %v2157_v36 = vsub.f32 %v7258_v13, %v2117_v48  ;;  %v2158_v40 = vsub.f32 %v7494_v1, %v2117_v48 }
 0x67f   : > { %v7648_v15 = vpop.f32.mrf.mxu3  ;;  %v2201_v19 = vmul.f32 1.442695, %v2157_v36  ;;  %v2203_v22 = vmul.f32 1.442695, %v2158_v40 }
 0x681   : > { %5840 = vpow2.f32 %v2201_v19  ;;  %v2160_v19 = vsub.f32 %v7498_v8, %v2120_v21 }
 0x682   : > { %5842 = vpow2.f32 %v2203_v22  ;;  %v3056_v22 = vmax.f32 %v7454_v10, %v7634_v16 }
 0x685   : > { %v7650_v38 = vpop.xlane.xlu2 %2128 }
 0x686   : > { %4323 = vrot.lane.b32.xlu0 %v5632_v23, %s6156_s30 }
 0x687   : > { %v7655_v33 = vpop.f32.mrf.mxu3  ;;  %v7677_v36 = vpop.eup %5840 }
 0x688   : > { %8706 = vst [vmem:[#allocation22_spill] sm:$0xff] %v7677_v36  ;;  %v7681_v48 = vpop.eup %5842 }
 0x689   : > { %8707 = vst [vmem:[#allocation23_spill] sm:$0xff] %v7681_v48 }
 0x68c   : > { %5388 = vmatmul.msk.bf16.gmra.mxu3 %vm1081_vm2, %v7424_v17  ;;  %v7670_v17 = vpop.f32.mrf.mxu2 }
 0x68d   : > { %v7659_v52 = vpop.xlane.xlu2 %2131 }
 0x68f   : > { %v7661_v25 = vpop.f32.mrf.mxu3 }
 0x695   : > { %v2135_v34 = vpop.xlane.xlu2 %2134 }
 0x696   : > { %v2169_v54 = vsub.f32 %v7340_v61, %v2135_v34  ;;  %v2170_v43 = vsub.f32 %v7524_v37, %v2135_v34  ;;  %v2159_v61 = vsub.f32 %v7276_v6, %v2120_v21  ;;  %v7689_v37 = vpop.f32.mrf.mxu2  ;;  %v2161_v34 = vsub.f32 %v7287_v31, %v2123_v58 }
 0x697   : > { %v7667_v23 = vpop.f32.mrf.mxu3  ;;  %v2166_v58 = vsub.f32 %v7514_v28, %v7650_v38 }
 0x698   : > { %v2225_v20 = vmul.f32 1.442695, %v2169_v54  ;;  %v2227_v1 = vmul.f32 1.442695, %v2170_v43  ;;  %v2205_v43 = vmul.f32 1.442695, %v2159_v61 }
 0x699   : > { %v2207_v54 = vmul.f32 1.442695, %v2160_v19  ;;  %v2209_v61 = vmul.f32 1.442695, %v2161_v34  ;;  %v2211_v19 = vmul.f32 1.442695, %v2162_v46 }
 0x69a   : > { %5844 = vpow2.f32 %v2225_v20 }
 0x69b   : > { %5846 = vpow2.f32 %v2227_v1 }
 0x69c   : > { %5389 = vmatmul.msk.bf16.gmra.mxu3 %vm1081_vm2, %v7433_v3  ;;  %v2259_v3 = vadd.f32 %v7681_v48, %v7677_v36  ;;  %5848 = vpow2.f32 %v2205_v43 }
 0x69d   : > { %v7675_v13 = vpop.xlane.xlu2 %2137  ;;  %5850 = vpow2.f32 %v2207_v54 }
 0x69f   : > { %v7679_v40 = vpop.f32.mrf.mxu3 }
 0x6a0   : > { %v7695_v21 = vpop.eup %5844 }
 0x6a1   : > { %v7699_v48 = vpop.eup %5846 }
 0x6a2   : > { %8708 = vst [vmem:[#allocation24_spill] sm:$0xff] %v7699_v48  ;;  %v7711_v46 = vpop.eup %5848 }
 0x6a3   : > { %v7717_v43 = vpop.eup %5850 }
 0x6a5   : > { %2260 = vadd.xlane.f32.xlu2 %v2259_v3  ;;  %v2141_v6 = vpop.xlane.xlu2 %2140  ;;  %3057 = vmax.xlane.f32.xlu1 %v3056_v22  ;;  %v2126_v22 = vpop.xlane.xlu0 %2125  ;;  %v3062_v3 = vmax.f32 %v7624_v4, %v7648_v15 }
 0x6a6   : > { %v2173_v8 = vsub.f32 %v7366_v0, %v2141_v6  ;;  %v2174_v20 = vsub.f32 %v7540_v49, %v2141_v6  ;;  %v2277_v0 = vadd.f32 %v7699_v48, %v7695_v21  ;;  %v2165_v49 = vsub.f32 %v7319_v35, %v7650_v38 }
 0x6a7   : > { %v7697_v1 = vpop.f32.mrf.mxu3  ;;  %v2163_v28 = vsub.f32 %v7300_v29, %v2126_v22  ;;  %v2219_v38 = vmul.f32 1.442695, %v2166_v58 }
 0x6a8   : > { %v2233_v36 = vmul.f32 1.442695, %v2173_v8  ;;  %v2235_v31 = vmul.f32 1.442695, %v2174_v20  ;;  %v2164_v8 = vsub.f32 %v7508_v2, %v2126_v22 }
 0x6aa   : > { %5852 = vpow2.f32 %v2233_v36  ;;  %v7713_v36 = vpop.f32.mrf.mxu2 }
 0x6ab   : > { %5854 = vpow2.f32 %v2235_v31  ;;  %v2262_v31 = vadd.f32 %v7717_v43, %v7711_v46 }
 0x6ac   : > { %5856 = vpow2.f32 %v2209_v61  ;;  %5390 = vmatmul.msk.bf16.gmra.mxu3 %vm1081_vm2, %v7462_v53  ;;  %v2217_v53 = vmul.f32 1.442695, %v2165_v49 }
 0x6ad   : > { %5858 = vpow2.f32 %v2211_v19  ;;  %3060 = vmax.xlane.f32.xlu2 %v3059_v18  ;;  %2278 = vadd.xlane.f32.xlu1 %v2277_v0  ;;  %v7731_v61 = vpop.xlane.xlu1 %2143  ;;  %v2213_v18 = vmul.f32 1.442695, %v2163_v28  ;;  %v2215_v0 = vmul.f32 1.442695, %v2164_v8 }
 0x6ae   : > { %5860 = vpow2.f32 %v2217_v53  ;;  %v3065_v53 = vmax.f32 %v7638_v55, %v7655_v33 }
 0x6af   : > { %v7719_v35 = vpop.f32.mrf.mxu3  ;;  %5862 = vpow2.f32 %v2219_v38 }
 0x6b0   : > { %v7721_v34 = vpop.eup %5852  ;;  %3063 = vmax.xlane.f32.xlu0 %v3062_v3  ;;  %5864 = vpow2.f32 %v2213_v18 }
 0x6b1   : > { %8709 = vst [vmem:[#allocation25_spill] sm:$0xff] %v7721_v34  ;;  %v7723_v54 = vpop.eup %5854  ;;  %5866 = vpow2.f32 %v2215_v0 }
 0x6b2   : > { %8710 = vst [vmem:[#allocation26_spill] sm:$0xff] %v7723_v54  ;;  %v7726_v6 = vpop.eup %5856  ;;  %v2283_v19 = vadd.f32 %v7723_v54, %v7721_v34  ;;  %v7741_v58 = vpop.f32.mrf.mxu2 }
 0x6b3   : > { %v7729_v20 = vpop.eup %5858 }
 0x6b4   : > { %v2265_v2 = vadd.f32 %v7729_v20, %v7726_v6  ;;  %v7743_v22 = vpop.eup %5860 }
 0x6b5   : > { %2263 = vadd.xlane.f32.xlu2 %v2262_v31  ;;  %v3040_v29 = vpop.xlane.xlu2 %3039  ;;  %2284 = vadd.xlane.f32.xlu1 %v2283_v19  ;;  %v7745_v3 = vpop.eup %5862 }
 0x6b6   : > { %v2271_v18 = vadd.f32 %v7745_v3, %v7743_v22  ;;  %v7755_v0 = vpop.eup %5864 }
 0x6b7   : > { %v7739_v49 = vpop.f32.mrf.mxu3  ;;  %v2243_v38 = vpop.xlane.xlu1 %2242 }
 0x6b8   : > { %8711 = vst [vmem:[#allocation27_spill] sm:$0xff] %v7739_v49  ;;  %2266 = vadd.xlane.f32.xlu0 %v2265_v2  ;;  %v3083_v28 = vmax.f32 %v7713_v36, %v7739_v49  ;;  %v7759_v54 = vpop.eup %5866  ;;  %5868 = vrcp.f32 %v2243_v38 }
 0x6bd   : > { %3066 = vmax.xlane.f32.xlu2 %v3065_v53  ;;  %v3043_v8 = vpop.xlane.xlu2 %3042  ;;  %3084 = vmax.xlane.f32.xlu1 %v3083_v28  ;;  %v2167_v53 = vsub.f32 %v7329_v32, %v7659_v52  ;;  %v7763_v28 = vpop.f32.mrf.mxu2 }
 0x6be   : > { %v3088_v31 = vsub.f32 %v7404_v12, %v3043_v8  ;;  %v3089_v19 = vsub.f32 %v7572_v51, %v3043_v8  ;;  %v2168_v12 = vsub.f32 %v7518_v26, %v7659_v52  ;;  %v2268_v8 = vadd.f32 %v7759_v54, %v7755_v0  ;;  %v5869_v52 = vpop.eup %5868 }
 0x6bf   : > { %v7757_v2 = vpop.f32.mrf.mxu3  ;;  %v3071_v26 = vmax.f32 %v7652_v50, %v7667_v23 }
 0x6c0   : > { %8712 = vst [vmem:[#allocation28_spill] sm:$0xff] %v7757_v2  ;;  %v3122_v34 = vmul.f32 1.442695, %v3088_v31  ;;  %v3124_v48 = vmul.f32 1.442695, %v3089_v19  ;;  %2272 = vadd.xlane.f32.xlu0 %v2271_v18  ;;  %v3979_v51 = vmax.f32 %v7741_v58, %v7757_v2  ;;  %v3086_v31 = vsub.f32 %v7393_v39, %v3040_v29 }
 0x6c1   : > { %v2221_v19 = vmul.f32 1.442695, %v2167_v53  ;;  %v3087_v18 = vsub.f32 %v7560_v7, %v3040_v29  ;;  %v2223_v49 = vmul.f32 1.442695, %v2168_v12  ;;  %v3068_v29 = vmax.f32 %v7643_v42, %v7661_v25 }
 0x6c2   : > { %5870 = vpow2.f32 %v3122_v34  ;;  %v3118_v2 = vmul.f32 1.442695, %v3086_v31 }
 0x6c3   : > { %5872 = vpow2.f32 %v3124_v48  ;;  %v3120_v7 = vmul.f32 1.442695, %v3087_v18  ;;  %v3074_v18 = vmax.f32 %v7663_v63, %v7679_v40 }
 0x6c5   : > { %2269 = vadd.xlane.f32.xlu2 %v2268_v8  ;;  %3980 = vmax.xlane.f32.xlu1 %v3979_v51  ;;  %v2246_v32 = vpop.xlane.xlu2 %2245  ;;  %v7773_v38 = vpop.xlane.xlu1 %3045  ;;  %v2305_v8 = vmul.f32 %v5869_v52, %v7562_v11 }
 0x6c6   : > { %5874 = vrcp.f32 %v2246_v32  ;;  %v7787_v51 = vpop.f32.mrf.mxu2 }
 0x6c7   : > { %v7777_v48 = vpop.f32.mrf.mxu3  ;;  %5876 = vpow2.f32 %v2221_v19  ;;  %8716 = vst [vmem:[#allocation32_spill] sm:$0xff] %v7787_v51  ;;  %v2306_v19 = vmul.f32 %v5869_v52, %v7566_v30 }
 0x6c8   : > { %8713 = vst [vmem:[#allocation29_spill] sm:$0xff] %v7777_v48  ;;  %v7779_v34 = vpop.eup %5870  ;;  %3072 = vmax.xlane.f32.xlu0 %v3071_v26  ;;  %5878 = vpow2.f32 %v2223_v49 }
 0x6c9   : > { %8714 = vst [vmem:[#allocation30_spill] sm:$0xff] %v7779_v34  ;;  %v7781_v39 = vpop.eup %5872  ;;  %5880 = vpow2.f32 %v3118_v2 }
 0x6ca   : > { %8715 = vst [vmem:[#allocation31_spill] sm:$0xff] %v7781_v39  ;;  %v3185_v53 = vadd.f32 %v7781_v39, %v7779_v34  ;;  %5882 = vpow2.f32 %v3120_v7 }
 0x6cc   : > { %v5875_v12 = vpop.eup %5874 }
 0x6cd   : > { %3069 = vmax.xlane.f32.xlu2 %v3068_v29  ;;  %3186 = vadd.xlane.f32.xlu1 %v3185_v53  ;;  %v2307_v31 = vmul.f32 %v5875_v12, %v7576_v14  ;;  %v2308_v49 = vmul.f32 %v5875_v12, %v7580_v45  ;;  %v2249_v32 = vpop.xlane.xlu1 %2248  ;;  %v7795_v26 = vpop.eup %5876  ;;  %v2171_v14 = vsub.f32 %v7355_v27, %v7675_v13 }
 0x6ce   : > { %v7799_v7 = vpop.eup %5878  ;;  %5884 = vrcp.f32 %v2249_v32  ;;  %v2172_v45 = vsub.f32 %v7530_v62, %v7675_v13  ;;  %v7815_v12 = vpop.f32.mrf.mxu2  ;;  %v8721_v32 = vld [vmem:[#allocation15_spill] sm:$0xff] }
 0x6cf   : > { %v2252_v39 = vpop.xlane.xlu2 %2251  ;;  %v7797_v34 = vpop.f32.mrf.mxu3  ;;  %v2337_v2 = vpack.c.bf16 %v2307_v31, %v2305_v8  ;;  %v2338_v11 = vpack.c.bf16 %v2308_v49, %v2306_v19  ;;  %v2274_v29 = vadd.f32 %v7799_v7, %v7795_v26  ;;  %v2229_v53 = vmul.f32 1.442695, %v2171_v14  ;;  %8718 = vst [vmem:[#allocation34_spill] sm:$0xff] %v7815_v12  ;;  %v8720_v49 = vld [vmem:[#allocation13_spill] sm:$0xff] }
 0x6d0   : > { %8717 = vst [vmem:[#allocation33_spill] sm:$0xff] %v7797_v34  ;;  %3075 = vmax.xlane.f32.xlu0 %v3074_v18  ;;  %v7803_v30 = vpop.eup %5880  ;;  %5886 = vrcp.f32 %v2252_v39  ;;  %v2231_v8 = vmul.f32 1.442695, %v2172_v45  ;;  %v3077_v19 = vmax.f32 %v7670_v17, %v7697_v1  ;;  %v8723_v45 = vld [vmem:[#allocation14_spill] sm:$0xff] }
 0x6d1   : > { %2489 = vmatmul.bf16.vlgmr.msrb.gmra.mxu0 %v2337_v2  ;;  %2538 = vmatmul.bf16.vlgmr.msrb.gmra.mxu1 %v2338_v11  ;;  %v7809_v52 = vpop.eup %5882  ;;  %5888 = vpow2.f32 %v2229_v53  ;;  %v8722_v11 = vld [vmem:[#allocation8_spill] sm:$0xff] }
 0x6d2   : > { %4363 = vmatpush.bf16.msrb.mxu0 %v7532_v9  ;;  %4412 = vmatpush.bf16.msrb.mxu1 %v7528_v59  ;;  %v3182_v62 = vadd.f32 %v7809_v52, %v7803_v30  ;;  %5890 = vpow2.f32 %v2231_v8 }
 0x6d4   : > { %v5885_v59 = vpop.eup %5884 }
 0x6d5   : > { %2275 = vadd.xlane.f32.xlu2 %v2274_v29  ;;  %v7813_v27 = vpop.xlane.xlu0 %3051  ;;  %v3049_v31 = vpop.xlane.xlu1 %3048  ;;  %v2310_v18 = vmul.f32 %v5885_v59, %v8720_v49 }
 0x6d6   : > { %4364 = vmatpush.bf16.msrb.mxu0 %v7544_v57  ;;  %4413 = vmatpush.bf16.msrb.mxu1 %v7546_v5  ;;  %v5887_v39 = vpop.eup %5886  ;;  %v2309_v57 = vmul.f32 %v5885_v59, %v7590_v24  ;;  %v3092_v14 = vsub.f32 %v8722_v11, %v3049_v31  ;;  %v3093_v29 = vsub.f32 %v8723_v45, %v3049_v31  ;;  %v7843_v49 = vpop.f32.mrf.mxu2  ;;  %v8726_v31 = vld [vmem:[#allocation6_spill] sm:$0xff]  ;;  %v8727_v11 = vld [vmem:[#allocation11_spill] sm:$0xff] }
 0x6d7   : > { %v2255_v9 = vpop.xlane.xlu2 %2254  ;;  %v7821_v13 = vpop.f32.mrf.mxu3  ;;  %v2311_v5 = vmul.f32 %v5887_v39, %v7598_v44  ;;  %v2312_v2 = vmul.f32 %v5887_v39, %v8721_v32  ;;  %8725 = vst [vmem:[#allocation15_spill] sm:$0xff] %v7843_v49  ;;  %v2176_v45 = vsub.f32 %v8727_v11, %v7731_v61 }
 0x6d8   : > { %8719 = vst [vmem:[#allocation35_spill] sm:$0xff] %v7821_v13  ;;  %3183 = vadd.xlane.f32.xlu0 %v3182_v62  ;;  %v7837_v8 = vpop.eup %5888  ;;  %v3130_v39 = vmul.f32 1.442695, %v3092_v14  ;;  %v3132_v32 = vmul.f32 1.442695, %v3093_v29  ;;  %5892 = vrcp.f32 %v2255_v9  ;;  %v3985_v14 = vmax.f32 %v7787_v51, %v7797_v34 }
 0x6d9   : > { %v2339_v44 = vpack.c.bf16 %v2311_v5, %v2309_v57  ;;  %v2340_v62 = vpack.c.bf16 %v2312_v2, %v2310_v18  ;;  %v7841_v59 = vpop.eup %5890  ;;  %v2239_v2 = vmul.f32 1.442695, %v2176_v45  ;;  %v8731_v45 = vld [vmem:[#allocation21_spill] sm:$0xff] }
 0x6da   : > { %4365 = vmatpush.bf16.msrb.mxu0 %v7554_v60  ;;  %4414 = vmatpush.bf16.msrb.mxu1 %v7538_v41  ;;  %v3982_v60 = vmax.f32 %v7763_v28, %v7777_v48  ;;  %v5639_v48 = vld [vmem:[#allocation4 + $0x58] sm:$0xff]  ;;  %v2280_v57 = vadd.f32 %v7841_v59, %v7837_v8  ;;  %5894 = vpow2.f32 %v3130_v39 }
 0x6db   : > { %5896 = vpow2.f32 %v3132_v32  ;;  %v8728_v39 = vld [vmem:[#allocation17_spill] sm:$0xff]  ;;  %v8730_v32 = vld [vmem:[#allocation18_spill] sm:$0xff] }
 0x6dd   : > { %3078 = vmax.xlane.f32.xlu2 %v3077_v19  ;;  %v7833_v53 = vpop.xlane.xlu0 %3054  ;;  %v2175_v19 = vsub.f32 %v8726_v31, %v7731_v61 }
 0x6de   : > { %v5893_v29 = vpop.eup %5892 }
 0x6df   : > { %v4340_v41 = vpop.permute.xlu2 %4339  ;;  %v7839_v24 = vpop.f32.mrf.mxu3  ;;  %v2237_v5 = vmul.f32 1.442695, %v2175_v19  ;;  %v2313_v31 = vmul.f32 %v5893_v29, %v8728_v39  ;;  %v2314_v11 = vmul.f32 %v5893_v29, %v8730_v32  ;;  %v8735_v32 = vld [vmem:[#allocation16_spill] sm:$0xff] }
 0x6e0   : > { %8724 = vst [vmem:[#allocation13_spill] sm:$0xff] %v7839_v24  ;;  %4415 = vmatpush.bf16.msrb.mxu1 %v4340_v41  ;;  %3983 = vmax.xlane.f32.xlu0 %v3982_v60  ;;  %v7856_v9 = vpop.eup %5894  ;;  %v7860_v41 = vpop.f32.mrf.mxu2 }
 0x6e1   : > { %2494 = vmatmul.bf16.gmra.mxu0 %v2339_v44  ;;  %2543 = vmatmul.bf16.gmra.mxu1 %v2340_v62  ;;  %v7858_v60 = vpop.eup %5896  ;;  %v3080_v44 = vmax.f32 %v7689_v37, %v7719_v35 }
 0x6e5   : > { %2281 = vadd.xlane.f32.xlu2 %v2280_v57  ;;  %v2258_v18 = vpop.xlane.xlu0 %2257 }
 0x6e6   : > { %5898 = vrcp.f32 %v2258_v18  ;;  %4337 = vrot.lane.b32.xlu1 %v5639_v48, %s6156_s30  ;;  %v8729_v48 = vld [vmem:[#allocation20_spill] sm:$0xff] }
 0x6e7   : > { %5900 = vpow2.f32 %v2237_v5  ;;  %v7854_v61 = vpop.f32.mrf.mxu3  ;;  %v3191_v5 = vadd.f32 %v7858_v60, %v7856_v9 }
 0x6e8   : > { %3986 = vmax.xlane.f32.xlu0 %v3985_v14  ;;  %5902 = vpow2.f32 %v2239_v2  ;;  %v7878_v29 = vpop.f32.mrf.mxu2 }
 0x6e9   : > { %8733 = vst [vmem:[#allocation14_spill] sm:$0xff] %v7878_v29 }
 0x6ec   : > { %v5899_v62 = vpop.eup %5898 }
 0x6ed   : > { %3081 = vmax.xlane.f32.xlu2 %v3080_v44  ;;  %v2315_v19 = vmul.f32 %v5899_v62, %v8729_v48  ;;  %v2316_v57 = vmul.f32 %v5899_v62, %v8731_v45  ;;  %v7870_v18 = vpop.eup %5900  ;;  %v3988_v45 = vmax.f32 %v7815_v12, %v7821_v13 }
 0x6ee   : > { %v7872_v34 = vpop.eup %5902 }
 0x6ef   : > { %v2341_v2 = vpack.c.bf16 %v2315_v19, %v2313_v31  ;;  %v2342_v14 = vpack.c.bf16 %v2316_v57, %v2314_v11  ;;  %v7874_v44 = vpop.f32.mrf.mxu3  ;;  %v2286_v39 = vadd.f32 %v7872_v34, %v7870_v18  ;;  %v8734_v31 = vld [vmem:[#allocation9_spill] sm:$0xff]  ;;  %v3095_v11 = vsub.f32 %v8735_v32, %v7813_v27  ;;  %v8736_v57 = vld [vmem:[#allocation7_spill] sm:$0xff] }
 0x6f0   : > { %3192 = vadd.xlane.f32.xlu0 %v3191_v5  ;;  %8732 = vst [vmem:[#allocation8_spill] sm:$0xff] %v7874_v44  ;;  %v3997_v62 = vmax.f32 %v7878_v29, %v7874_v44  ;;  %v3094_v19 = vsub.f32 %v8734_v31, %v7813_v27  ;;  %v3090_v5 = vsub.f32 %v8736_v57, %v7773_v38 }
 0x6f1   : > { %2499 = vmatmul.bf16.gmra.mxu0 %v2341_v2  ;;  %2548 = vmatmul.bf16.gmra.mxu1 %v2342_v14  ;;  %v4322_v2 = vpop.permute.xlu1 %4321  ;;  %v8737_v14 = vld [vmem:[#allocation12_spill] sm:$0xff]  ;;  %v3991_v27 = vmax.f32 %v7843_v49, %v7839_v24 }
 0x6f2   : > { %v3134_v44 = vmul.f32 1.442695, %v3094_v19  ;;  %v3126_v29 = vmul.f32 1.442695, %v3090_v5 }
 0x6f4   : > { %5904 = vpow2.f32 %v3134_v44  ;;  %v8738_v44 = vld [vmem:[#allocation10_spill] sm:$0xff] }
 0x6f5   : > { %2287 = vadd.xlane.f32.xlu2 %v2286_v39  ;;  %v3091_v39 = vsub.f32 %v8737_v14, %v7773_v38 }
 0x6f7   : > { %v3128_v31 = vmul.f32 1.442695, %v3091_v39  ;;  %v3994_v39 = vmax.f32 %v7860_v41, %v7854_v61 }
 0x6f8   : > { %3998 = vmax.xlane.f32.xlu0 %v3997_v62  ;;  %v4324_v48 = vpop.permute.xlu0 %4323  ;;  %v3136_v62 = vmul.f32 1.442695, %v3095_v11  ;;  %v3096_v11 = vsub.f32 %v8738_v44, %v7833_v53 }
 0x6f9   : > { %4366 = vmatpush.bf16.msrb.mxu0 %v4324_v48 }
 0x6fa   : > { %5906 = vpow2.f32 %v3136_v62  ;;  %v7894_v48 = vpop.eup %5904 }
 0x6fb   : > { %5908 = vpow2.f32 %v3126_v29 }
 0x6fc   : > { %5910 = vpow2.f32 %v3128_v31 }
 0x6fd   : > { %3989 = vmax.xlane.f32.xlu2 %v3988_v45  ;;  %4367 = vmatpush.bf16.msrb.mxu0 %v4322_v2  ;;  %v8739_v45 = vld [vmem:[#allocation19_spill] sm:$0xff]  ;;  %v3138_v2 = vmul.f32 1.442695, %v3096_v11 }
 0x6fe   : > { %v3097_v5 = vsub.f32 %v8739_v45, %v7833_v53 }
 0x6ff   : > { %5912 = vpow2.f32 %v3138_v2 }
 0x700   : > { %v7896_v32 = vpop.eup %5906  ;;  %v3140_v14 = vmul.f32 1.442695, %v3097_v5 }
 0x701   : > { %v7898_v57 = vpop.eup %5908  ;;  %v3194_v19 = vadd.f32 %v7896_v32, %v7894_v48 }
 0x702   : > { %v7900_v38 = vpop.eup %5910  ;;  %5914 = vpow2.f32 %v3140_v14 }
 0x703   : > { %v3188_v29 = vadd.f32 %v7900_v38, %v7898_v57 }
 0x705   : > { %3992 = vmax.xlane.f32.xlu2 %v3991_v27  ;;  %v7914_v53 = vpop.eup %5912 }
 0x70d   : > { %3195 = vadd.xlane.f32.xlu2 %v3194_v19  ;;  %v7916_v19 = vpop.eup %5914 }
 0x70e   : > { %v3197_v5 = vadd.f32 %v7916_v19, %v7914_v53 }
 0x710   : > { %3189 = vadd.xlane.f32.xlu1 %v3188_v29 }
 0x718   : > { %v2261_v62 = vpop.xlane.xlu2 %2260  ;;  %3995 = vmax.xlane.f32.xlu1 %v3994_v39  ;;  %v3058_v31 = vpop.xlane.xlu1 %3057 }
 0x719   : > { %v3098_v27 = vsub.f32 %v7454_v10, %v3058_v31  ;;  %v3099_v44 = vsub.f32 %v7634_v16, %v3058_v31  ;;  %v5630_v10 = vld [vmem:[#allocation4 + $0x10] sm:$0xff] }
 0x71b   : > { %v3142_v45 = vmul.f32 1.442695, %v3098_v27  ;;  %v3144_v11 = vmul.f32 1.442695, %v3099_v44 }
 0x71d   : > { %5916 = vpow2.f32 %v3142_v45 }
 0x71e   : > { %5918 = vpow2.f32 %v3144_v11 }
 0x720   : > { %v3061_v29 = vpop.xlane.xlu2 %3060  ;;  %3198 = vadd.xlane.f32.xlu1 %v3197_v5 }
 0x721   : > { %v3100_v2 = vsub.f32 %v7464_v47, %v3061_v29  ;;  %v3101_v14 = vsub.f32 %v7640_v56, %v3061_v29 }
 0x723   : > { %v7922_v39 = vpop.eup %5916  ;;  %v3146_v16 = vmul.f32 1.442695, %v3100_v2  ;;  %v3148_v31 = vmul.f32 1.442695, %v3101_v14  ;;  %v7924_v24 = vpop.xlane.xlu0 %3063 }
 0x724   : > { %8740 = vst [vmem:[#allocation6_spill] sm:$0xff] %v7922_v39  ;;  %v7926_v27 = vpop.eup %5918  ;;  %v7937_v2 = vpop.xlane.xlu1 %2278 }
 0x725   : > { %8741 = vst [vmem:[#allocation11_spill] sm:$0xff] %v7926_v27  ;;  %5920 = vpow2.f32 %v3146_v16  ;;  %4319 = vrot.lane.b32.xlu2 %v5630_v10, %s6156_s30  ;;  %v3200_v44 = vadd.f32 %v7926_v27, %v7922_v39  ;;  %v8744_v16 = vld [vmem:[#allocation22_spill] sm:$0xff] }
 0x726   : > { %5922 = vpow2.f32 %v3148_v31 }
 0x727   : > { %5924 = vrcp.f32 %v2261_v62  ;;  %v8745_v62 = vld [vmem:[#allocation23_spill] sm:$0xff] }
 0x728   : > { %v2264_v45 = vpop.xlane.xlu2 %2263  ;;  %3201 = vadd.xlane.f32.xlu1 %v3200_v44 }
 0x729   : > { %5926 = vrcp.f32 %v2264_v45 }
 0x72b   : > { %v7931_v47 = vpop.eup %5920  ;;  %v2267_v56 = vpop.xlane.xlu0 %2266 }
 0x72c   : > { %8742 = vst [vmem:[#allocation17_spill] sm:$0xff] %v7931_v47  ;;  %v7933_v11 = vpop.eup %5922  ;;  %5928 = vrcp.f32 %v2267_v56 }
 0x72d   : > { %8743 = vst [vmem:[#allocation20_spill] sm:$0xff] %v7933_v11  ;;  %v3203_v5 = vadd.f32 %v7933_v11, %v7931_v47  ;;  %v5925_v29 = vpop.eup %5924  ;;  %v7943_v47 = vpop.xlane.xlu1 %2284 }
 0x72e   : > { %v2317_v31 = vmul.f32 %v5925_v29, %v8744_v16  ;;  %v2318_v45 = vmul.f32 %v5925_v29, %v8745_v62 }
 0x72f   : > { %3204 = vadd.xlane.f32.xlu0 %v3203_v5  ;;  %v5927_v14 = vpop.eup %5926 }
 0x730   : > { %v3067_v10 = vpop.xlane.xlu2 %3066  ;;  %v2319_v44 = vmul.f32 %v5927_v14, %v7711_v46  ;;  %v2320_v49 = vmul.f32 %v5927_v14, %v7717_v43  ;;  %v5638_v43 = vld [vmem:[#allocation4 + $0x50] sm:$0xff] }
 0x732   : > { %v2343_v39 = vpack.c.bf16 %v2319_v44, %v2317_v31  ;;  %v2344_v13 = vpack.c.bf16 %v2320_v49, %v2318_v45  ;;  %v5929_v12 = vpop.eup %5928 }
 0x733   : > { %v2273_v27 = vpop.xlane.xlu0 %2272  ;;  %v2321_v14 = vmul.f32 %v5929_v12, %v7726_v6  ;;  %v3105_v6 = vsub.f32 %v7655_v33, %v3067_v10 }
 0x734   : > { %2504 = vmatmul.bf16.gmra.mxu0 %v2343_v39  ;;  %2553 = vmatmul.bf16.gmra.mxu1 %v2344_v13  ;;  %v2322_v39 = vmul.f32 %v5929_v12, %v7729_v20 }
 0x738   : > { %v2270_v11 = vpop.xlane.xlu2 %2269 }
 0x739   : > { %5930 = vrcp.f32 %v2270_v11 }
 0x73b   : > { %v3073_v5 = vpop.xlane.xlu0 %3072 }
 0x73c   : > { %v3108_v16 = vsub.f32 %v7652_v50, %v3073_v5  ;;  %v3109_v46 = vsub.f32 %v7667_v23, %v3073_v5  ;;  %v3104_v50 = vsub.f32 %v7638_v55, %v3067_v10  ;;  %v7952_v23 = vpop.xlane.xlu1 %3084  ;;  %v3156_v5 = vmul.f32 1.442695, %v3105_v6  ;;  %v7964_v10 = vpop.f32.mrf.mxu3 }
 0x73e   : > { %v3162_v51 = vmul.f32 1.442695, %v3108_v16  ;;  %v3164_v29 = vmul.f32 1.442695, %v3109_v46  ;;  %v3154_v55 = vmul.f32 1.442695, %v3104_v50 }
 0x73f   : > { %v5931_v62 = vpop.eup %5930 }
 0x740   : > { %5932 = vpow2.f32 %v3162_v51  ;;  %v3070_v49 = vpop.xlane.xlu2 %3069  ;;  %v2323_v13 = vmul.f32 %v5931_v62, %v7755_v0  ;;  %v2324_v56 = vmul.f32 %v5931_v62, %v7759_v54 }
 0x741   : > { %5934 = vpow2.f32 %v3164_v29 }
 0x742   : > { %v2345_v11 = vpack.c.bf16 %v2323_v13, %v2321_v14  ;;  %v2346_v31 = vpack.c.bf16 %v2324_v56, %v2322_v39  ;;  %5936 = vrcp.f32 %v2273_v27  ;;  %v3107_v27 = vsub.f32 %v7661_v25, %v3070_v49 }
 0x743   : > { %4335 = vrot.lane.b32.xlu0 %v5638_v43, %s6156_s30  ;;  %v3076_v44 = vpop.xlane.xlu0 %3075 }
 0x744   : > { %v3110_v51 = vsub.f32 %v7663_v63, %v3076_v44  ;;  %v3111_v0 = vsub.f32 %v7679_v40, %v3076_v44  ;;  %2509 = vmatmul.bf16.gmra.mxu0 %v2345_v11  ;;  %2558 = vmatmul.bf16.gmra.mxu1 %v2346_v31  ;;  %v7966_v63 = vpop.f32.mrf.mxu2  ;;  %v3106_v40 = vsub.f32 %v7643_v42, %v3070_v49  ;;  %v7972_v62 = vpop.xlane.xlu1 %3980  ;;  %v3160_v31 = vmul.f32 1.442695, %v3107_v27 }
 0x745   : > { %v4000_v46 = vmax.f32 %v7966_v63, %v7964_v10 }
 0x746   : > { %v7958_v45 = vpop.eup %5932  ;;  %v3166_v20 = vmul.f32 1.442695, %v3110_v51  ;;  %v3168_v54 = vmul.f32 1.442695, %v3111_v0  ;;  %v3158_v56 = vmul.f32 1.442695, %v3106_v40 }
 0x747   : > { %v7960_v12 = vpop.eup %5934 }
 0x748   : > { %5938 = vpow2.f32 %v3166_v20  ;;  %v2276_v16 = vpop.xlane.xlu2 %2275  ;;  %v3215_v33 = vadd.f32 %v7960_v12, %v7958_v45  ;;  %v5937_v29 = vpop.eup %5936 }
 0x749   : > { %5940 = vpow2.f32 %v3168_v54  ;;  %v2325_v51 = vmul.f32 %v5937_v29, %v7743_v22  ;;  %v2326_v0 = vmul.f32 %v5937_v29, %v7745_v3  ;;  %v3102_v22 = vsub.f32 %v7624_v4, %v7924_v24 }
 0x74a   : > { %5942 = vrcp.f32 %v2276_v16  ;;  %3216 = vadd.xlane.f32.xlu1 %v3215_v33 }
 0x74b   : > { %5944 = vpow2.f32 %v3154_v55  ;;  %v3150_v27 = vmul.f32 1.442695, %v3102_v22 }
 0x74c   : > { %5946 = vpow2.f32 %v3156_v5  ;;  %v7996_v33 = vpop.xlane.xlu1 %3186 }
 0x74d   : > { %5948 = vpow2.f32 %v3158_v56 }
 0x74e   : > { %v7974_v43 = vpop.eup %5938  ;;  %4001 = vmax.xlane.f32.xlu2 %v4000_v46  ;;  %v2490_v14 = vpop.f32.mrf.mxu0  ;;  %5950 = vpow2.f32 %v3160_v31  ;;  %v3103_v46 = vsub.f32 %v7648_v15, %v7924_v24 }
 0x74f   : > { %v2539_v13 = vpop.f32.mrf.mxu1  ;;  %v7976_v39 = vpop.eup %5940  ;;  %5952 = vrcp.f32 %v7937_v2 }
 0x750   : > { %v7978_v11 = vadd.f32 %v2539_v13, %v2490_v14  ;;  %v5943_v42 = vpop.eup %5942  ;;  %v3079_v50 = vpop.xlane.xlu2 %3078  ;;  %v3218_v44 = vadd.f32 %v7976_v39, %v7974_v43  ;;  %v3152_v13 = vmul.f32 1.442695, %v3103_v46 }
 0x751   : > { %v7982_v25 = vpop.eup %5944  ;;  %v2327_v49 = vmul.f32 %v5943_v42, %v7795_v26  ;;  %v2328_v20 = vmul.f32 %v5943_v42, %v7799_v7 }
 0x752   : > { %8746 = vst [vmem:[#allocation18_spill] sm:$0xff] %v7978_v11  ;;  %v7985_v6 = vpop.eup %5946  ;;  %3219 = vadd.xlane.f32.xlu1 %v3218_v44  ;;  %v3112_v44 = vsub.f32 %v7670_v17, %v3079_v50  ;;  %v3116_v17 = vsub.f32 %v7713_v36, %v7952_v23 }
 0x753   : > { %v2347_v54 = vpack.c.bf16 %v2327_v49, %v2325_v51  ;;  %v2348_v55 = vpack.c.bf16 %v2328_v20, %v2326_v0  ;;  %v3209_v5 = vadd.f32 %v7985_v6, %v7982_v25  ;;  %v8001_v7 = vpop.eup %5948  ;;  %v8750_v0 = vld [vmem:[#allocation24_spill] sm:$0xff] }
 0x754   : > { %v8003_v40 = vpop.eup %5950  ;;  %v3178_v36 = vmul.f32 1.442695, %v3116_v17 }
 0x755   : > { %2514 = vmatmul.bf16.gmra.mxu0 %v2347_v54  ;;  %2563 = vmatmul.bf16.gmra.mxu1 %v2348_v55  ;;  %v3212_v29 = vadd.f32 %v8003_v40, %v8001_v7  ;;  %v5953_v14 = vpop.eup %5952  ;;  %v3113_v54 = vsub.f32 %v7697_v1, %v3079_v50 }
 0x756   : > { %v7992_v16 = vpop.f32.mrf.mxu0  ;;  %3210 = vadd.xlane.f32.xlu2 %v3209_v5  ;;  %v2329_v51 = vmul.f32 %v5953_v14, %v7695_v21  ;;  %v2330_v20 = vmul.f32 %v5953_v14, %v8750_v0  ;;  %v3170_v21 = vmul.f32 1.442695, %v3112_v44  ;;  %v3184_v14 = vpop.xlane.xlu0 %3183  ;;  %v8754_v44 = vld [vmem:[#allocation28_spill] sm:$0xff] }
 0x757   : > { %8747 = vst [vmem:[#allocation21_spill] sm:$0xff] %v7992_v16  ;;  %v7994_v26 = vpop.f32.mrf.mxu1  ;;  %v3172_v1 = vmul.f32 1.442695, %v3113_v54  ;;  %v8772_v16 = vld [vmem:[#allocation11_spill] sm:$0xff] }
 0x758   : > { %8748 = vst [vmem:[#allocation9_spill] sm:$0xff] %v7994_v26  ;;  %v2282_v3 = vpop.xlane.xlu2 %2281  ;;  %v4338_v4 = vpop.permute.xlu1 %4337 }
 0x759   : > { %5954 = vrcp.f32 %v2282_v3  ;;  %4416 = vmatpush.bf16.msrb.mxu1 %v4338_v4 }
 0x75a   : > { %5956 = vpow2.f32 %v3150_v27 }
 0x75b   : > { %5958 = vpow2.f32 %v3152_v13 }
 0x75c   : > { %5960 = vrcp.f32 %v7943_v47 }
 0x75e   : > { %v2495_v56 = vpop.f32.mrf.mxu0  ;;  %3213 = vadd.xlane.f32.xlu2 %v3212_v29 }
 0x75f   : > { %v2544_v2 = vpop.f32.mrf.mxu1  ;;  %v5955_v31 = vpop.eup %5954 }
 0x760   : > { %v8009_v42 = vadd.f32 %v2544_v2, %v2495_v56  ;;  %v3082_v49 = vpop.xlane.xlu2 %3081  ;;  %v2331_v55 = vmul.f32 %v5955_v31, %v7837_v8  ;;  %v2332_v5 = vmul.f32 %v5955_v31, %v7841_v59  ;;  %v8024_v29 = vpop.eup %5956  ;;  %v4027_v2 = vsub.f32 %v7741_v58, %v7972_v62 }
 0x761   : > { %v3114_v15 = vsub.f32 %v7689_v37, %v3082_v49  ;;  %v3115_v24 = vsub.f32 %v7719_v35, %v3082_v49  ;;  %v8751_v35 = vld [vmem:[#allocation27_spill] sm:$0xff]  ;;  %v8030_v47 = vpop.eup %5958  ;;  %v4028_v49 = vsub.f32 %v8754_v44, %v7972_v62  ;;  %v5636_v44 = vld [vmem:[#allocation4 + $0x40] sm:$0xff] }
 0x762   : > { %8749 = vst [vmem:[#allocation16_spill] sm:$0xff] %v8009_v42  ;;  %v3117_v3 = vsub.f32 %v8751_v35, %v7952_v23  ;;  %v2349_v46 = vpack.c.bf16 %v2331_v55, %v2329_v51  ;;  %v2350_v27 = vpack.c.bf16 %v2332_v5, %v2330_v20  ;;  %v5961_v13 = vpop.eup %5960  ;;  %v3206_v4 = vadd.f32 %v8030_v47, %v8024_v29  ;;  %v8756_v55 = vld [vmem:[#allocation25_spill] sm:$0xff]  ;;  %v8757_v35 = vld [vmem:[#allocation26_spill] sm:$0xff] }
 0x763   : > { %v3174_v22 = vmul.f32 1.442695, %v3114_v15  ;;  %v3176_v37 = vmul.f32 1.442695, %v3115_v24  ;;  %v4059_v54 = vmul.f32 1.442695, %v4027_v2  ;;  %v2333_v5 = vmul.f32 %v5961_v13, %v8756_v55 }
 0x764   : > { %v3180_v50 = vmul.f32 1.442695, %v3117_v3  ;;  %v2334_v3 = vmul.f32 %v5961_v13, %v8757_v35  ;;  %v5637_v2 = vld [vmem:[#allocation4 + $0x48] sm:$0xff] }
 0x765   : > { %5962 = vpow2.f32 %v3174_v22  ;;  %2519 = vmatmul.bf16.gmra.mxu0 %v2349_v46  ;;  %2568 = vmatmul.bf16.gmra.mxu1 %v2350_v27  ;;  %v4061_v22 = vmul.f32 1.442695, %v4028_v49  ;;  %v8074_v49 = vpop.f32.mrf.mxu3 }
 0x766   : > { %5964 = vpow2.f32 %v3176_v37  ;;  %v8026_v8 = vpop.f32.mrf.mxu0 }
 0x767   : > { %8752 = vst [vmem:[#allocation7_spill] sm:$0xff] %v8026_v8  ;;  %v8028_v59 = vpop.f32.mrf.mxu1  ;;  %5966 = vpow2.f32 %v3170_v21 }
 0x768   : > { %8753 = vst [vmem:[#allocation12_spill] sm:$0xff] %v8028_v59  ;;  %v2288_v23 = vpop.xlane.xlu2 %2287 }
 0x769   : > { %5968 = vrcp.f32 %v2288_v23 }
 0x76a   : > { %5970 = vpow2.f32 %v3172_v1  ;;  %v8060_v1 = vpop.xlane.xlu0 %3983 }
 0x76b   : > { %v8032_v56 = vpop.eup %5962  ;;  %5972 = vpow2.f32 %v3178_v36 }
 0x76c   : > { %v8038_v31 = vpop.eup %5964  ;;  %5974 = vpow2.f32 %v3180_v50 }
 0x76d   : > { %3207 = vadd.xlane.f32.xlu0 %v3206_v4  ;;  %v3224_v15 = vadd.f32 %v8038_v31, %v8032_v56  ;;  %v8044_v24 = vpop.eup %5966  ;;  %5976 = vpow2.f32 %v4059_v54 }
 0x76e   : > { %v2500_v51 = vpop.f32.mrf.mxu0  ;;  %5978 = vpow2.f32 %v4061_v22 }
 0x76f   : > { %v2549_v0 = vpop.f32.mrf.mxu1  ;;  %v5969_v20 = vpop.eup %5968  ;;  %3225 = vadd.xlane.f32.xlu1 %v3224_v15  ;;  %5980 = vrcp.f32 %v3184_v14 }
 0x770   : > { %v8046_v58 = vadd.f32 %v2549_v0, %v2500_v51  ;;  %v8049_v17 = vpop.eup %5970  ;;  %v8051_v37 = vpop.xlane.xlu2 %3989  ;;  %v2335_v62 = vmul.f32 %v5969_v20, %v7870_v18  ;;  %v2336_v21 = vmul.f32 %v5969_v20, %v7872_v34  ;;  %5982 = vrcp.f32 %v7996_v33 }
 0x771   : > { %v8056_v46 = vpop.eup %5972  ;;  %v3221_v23 = vadd.f32 %v8049_v17, %v8044_v24  ;;  %v8080_v0 = vpop.f32.mrf.mxu2 }
 0x772   : > { %8755 = vst [vmem:[#allocation10_spill] sm:$0xff] %v8046_v58  ;;  %v8058_v27 = vpop.eup %5974  ;;  %v2351_v36 = vpack.c.bf16 %v2335_v62, %v2333_v5  ;;  %v2352_v50 = vpack.c.bf16 %v2336_v21, %v2334_v3  ;;  %v8076_v15 = vpop.xlane.xlu0 %3986  ;;  %v8758_v5 = vld [vmem:[#allocation30_spill] sm:$0xff]  ;;  %v8759_v62 = vld [vmem:[#allocation31_spill] sm:$0xff] }
 0x773   : > { %v3227_v18 = vadd.f32 %v8058_v27, %v8056_v46  ;;  %v8069_v13 = vpop.eup %5976 }
 0x774   : > { %v8072_v4 = vpop.eup %5978 }
 0x775   : > { %3222 = vadd.xlane.f32.xlu0 %v3221_v23  ;;  %2524 = vmatmul.bf16.gmra.mxu0 %v2351_v36  ;;  %v5981_v51 = vpop.eup %5980  ;;  %v4123_v14 = vadd.f32 %v8072_v4, %v8069_v13  ;;  %v8087_v23 = vpop.f32.mrf.mxu3 }
 0x776   : > { %2573 = vmatmul.bf16.gmra.mxu1 %v2352_v50  ;;  %4333 = vrot.lane.b32.xlu2 %v5637_v2, %s6156_s30  ;;  %v5983_v20 = vpop.eup %5982  ;;  %v3246_v54 = vmul.f32 %v5981_v51, %v7803_v30  ;;  %v3247_v33 = vmul.f32 %v5981_v51, %v7809_v52  ;;  %v5628_v50 = vld [vmem:[#allocation4] sm:$0xff] }
 0x777   : > { %3228 = vadd.xlane.f32.xlu1 %v3227_v18  ;;  %v3248_v22 = vmul.f32 %v5983_v20, %v8758_v5  ;;  %v3249_v35 = vmul.f32 %v5983_v20, %v8759_v62 }
 0x778   : > { %v8067_v34 = vpop.xlane.xlu2 %3992 }
 0x779   : > { %v3278_v21 = vpack.c.bf16 %v3248_v22, %v3246_v54  ;;  %v3279_v36 = vpack.c.bf16 %v3249_v35, %v3247_v33  ;;  %v8089_v18 = vpop.f32.mrf.mxu2 }
 0x77a   : > { %v3193_v2 = vpop.xlane.xlu0 %3192 }
 0x77e   : > { %4331 = vrot.lane.b32.xlu2 %v5636_v44, %s6156_s30 }
 0x77f   : > { %4124 = vadd.xlane.f32.xlu1 %v4123_v14  ;;  %v8092_v14 = vpop.f32.mrf.mxu3 }
 0x780   : > { %v3196_v55 = vpop.xlane.xlu2 %3195 }
 0x781   : > { %v8096_v33 = vpop.f32.mrf.mxu2 }
 0x783   : > { %v3190_v3 = vpop.xlane.xlu1 %3189 }
 0x784   : > { %5984 = vrcp.f32 %v3190_v3 }
 0x785   : > { %3430 = vmatmul.bf16.vlgmr.msra.gmra.mxu0 %v3278_v21  ;;  %5986 = vrcp.f32 %v3193_v2  ;;  %v5629_v21 = vld [vmem:[#allocation4 + $0x8] sm:$0xff]  ;;  %v8760_v2 = vld [vmem:[#allocation29_spill] sm:$0xff] }
 0x786   : > { %3479 = vmatmul.bf16.vlgmr.msra.gmra.mxu1 %v3279_v36 }
 0x787   : > { %v8101_v36 = vpop.f32.mrf.mxu3 }
 0x788   : > { %v4320_v30 = vpop.permute.xlu2 %4319 }
 0x789   : > { %4315 = vrot.lane.b32.xlu0 %v5628_v50, %s6156_s30  ;;  %4368 = vmatpush.bf16.msrb.mxu0 %v4320_v30  ;;  %v4030_v30 = vsub.f32 %v8760_v2, %v8060_v1 }
 0x78a   : > { %v5985_v44 = vpop.eup %5984 }
 0x78b   : > { %v3996_v52 = vpop.xlane.xlu1 %3995  ;;  %v5987_v51 = vpop.eup %5986  ;;  %v3250_v20 = vmul.f32 %v5985_v44, %v7898_v57  ;;  %v3251_v54 = vmul.f32 %v5985_v44, %v7900_v38 }
 0x78c   : > { %v3252_v5 = vmul.f32 %v5987_v51, %v7856_v9  ;;  %v3253_v22 = vmul.f32 %v5987_v51, %v7858_v60  ;;  %v8103_v57 = vpop.f32.mrf.mxu2  ;;  %v3999_v38 = vpop.xlane.xlu0 %3998  ;;  %v4029_v9 = vsub.f32 %v7763_v28, %v8060_v1 }
 0x78e   : > { %v3280_v62 = vpack.c.bf16 %v3252_v5, %v3250_v20  ;;  %v3281_v35 = vpack.c.bf16 %v3253_v22, %v3251_v54  ;;  %v4063_v20 = vmul.f32 1.442695, %v4029_v9  ;;  %v4065_v22 = vmul.f32 1.442695, %v4030_v30  ;;  %v8762_v9 = vld [vmem:[#allocation14_spill] sm:$0xff] }
 0x78f   : > { %v8113_v5 = vpop.f32.mrf.mxu3 }
 0x793   : > { %v3199_v3 = vpop.xlane.xlu1 %3198 }
 0x794   : > { %5988 = vrcp.f32 %v3199_v3  ;;  %v8117_v1 = vpop.f32.mrf.mxu2 }
 0x795   : > { %3435 = vmatmul.bf16.gmra.mxu0 %v3280_v62  ;;  %5990 = vrcp.f32 %v3196_v55  ;;  %v4037_v62 = vsub.f32 %v7860_v41, %v3996_v52  ;;  %v8761_v41 = vld [vmem:[#allocation32_spill] sm:$0xff] }
 0x796   : > { %3484 = vmatmul.bf16.gmra.mxu1 %v3281_v35  ;;  %5992 = vpow2.f32 %v4063_v20 }
 0x798   : > { %4317 = vrot.lane.b32.xlu1 %v5629_v21, %s6156_s30  ;;  %v4038_v21 = vsub.f32 %v7854_v61, %v3996_v52  ;;  %v4039_v61 = vsub.f32 %v8762_v9, %v3999_v38  ;;  %v8124_v52 = vpop.f32.mrf.mxu0  ;;  %v8770_v9 = vld [vmem:[#allocation20_spill] sm:$0xff] }
 0x799   : > { %8763 = vst [vmem:[#allocation19_spill] sm:$0xff] %v8124_v52 }
 0x79a   : > { %v5989_v50 = vpop.eup %5988 }
 0x79b   : > { %v5991_v60 = vpop.eup %5990  ;;  %v3256_v44 = vmul.f32 %v5989_v50, %v7914_v53  ;;  %v3257_v51 = vmul.f32 %v5989_v50, %v7916_v19  ;;  %v4006_v53 = vmax.f32 %v8089_v18, %v8087_v23  ;;  %v3202_v19 = vpop.xlane.xlu1 %3201  ;;  %v4031_v50 = vsub.f32 %v8761_v41, %v8076_v15 }
 0x79c   : > { %v3254_v55 = vmul.f32 %v5991_v60, %v7894_v48  ;;  %v3255_v54 = vmul.f32 %v5991_v60, %v7896_v32  ;;  %v4079_v48 = vmul.f32 1.442695, %v4037_v62  ;;  %v4081_v32 = vmul.f32 1.442695, %v4038_v21  ;;  %v8126_v60 = vpop.f32.mrf.mxu1  ;;  %v8128_v2 = vpop.eup %5992  ;;  %v8767_v21 = vld [vmem:[#allocation34_spill] sm:$0xff] }
 0x79d   : > { %8764 = vst [vmem:[#allocation22_spill] sm:$0xff] %v8126_v60 }
 0x79e   : > { %v3282_v28 = vpack.c.bf16 %v3256_v44, %v3254_v55  ;;  %v3283_v3 = vpack.c.bf16 %v3257_v51, %v3255_v54  ;;  %v8765_v44 = vld [vmem:[#allocation8_spill] sm:$0xff]  ;;  %v4009_v55 = vmax.f32 %v8096_v33, %v8092_v14  ;;  %v8135_v54 = vpop.f32.mrf.mxu3 }
 0x79f   : > { %v4040_v51 = vsub.f32 %v8765_v44, %v3999_v38  ;;  %v8768_v38 = vld [vmem:[#allocation35_spill] sm:$0xff] }
 0x7a1   : > { %v4085_v26 = vmul.f32 1.442695, %v4040_v51 }
 0x7a2   : > { %v3205_v35 = vpop.xlane.xlu0 %3204 }
 0x7a3   : > { %5994 = vrcp.f32 %v3205_v35  ;;  %v4067_v35 = vmul.f32 1.442695, %v4031_v50 }
 0x7a4   : > { %5996 = vpow2.f32 %v4065_v22  ;;  %v8766_v22 = vld [vmem:[#allocation33_spill] sm:$0xff] }
 0x7a5   : > { %3440 = vmatmul.bf16.gmra.mxu0 %v3282_v28  ;;  %5998 = vrcp.f32 %v3202_v19  ;;  %v4032_v62 = vsub.f32 %v8766_v22, %v8076_v15  ;;  %v8141_v19 = vpop.f32.mrf.mxu2  ;;  %v8771_v22 = vld [vmem:[#allocation6_spill] sm:$0xff] }
 0x7a6   : > { %3489 = vmatmul.bf16.gmra.mxu1 %v3283_v3  ;;  %6000 = vpow2.f32 %v4079_v48  ;;  %v4083_v3 = vmul.f32 1.442695, %v4039_v61  ;;  %v4034_v48 = vsub.f32 %v8768_v38, %v8051_v37 }
 0x7a7   : > { %4007 = vmax.xlane.f32.xlu2 %v4006_v53  ;;  %6002 = vpow2.f32 %v4081_v32  ;;  %v4033_v53 = vsub.f32 %v8767_v21, %v8051_v37  ;;  %v8769_v32 = vld [vmem:[#allocation17_spill] sm:$0xff]  ;;  %v4069_v61 = vmul.f32 1.442695, %v4032_v62  ;;  %v8774_v62 = vld [vmem:[#allocation15_spill] sm:$0xff] }
 0x7a8   : > { %6004 = vpow2.f32 %v4067_v35  ;;  %v4035_v35 = vsub.f32 %v8774_v62, %v8067_v34 }
 0x7a9   : > { %v5995_v30 = vpop.eup %5994  ;;  %6006 = vpow2.f32 %v4083_v3  ;;  %v4071_v37 = vmul.f32 1.442695, %v4033_v53 }
 0x7aa   : > { %v8131_v20 = vpop.eup %5996  ;;  %v3260_v41 = vmul.f32 %v5995_v30, %v8769_v32  ;;  %v3261_v44 = vmul.f32 %v5995_v30, %v8770_v9  ;;  %v4073_v30 = vmul.f32 1.442695, %v4034_v48  ;;  %6008 = vpow2.f32 %v4085_v26  ;;  %v8165_v48 = vpop.f32.mrf.mxu3 }
 0x7ab   : > { %v5999_v28 = vpop.eup %5998  ;;  %v4126_v15 = vadd.f32 %v8131_v20, %v8128_v2  ;;  %6010 = vpow2.f32 %v4069_v61  ;;  %v4003_v26 = vmax.f32 %v8080_v0, %v8074_v49 }
 0x7ac   : > { %v8149_v50 = vpop.eup %6000  ;;  %v3258_v21 = vmul.f32 %v5999_v28, %v8771_v22  ;;  %v3259_v11 = vmul.f32 %v5999_v28, %v8772_v16  ;;  %6012 = vpow2.f32 %v4071_v37  ;;  %v8775_v28 = vld [vmem:[#allocation13_spill] sm:$0xff] }
 0x7ad   : > { %v8153_v60 = vpop.eup %6002  ;;  %v4036_v3 = vsub.f32 %v8775_v28, %v8067_v34  ;;  %6014 = vpow2.f32 %v4073_v30 }
 0x7ae   : > { %v3284_v32 = vpack.c.bf16 %v3260_v41, %v3258_v21  ;;  %v3285_v9 = vpack.c.bf16 %v3261_v44, %v3259_v11  ;;  %v4138_v16 = vadd.f32 %v8153_v60, %v8149_v50  ;;  %v8163_v53 = vpop.eup %6004  ;;  %v8171_v41 = vpop.f32.mrf.mxu2  ;;  %v4075_v44 = vmul.f32 1.442695, %v4035_v35 }
 0x7af   : > { %4010 = vmax.xlane.f32.xlu2 %v4009_v55  ;;  %v8167_v11 = vpop.eup %6006  ;;  %v4077_v61 = vmul.f32 1.442695, %v4036_v3 }
 0x7b0   : > { %6016 = vpow2.f32 %v4075_v44 }
 0x7b1   : > { %v2505_v55 = vpop.f32.mrf.mxu0  ;;  %v2554_v38 = vpop.f32.mrf.mxu1  ;;  %6018 = vpow2.f32 %v4077_v61 }
 0x7b2   : > { %v8155_v51 = vadd.f32 %v2554_v38, %v2505_v55 }
 0x7b3   : > { %4127 = vadd.xlane.f32.xlu0 %v4126_v15  ;;  %v8173_v15 = vpop.eup %6008 }
 0x7b4   : > { %8773 = vst [vmem:[#allocation23_spill] sm:$0xff] %v8155_v51  ;;  %v4141_v55 = vadd.f32 %v8173_v15, %v8167_v11 }
 0x7b5   : > { %v4336_v52 = vpop.permute.xlu0 %4335  ;;  %3445 = vmatmul.bf16.gmra.mxu0 %v3284_v32  ;;  %8776 = vst [vmem:[#allocation24_spill] sm:$0xff] %v8173_v15 }
 0x7b6   : > { %3494 = vmatmul.bf16.gmra.mxu1 %v3285_v9  ;;  %v8191_v9 = vpop.f32.mrf.mxu3 }
 0x7b7   : > { %4417 = vmatpush.bf16.msrb.mxu1 %v4336_v52  ;;  %4139 = vadd.xlane.f32.xlu2 %v4138_v16  ;;  %v8179_v52 = vpop.eup %6010 }
 0x7b8   : > { %v8181_v21 = vpop.eup %6012  ;;  %v4129_v38 = vadd.f32 %v8179_v52, %v8163_v53 }
 0x7b9   : > { %v8175_v22 = vpop.f32.mrf.mxu0  ;;  %v8177_v34 = vpop.f32.mrf.mxu1 }
 0x7ba   : > { %8777 = vst [vmem:[#allocation27_spill] sm:$0xff] %v8175_v22  ;;  %v8183_v37 = vpop.eup %6014 }
 0x7bb   : > { %8778 = vst [vmem:[#allocation28_spill] sm:$0xff] %v8177_v34  ;;  %4004 = vmax.xlane.f32.xlu0 %v4003_v26  ;;  %v4132_v32 = vadd.f32 %v8183_v37, %v8181_v21  ;;  %v8193_v16 = vpop.eup %6016  ;;  %v8199_v26 = vpop.f32.mrf.mxu2 }
 0x7bc   : > { %v8197_v3 = vpop.eup %6018  ;;  %v4024_v44 = vmax.f32 %v8199_v26, %v8191_v9 }
 0x7bf   : > { %4142 = vadd.xlane.f32.xlu2 %v4141_v55 }
 0x7c1   : > { %v4002_v30 = vpop.xlane.xlu2 %4001  ;;  %v2510_v62 = vpop.f32.mrf.mxu0 }
 0x7c2   : > { %4130 = vadd.xlane.f32.xlu1 %v4129_v38  ;;  %v2559_v35 = vpop.f32.mrf.mxu1  ;;  %v4041_v61 = vsub.f32 %v7966_v63, %v4002_v30  ;;  %v4042_v55 = vsub.f32 %v7964_v10, %v4002_v30  ;;  %v4135_v38 = vadd.f32 %v8197_v3, %v8193_v16  ;;  %v4018_v10 = vmax.f32 %v8141_v19, %v8135_v54 }
 0x7c3   : > { %4133 = vadd.xlane.f32.xlu0 %v4132_v32  ;;  %v8195_v28 = vadd.f32 %v2559_v35, %v2510_v62  ;;  %v4012_v32 = vmax.f32 %v8103_v57, %v8101_v36  ;;  %v4015_v63 = vmax.f32 %v8117_v1, %v8113_v5 }
 0x7c4   : > { %v4087_v35 = vmul.f32 1.442695, %v4041_v61 }
 0x7c5   : > { %8779 = vst [vmem:[#allocation25_spill] sm:$0xff] %v8195_v28  ;;  %v4089_v28 = vmul.f32 1.442695, %v4042_v55  ;;  %v4021_v55 = vmax.f32 %v8171_v41, %v8165_v48 }
 0x7c6   : > { %6020 = vpow2.f32 %v4087_v35 }
 0x7c7   : > { %4025 = vmax.xlane.f32.xlu2 %v4024_v44  ;;  %6022 = vpow2.f32 %v4089_v28 }
 0x7c9   : > { %v3211_v62 = vpop.xlane.xlu2 %3210  ;;  %v8209_v34 = vpop.f32.mrf.mxu0 }
 0x7ca   : > { %4136 = vadd.xlane.f32.xlu1 %v4135_v38  ;;  %8780 = vst [vmem:[#allocation26_spill] sm:$0xff] %v8209_v34  ;;  %v8211_v22 = vpop.f32.mrf.mxu1  ;;  %6024 = vrcp.f32 %v3211_v62 }
 0x7cb   : > { %8781 = vst [vmem:[#allocation30_spill] sm:$0xff] %v8211_v22  ;;  %4013 = vmax.xlane.f32.xlu0 %v4012_v32 }
 0x7cc   : > { %v8219_v38 = vpop.eup %6020 }
 0x7cd   : > { %v8221_v22 = vpop.eup %6022 }
 0x7ce   : > { %v4144_v28 = vadd.f32 %v8221_v22, %v8219_v38 }
 0x7d0   : > { %v6025_v59 = vpop.eup %6024 }
 0x7d1   : > { %v3214_v30 = vpop.xlane.xlu2 %3213 }
 0x7d2   : > { %4019 = vmax.xlane.f32.xlu1 %v4018_v10  ;;  %v2515_v44 = vpop.f32.mrf.mxu0  ;;  %v2564_v51 = vpop.f32.mrf.mxu1 }
 0x7d3   : > { %4016 = vmax.xlane.f32.xlu0 %v4015_v63  ;;  %v8217_v61 = vadd.f32 %v2564_v51, %v2515_v44  ;;  %v3217_v51 = vpop.xlane.xlu1 %3216 }
 0x7d5   : > { %8782 = vst [vmem:[#allocation31_spill] sm:$0xff] %v8217_v61 }
 0x7d9   : > { %v4334_v32 = vpop.permute.xlu2 %4333 }
 0x7da   : > { %4022 = vmax.xlane.f32.xlu1 %v4021_v55  ;;  %v8227_v35 = vpop.f32.mrf.mxu0  ;;  %v8229_v10 = vpop.f32.mrf.mxu1  ;;  %4418 = vmatpush.bf16.msrb.mxu1 %v4334_v32  ;;  %v3265_v32 = vmul.f32 %v6025_v59, %v7985_v6 }
 0x7db   : > { %8783 = vst [vmem:[#allocation29_spill] sm:$0xff] %v8227_v35  ;;  %4145 = vadd.xlane.f32.xlu0 %v4144_v28  ;;  %v3220_v8 = vpop.xlane.xlu1 %3219  ;;  %v3264_v35 = vmul.f32 %v6025_v59, %v7982_v25 }
 0x7dc   : > { %8784 = vst [vmem:[#allocation32_spill] sm:$0xff] %v8229_v10 }
 0x7e0   : > { %v3208_v63 = vpop.xlane.xlu0 %3207 }
 0x7e1   : > { %6026 = vrcp.f32 %v3208_v63  ;;  %v4332_v44 = vpop.permute.xlu2 %4331 }
 0x7e2   : > { %v2520_v34 = vpop.f32.mrf.mxu0  ;;  %v2569_v61 = vpop.f32.mrf.mxu1  ;;  %4419 = vmatpush.bf16.msrb.mxu1 %v4332_v44  ;;  %6028 = vrcp.f32 %v3214_v30 }
 0x7e3   : > { %v8231_v58 = vadd.f32 %v2569_v61, %v2520_v34  ;;  %v3226_v34 = vpop.xlane.xlu1 %3225  ;;  %6030 = vrcp.f32 %v3217_v51 }
 0x7e5   : > { %8785 = vst [vmem:[#allocation14_spill] sm:$0xff] %v8231_v58 }
 0x7e7   : > { %v6027_v55 = vpop.eup %6026 }
 0x7e8   : > { %v3262_v42 = vmul.f32 %v6027_v55, %v8024_v29  ;;  %v3263_v28 = vmul.f32 %v6027_v55, %v8030_v47  ;;  %v6029_v61 = vpop.eup %6028  ;;  %v3223_v55 = vpop.xlane.xlu0 %3222 }
 0x7e9   : > { %v6031_v25 = vpop.eup %6030  ;;  %v3266_v47 = vmul.f32 %v6029_v61, %v8001_v7  ;;  %v3267_v6 = vmul.f32 %v6029_v61, %v8003_v40  ;;  %6032 = vrcp.f32 %v3223_v55 }
 0x7ea   : > { %v3286_v62 = vpack.c.bf16 %v3264_v35, %v3262_v42  ;;  %v3287_v10 = vpack.c.bf16 %v3265_v32, %v3263_v28  ;;  %v8237_v63 = vpop.f32.mrf.mxu0  ;;  %v8239_v15 = vpop.f32.mrf.mxu1  ;;  %v3268_v59 = vmul.f32 %v6031_v25, %v7958_v45  ;;  %v3269_v35 = vmul.f32 %v6031_v25, %v7960_v12 }
 0x7eb   : > { %v3229_v42 = vpop.xlane.xlu1 %3228  ;;  %6034 = vrcp.f32 %v3220_v8 }
 0x7ec   : > { %3450 = vmatmul.bf16.gmra.mxu0 %v3286_v62  ;;  %3499 = vmatmul.bf16.gmra.mxu1 %v3287_v10  ;;  %v3288_v10 = vpack.c.bf16 %v3268_v59, %v3266_v47  ;;  %v3289_v30 = vpack.c.bf16 %v3269_v35, %v3267_v6  ;;  %6036 = vrcp.f32 %v3229_v42 }
 0x7ed   : > { %6038 = vrcp.f32 %v3226_v34 }
 0x7ef   : > { %v6033_v7 = vpop.eup %6032 }
 0x7f0   : > { %v3272_v12 = vmul.f32 %v6033_v7, %v8044_v24 }
 0x7f1   : > { %v6035_v45 = vpop.eup %6034 }
 0x7f2   : > { %v2525_v44 = vpop.f32.mrf.mxu0  ;;  %v3271_v25 = vmul.f32 %v6035_v45, %v7976_v39  ;;  %v6037_v24 = vpop.eup %6036 }
 0x7f3   : > { %v2574_v29 = vpop.f32.mrf.mxu1  ;;  %v4125_v32 = vpop.xlane.xlu1 %4124 }
 0x7f4   : > { %v8241_v58 = vadd.f32 %v2574_v29, %v2525_v44  ;;  %v3273_v44 = vmul.f32 %v6033_v7, %v8049_v17  ;;  %v3270_v29 = vmul.f32 %v6035_v45, %v7974_v43  ;;  %v6039_v39 = vpop.eup %6038 }
 0x7f5   : > { %v3274_v7 = vmul.f32 %v6039_v39, %v8032_v56 }
 0x7f6   : > { %v3290_v6 = vpack.c.bf16 %v3272_v12, %v3270_v29  ;;  %v3291_v59 = vpack.c.bf16 %v3273_v44, %v3271_v25 }
 0x7fa   : > { %v8247_v28 = vpop.f32.mrf.mxu0 }
 0x7fb   : > { %v8249_v51 = vpop.f32.mrf.mxu1  ;;  %v4316_v55 = vpop.permute.xlu0 %4315 }
 0x7fc   : > { %3455 = vmatmul.bf16.gmra.mxu0 %v3288_v10  ;;  %3504 = vmatmul.bf16.gmra.mxu1 %v3289_v30  ;;  %v3276_v10 = vmul.f32 %v6037_v24, %v8056_v46  ;;  %v3277_v30 = vmul.f32 %v6037_v24, %v8058_v27 }
 0x802   : > { %v3431_v62 = vpop.f32.mrf.mxu0 }
 0x803   : > { %v3480_v40 = vpop.f32.mrf.mxu1 }
 0x804   : > { %v8251_v61 = vadd.f32 %v3480_v40, %v3431_v62  ;;  %v3275_v62 = vmul.f32 %v6039_v39, %v8038_v31  ;;  %v3292_v40 = vpack.c.bf16 %v3276_v10, %v3274_v7 }
 0x806   : > { %v3293_v45 = vpack.c.bf16 %v3277_v30, %v3275_v62 }
 0x80a   : > { %v4318_v47 = vpop.permute.xlu1 %4317  ;;  %v8257_v35 = vpop.f32.mrf.mxu0 }
 0x80b   : > { %v8259_v8 = vpop.f32.mrf.mxu1  ;;  %4369 = vmatpush.bf16.msrb.mxu0 %v4318_v47 }
 0x80c   : > { %3460 = vmatmul.bf16.gmra.mxu0 %v3290_v6  ;;  %3509 = vmatmul.bf16.gmra.mxu1 %v3291_v59 }
 0x80f   : > { %4370 = vmatpush.bf16.msrb.mxu0 %v4316_v55 }
 0x812   : > { %v8261_v17 = vpop.f32.mrf.mxu0 }
 0x813   : > { %v8263_v43 = vpop.f32.mrf.mxu1 }
 0x81a   : > { %v8269_v42 = vpop.f32.mrf.mxu0  ;;  %v4008_v12 = vpop.xlane.xlu2 %4007 }
 0x81b   : > { %v8271_v34 = vpop.f32.mrf.mxu1  ;;  %v4045_v44 = vsub.f32 %v8089_v18, %v4008_v12  ;;  %v4046_v29 = vsub.f32 %v8087_v23, %v4008_v12 }
 0x81c   : > { %3465 = vmatmul.bf16.gmra.mxu0 %v3292_v40  ;;  %3514 = vmatmul.bf16.gmra.mxu1 %v3293_v45 }
 0x81d   : > { %v4095_v46 = vmul.f32 1.442695, %v4045_v44  ;;  %v4097_v25 = vmul.f32 1.442695, %v4046_v29 }
 0x81f   : > { %6040 = vpow2.f32 %v4095_v46 }
 0x820   : > { %6042 = vpow2.f32 %v4097_v25 }
 0x821   : > { %6044 = vrcp.f32 %v4125_v32 }
 0x822   : > { %v8275_v56 = vpop.f32.mrf.mxu0  ;;  %v4011_v27 = vpop.xlane.xlu2 %4010 }
 0x823   : > { %v8277_v31 = vpop.f32.mrf.mxu1  ;;  %v4047_v47 = vsub.f32 %v8096_v33, %v4011_v27  ;;  %v4048_v6 = vsub.f32 %v8092_v14, %v4011_v27 }
 0x825   : > { %v8281_v55 = vpop.eup %6040  ;;  %v4099_v18 = vmul.f32 1.442695, %v4047_v47  ;;  %v4101_v24 = vmul.f32 1.442695, %v4048_v6 }
 0x826   : > { %v4128_v59 = vpop.xlane.xlu0 %4127  ;;  %v8283_v23 = vpop.eup %6042 }
 0x827   : > { %6046 = vrcp.f32 %v4128_v59  ;;  %v4150_v39 = vadd.f32 %v8283_v23, %v8281_v55  ;;  %v6045_v10 = vpop.eup %6044 }
 0x828   : > { %6048 = vpow2.f32 %v4099_v18  ;;  %v4187_v30 = vmul.f32 %v6045_v10, %v8069_v13  ;;  %v4188_v7 = vmul.f32 %v6045_v10, %v8072_v4 }
 0x829   : > { %6050 = vpow2.f32 %v4101_v24  ;;  %4151 = vadd.xlane.f32.xlu1 %v4150_v39 }
 0x82a   : > { %v8287_v32 = vpop.f32.mrf.mxu0  ;;  %v4140_v44 = vpop.xlane.xlu2 %4139 }
 0x82b   : > { %v8289_v33 = vpop.f32.mrf.mxu1 }
 0x82d   : > { %v6047_v14 = vpop.eup %6046 }
 0x82e   : > { %v4189_v62 = vmul.f32 %v6047_v14, %v8128_v2  ;;  %v4190_v40 = vmul.f32 %v6047_v14, %v8131_v20  ;;  %v4005_v45 = vpop.xlane.xlu0 %4004  ;;  %v8295_v12 = vpop.eup %6048 }
 0x82f   : > { %v4043_v29 = vsub.f32 %v8080_v0, %v4005_v45  ;;  %v4044_v46 = vsub.f32 %v8074_v49, %v4005_v45  ;;  %v8299_v25 = vpop.eup %6050 }
 0x830   : > { %v4219_v27 = vpack.c.bf16 %v4189_v62, %v4187_v30  ;;  %v4220_v47 = vpack.c.bf16 %v4190_v40, %v4188_v7  ;;  %v4153_v4 = vadd.f32 %v8299_v25, %v8295_v12 }
 0x831   : > { %v4091_v6 = vmul.f32 1.442695, %v4043_v29  ;;  %v4093_v13 = vmul.f32 1.442695, %v4044_v46 }
 0x832   : > { %4371 = vmatmul.bf16.vlgmr.msrb.gmra.mxu0 %v4219_v27  ;;  %4420 = vmatmul.bf16.vlgmr.msrb.gmra.mxu1 %v4220_v47  ;;  %v3446_v2 = vpop.f32.mrf.mxu0  ;;  %v8307_v24 = vpop.xlane.xlu2 %4142 }
 0x833   : > { %6052 = vpow2.f32 %v4091_v6  ;;  %4154 = vadd.xlane.f32.xlu2 %v4153_v4  ;;  %v3495_v20 = vpop.f32.mrf.mxu1 }
 0x834   : > { %6054 = vpow2.f32 %v4093_v13  ;;  %v8303_v59 = vadd.f32 %v3495_v20, %v3446_v2 }
 0x835   : > { %v4131_v0 = vpop.xlane.xlu1 %4130 }
 0x836   : > { %6056 = vrcp.f32 %v4131_v0  ;;  %v4134_v49 = vpop.xlane.xlu0 %4133 }
 0x837   : > { %6058 = vrcp.f32 %v4134_v49 }
 0x838   : > { %6060 = vrcp.f32 %v4140_v44 }
 0x839   : > { %v8305_v18 = vpop.eup %6052 }
 0x83a   : > { %v8309_v39 = vpop.eup %6054 }
 0x83b   : > { %v4147_v10 = vadd.f32 %v8309_v39, %v8305_v18 }
 0x83c   : > { %v6057_v14 = vpop.eup %6056 }
 0x83d   : > { %v6059_v30 = vpop.eup %6058  ;;  %4148 = vadd.xlane.f32.xlu0 %v4147_v10  ;;  %v4137_v7 = vpop.xlane.xlu1 %4136  ;;  %v4191_v62 = vmul.f32 %v6057_v14, %v8163_v53  ;;  %v4192_v40 = vmul.f32 %v6057_v14, %v8179_v52 }
 0x83e   : > { %v4014_v45 = vpop.xlane.xlu0 %4013  ;;  %v4193_v29 = vmul.f32 %v6059_v30, %v8181_v21  ;;  %v4194_v46 = vmul.f32 %v6059_v30, %v8183_v37  ;;  %6062 = vrcp.f32 %v4137_v7  ;;  %v4026_v53 = vpop.xlane.xlu2 %4025 }
 0x83f   : > { %v4049_v27 = vsub.f32 %v8103_v57, %v4014_v45  ;;  %v4050_v47 = vsub.f32 %v8101_v36, %v4014_v45  ;;  %v4057_v21 = vsub.f32 %v8199_v26, %v4026_v53  ;;  %v6061_v36 = vpop.eup %6060  ;;  %v4058_v0 = vsub.f32 %v8191_v9, %v4026_v53 }
 0x840   : > { %v4221_v6 = vpack.c.bf16 %v4193_v29, %v4191_v62  ;;  %v4222_v13 = vpack.c.bf16 %v4194_v46, %v4192_v40  ;;  %v4197_v29 = vmul.f32 %v6061_v36, %v8149_v50 }
 0x841   : > { %v4103_v4 = vmul.f32 1.442695, %v4049_v27  ;;  %v4105_v2 = vmul.f32 1.442695, %v4050_v47 }
 0x842   : > { %4376 = vmatmul.bf16.gmra.mxu0 %v4221_v6  ;;  %4425 = vmatmul.bf16.gmra.mxu1 %v4222_v13  ;;  %v4198_v6 = vmul.f32 %v6061_v36, %v8153_v60 }
 0x843   : > { %6064 = vpow2.f32 %v4103_v4 }
 0x844   : > { %6066 = vpow2.f32 %v4105_v2  ;;  %v6063_v10 = vpop.eup %6062 }
 0x845   : > { %v4020_v52 = vpop.xlane.xlu1 %4019 }
 0x846   : > { %v4053_v37 = vsub.f32 %v8141_v19, %v4020_v52  ;;  %v4054_v57 = vsub.f32 %v8135_v54, %v4020_v52  ;;  %v4017_v20 = vpop.xlane.xlu0 %4016  ;;  %v4119_v19 = vmul.f32 1.442695, %v4057_v21  ;;  %v4121_v54 = vmul.f32 1.442695, %v4058_v0 }
 0x847   : > { %v4051_v44 = vsub.f32 %v8117_v1, %v4017_v20  ;;  %v4052_v49 = vsub.f32 %v8113_v5, %v4017_v20  ;;  %v4195_v1 = vmul.f32 %v6063_v10, %v8193_v16  ;;  %v4196_v5 = vmul.f32 %v6063_v10, %v8197_v3 }
 0x848   : > { %v4111_v14 = vmul.f32 1.442695, %v4053_v37  ;;  %v4113_v30 = vmul.f32 1.442695, %v4054_v57 }
 0x849   : > { %v8325_v7 = vpop.eup %6064  ;;  %v4107_v62 = vmul.f32 1.442695, %v4051_v44  ;;  %v4109_v40 = vmul.f32 1.442695, %v4052_v49  ;;  %v4223_v2 = vpack.c.bf16 %v4197_v29, %v4195_v1  ;;  %v4224_v3 = vpack.c.bf16 %v4198_v6, %v4196_v5  ;;  %v8787_v5 = vld [vmem:[#allocation16_spill] sm:$0xff]  ;;  %v8788_v29 = vld [vmem:[#allocation7_spill] sm:$0xff] }
 0x84a   : > { %v8327_v26 = vpop.eup %6066  ;;  %6068 = vpow2.f32 %v4111_v14  ;;  %v8786_v14 = vld [vmem:[#allocation24_spill] sm:$0xff] }
 0x84b   : > { %6070 = vpow2.f32 %v4113_v30  ;;  %v4156_v9 = vadd.f32 %v8327_v26, %v8325_v7 }
 0x84c   : > { %6072 = vpow2.f32 %v4107_v62 }
 0x84d   : > { %6074 = vpow2.f32 %v4109_v40  ;;  %4157 = vadd.xlane.f32.xlu0 %v4156_v9  ;;  %v4023_v45 = vpop.xlane.xlu1 %4022 }
 0x84e   : > { %6076 = vpow2.f32 %v4119_v19  ;;  %v4055_v46 = vsub.f32 %v8171_v41, %v4023_v45  ;;  %v4056_v27 = vsub.f32 %v8165_v48, %v4023_v45  ;;  %v4146_v47 = vpop.xlane.xlu0 %4145  ;;  %v3448_v19 = vpop.f32.mrf.mxu0  ;;  %v2581_v45 = vpack.c.bf16 %v8787_v5, %v8787_v5 }
 0x84f   : > { %6078 = vpow2.f32 %v4121_v54  ;;  %v3497_v54 = vpop.f32.mrf.mxu1 }
 0x850   : > { %v8337_v13 = vpop.eup %6068  ;;  %v4115_v4 = vmul.f32 1.442695, %v4055_v46  ;;  %v4117_v16 = vmul.f32 1.442695, %v4056_v27  ;;  %6080 = vrcp.f32 %v4146_v47  ;;  %v3486_v27 = vadd.f32 %v8263_v43, %v8261_v17 }
 0x851   : > { %v8339_v53 = vpop.eup %6070  ;;  %v3491_v17 = vadd.f32 %v8277_v31, %v8275_v56  ;;  %v3493_v56 = vadd.f32 %v8289_v33, %v8287_v32 }
 0x852   : > { %v8341_v52 = vpop.eup %6072  ;;  %6082 = vpow2.f32 %v4115_v4  ;;  %4381 = vmatmul.bf16.gmra.mxu0 %v4223_v2  ;;  %4430 = vmatmul.bf16.gmra.mxu1 %v4224_v3  ;;  %v4162_v50 = vadd.f32 %v8339_v53, %v8337_v13  ;;  %v8790_v4 = vld [vmem:[#allocation10_spill] sm:$0xff]  ;;  %v8791_v2 = vld [vmem:[#allocation19_spill] sm:$0xff] }
 0x853   : > { %v8345_v48 = vpop.eup %6074  ;;  %6084 = vpow2.f32 %v4117_v16  ;;  %v2583_v16 = vpack.c.bf16 %v8790_v4, %v8790_v4  ;;  %v8792_v3 = vld [vmem:[#allocation22_spill] sm:$0xff] }
 0x854   : > { %v8347_v60 = vpop.eup %6076  ;;  %4163 = vadd.xlane.f32.xlu2 %v4162_v50  ;;  %v4159_v41 = vadd.f32 %v8345_v48, %v8341_v52  ;;  %6086 = vrcp.f32 %v8307_v24  ;;  %v2552_v50 = vadd.f32 %v8792_v3, %v8791_v2 }
 0x855   : > { %v8351_v21 = vpop.eup %6078 }
 0x856   : > { %4160 = vadd.xlane.f32.xlu1 %v4159_v41  ;;  %v6081_v37 = vpop.eup %6080  ;;  %v4168_v44 = vadd.f32 %v8351_v21, %v8347_v60  ;;  %v3522_v41 = vpack.c.bf16 %v3486_v27, %v3486_v27 }
 0x857   : > { %v4201_v49 = vmul.f32 %v6081_v37, %v8219_v38  ;;  %v4202_v10 = vmul.f32 %v6081_v37, %v8221_v22  ;;  %v8789_v38 = vld [vmem:[#allocation12_spill] sm:$0xff]  ;;  %v2584_v37 = vpack.c.bf16 %v2552_v50, %v2552_v50 }
 0x858   : > { %v8354_v57 = vpop.eup %6082  ;;  %v2547_v46 = vadd.f32 %v8789_v38, %v8788_v29 }
 0x859   : > { %v8356_v20 = vpop.eup %6084 }
 0x85a   : > { %v4165_v36 = vadd.f32 %v8356_v20, %v8354_v57  ;;  %v6087_v0 = vpop.eup %6086 }
 0x85b   : > { %v4199_v24 = vmul.f32 %v6087_v0, %v8167_v11  ;;  %v4200_v30 = vmul.f32 %v6087_v0, %v8786_v14  ;;  %v2582_v11 = vpack.c.bf16 %v2547_v46, %v2547_v46  ;;  %v8794_v46 = vld [vmem:[#allocation25_spill] sm:$0xff] }
 0x85c   : > { %4166 = vadd.xlane.f32.xlu0 %v4165_v36  ;;  %v3488_v36 = vadd.f32 %v8271_v34, %v8269_v42  ;;  %v8793_v34 = vld [vmem:[#allocation23_spill] sm:$0xff] }
 0x85d   : > { %v4225_v62 = vpack.c.bf16 %v4201_v49, %v4199_v24  ;;  %v4226_v40 = vpack.c.bf16 %v4202_v10, %v4200_v30  ;;  %v3524_v10 = vpack.c.bf16 %v3491_v17, %v3491_v17  ;;  %v2585_v14 = vpack.c.bf16 %v8793_v34, %v8793_v34 }
 0x85e   : > { %4169 = vadd.xlane.f32.xlu1 %v4168_v44  ;;  %v3523_v44 = vpack.c.bf16 %v3488_v36, %v3488_v36 }
 0x862   : > { %4386 = vmatmul.bf16.gmra.mxu0 %v4225_v62  ;;  %4435 = vmatmul.bf16.gmra.mxu1 %v4226_v40  ;;  %v3525_v62 = vpack.c.bf16 %v3493_v56, %v3493_v56 }
 0x869   : > { %v3451_v9 = vpop.f32.mrf.mxu0  ;;  %v3500_v1 = vpop.f32.mrf.mxu1 }
 0x86a   : > { %v8370_v22 = vadd.f32 %v3500_v1, %v3451_v9  ;;  %v3498_v9 = vadd.f32 %v3497_v54, %v3448_v19  ;;  %v8795_v54 = vld [vmem:[#allocation31_spill] sm:$0xff] }
 0x86c   : > { %2615 = vrot.lane.b32.xlu2 %v2581_v45, %s6157_s6  ;;  %v3527_v45 = vpack.c.bf16 %v3498_v9, %v3498_v9 }
 0x870   : > { %2617 = vrot.lane.b32.xlu0 %v2582_v11, %s6157_s6  ;;  %v2587_v11 = vpack.c.bf16 %v8794_v46, %v8794_v46 }
 0x871   : > { %v3453_v47 = vpop.f32.mrf.mxu0  ;;  %v3502_v6 = vpop.f32.mrf.mxu1 }
 0x872   : > { %v3503_v32 = vadd.f32 %v3502_v6, %v3453_v47 }
 0x874   : > { %2619 = vrot.lane.b32.xlu2 %v2583_v16, %s6157_s6  ;;  %v3529_v33 = vpack.c.bf16 %v3503_v32, %v3503_v32  ;;  %v2589_v16 = vpack.c.bf16 %v8795_v54, %v8795_v54  ;;  %v8798_v32 = vld [vmem:[#allocation28_spill] sm:$0xff] }
 0x877   : > { %3556 = vrot.lane.b32.xlu1 %v3522_v41, %s6158_s7 }
 0x878   : > { %2621 = vrot.lane.b32.xlu0 %v2584_v37, %s6157_s6 }
 0x879   : > { %v3456_v43 = vpop.f32.mrf.mxu0  ;;  %v3505_v0 = vpop.f32.mrf.mxu1 }
 0x87a   : > { %v8387_v49 = vadd.f32 %v3505_v0, %v3456_v43 }
 0x87c   : > { %3558 = vrot.lane.b32.xlu2 %v3523_v44, %s6158_s7 }
 0x87f   : > { %3560 = vrot.lane.b32.xlu1 %v3524_v10, %s6158_s7 }
 0x881   : > { %v3458_v24 = vpop.f32.mrf.mxu0  ;;  %v3507_v42 = vpop.f32.mrf.mxu1 }
 0x882   : > { %v3508_v3 = vadd.f32 %v3507_v42, %v3458_v24 }
 0x884   : > { %2623 = vrot.lane.b32.xlu2 %v2585_v14, %s6157_s6  ;;  %v3531_v47 = vpack.c.bf16 %v3508_v3, %v3508_v3  ;;  %v8796_v14 = vld [vmem:[#allocation14_spill] sm:$0xff] }
 0x885   : > { %v2591_v56 = vpack.c.bf16 %v8796_v14, %v8796_v14 }
 0x889   : > { %v3461_v31 = vpop.f32.mrf.mxu0  ;;  %v3510_v30 = vpop.f32.mrf.mxu1 }
 0x88a   : > { %v8396_v40 = vadd.f32 %v3510_v30, %v3461_v31 }
 0x88c   : > { %3562 = vrot.lane.b32.xlu2 %v3525_v62, %s6158_s7 }
 0x891   : > { %v3463_v1 = vpop.f32.mrf.mxu0  ;;  %v3512_v5 = vpop.f32.mrf.mxu1 }
 0x892   : > { %v3513_v9 = vadd.f32 %v3512_v5, %v3463_v1 }
 0x894   : > { %3566 = vrot.lane.b32.xlu2 %v3527_v45, %s6158_s7 }
 0x899   : > { %v3466_v29 = vpop.f32.mrf.mxu0  ;;  %v3515_v38 = vpop.f32.mrf.mxu1 }
 0x89a   : > { %v8402_v27 = vadd.f32 %v3515_v38, %v3466_v29 }
 0x89c   : > { %2627 = vrot.lane.b32.xlu2 %v2587_v11, %s6157_s6  ;;  %v4152_v2 = vpop.xlane.xlu1 %4151  ;;  %v8797_v11 = vld [vmem:[#allocation27_spill] sm:$0xff] }
 0x89d   : > { %6088 = vrcp.f32 %v4152_v2 }
 0x8a1   : > { %v8406_v4 = vpop.f32.mrf.mxu0  ;;  %v8408_v19 = vpop.f32.mrf.mxu1 }
 0x8a3   : > { %v6089_v6 = vpop.eup %6088 }
 0x8a4   : > { %3570 = vrot.lane.b32.xlu2 %v3529_v33, %s6158_s7  ;;  %v4205_v44 = vmul.f32 %v6089_v6, %v8281_v55  ;;  %v4206_v34 = vmul.f32 %v6089_v6, %v8283_v23  ;;  %v2557_v33 = vadd.f32 %v8798_v32, %v8797_v11 }
 0x8a6   : > { %v4155_v62 = vpop.xlane.xlu2 %4154 }
 0x8ac   : > { %2631 = vrot.lane.b32.xlu2 %v2589_v16, %s6157_s6 }
 0x8af   : > { %v4372_v50 = vpop.f32.mrf.mxu0  ;;  %v4421_v41 = vpop.f32.mrf.mxu1 }
 0x8b0   : > { %v4149_v37 = vpop.xlane.xlu0 %4148  ;;  %v8413_v36 = vadd.f32 %v4421_v41, %v4372_v50 }
 0x8b1   : > { %6090 = vrcp.f32 %v4149_v37  ;;  %v2593_v37 = vpack.c.bf16 %v8241_v58, %v8241_v58 }
 0x8b2   : > { %6092 = vrcp.f32 %v4155_v62  ;;  %v8799_v62 = vld [vmem:[#allocation26_spill] sm:$0xff] }
 0x8b4   : > { %3574 = vrot.lane.b32.xlu2 %v3531_v47, %s6158_s7 }
 0x8b7   : > { %v6091_v17 = vpop.eup %6090  ;;  %v4374_v43 = vpop.f32.mrf.mxu0 }
 0x8b8   : > { %v4423_v0 = vpop.f32.mrf.mxu1  ;;  %v4203_v24 = vmul.f32 %v6091_v17, %v8305_v18  ;;  %v4204_v42 = vmul.f32 %v6091_v17, %v8309_v39  ;;  %v3533_v39 = vpack.c.bf16 %v3513_v9, %v3513_v9  ;;  %v6093_v23 = vpop.eup %6092  ;;  %v8800_v9 = vld [vmem:[#allocation30_spill] sm:$0xff] }
 0x8b9   : > { %v8417_v10 = vadd.f32 %v4423_v0, %v4374_v43  ;;  %v4207_v16 = vmul.f32 %v6093_v23, %v8295_v12  ;;  %v4208_v3 = vmul.f32 %v6093_v23, %v8299_v25  ;;  %v2586_v0 = vpack.c.bf16 %v2557_v33, %v2557_v33 }
 0x8ba   : > { %v4227_v31 = vpack.c.bf16 %v4205_v44, %v4203_v24  ;;  %v4228_v30 = vpack.c.bf16 %v4206_v34, %v4204_v42  ;;  %v3518_v12 = vadd.f32 %v8408_v19, %v8406_v4  ;;  %v3526_v34 = vpack.c.bf16 %v8303_v59, %v8303_v59 }
 0x8bc   : > { %2635 = vrot.lane.b32.xlu2 %v2591_v56, %s6157_s6  ;;  %4391 = vmatmul.bf16.gmra.mxu0 %v4227_v31  ;;  %v3535_v24 = vpack.c.bf16 %v3518_v12, %v3518_v12 }
 0x8bd   : > { %4440 = vmatmul.bf16.gmra.mxu1 %v4228_v30 }
 0x8bf   : > { %v4377_v55 = vpop.f32.mrf.mxu0 }
 0x8c0   : > { %v4426_v45 = vpop.f32.mrf.mxu1  ;;  %v4158_v29 = vpop.xlane.xlu0 %4157 }
 0x8c1   : > { %v4427_v18 = vadd.f32 %v4426_v45, %v4377_v55  ;;  %6094 = vrcp.f32 %v4158_v29  ;;  %v2562_v55 = vadd.f32 %v8800_v9, %v8799_v62 }
 0x8c3   : > { %v4463_v38 = vpack.c.bf16 %v4427_v18, %v4427_v18  ;;  %v2588_v11 = vpack.c.bf16 %v2562_v55, %v2562_v55 }
 0x8c4   : > { %3578 = vrot.lane.b32.xlu2 %v3533_v39, %s6158_s7  ;;  %v8801_v39 = vld [vmem:[#allocation18_spill] sm:$0xff] }
 0x8c5   : > { %4497 = vrot.lane.b32.xlu0 %v4463_v38, %s6159_s8  ;;  %v2579_v38 = vpack.c.bf16 %v8801_v39, %v8801_v39 }
 0x8c7   : > { %v6095_v46 = vpop.eup %6094  ;;  %v4164_v54 = vpop.xlane.xlu2 %4163 }
 0x8c8   : > { %v4379_v1 = vpop.f32.mrf.mxu0  ;;  %v4428_v5 = vpop.f32.mrf.mxu1  ;;  %v4209_v2 = vmul.f32 %v6095_v46, %v8325_v7  ;;  %v4210_v50 = vmul.f32 %v6095_v46, %v8327_v26  ;;  %6096 = vrcp.f32 %v4164_v54 }
 0x8c9   : > { %v4429_v41 = vadd.f32 %v4428_v5, %v4379_v1  ;;  %v4161_v47 = vpop.xlane.xlu1 %4160 }
 0x8ca   : > { %v4229_v6 = vpack.c.bf16 %v4209_v2, %v4207_v16  ;;  %v4230_v17 = vpack.c.bf16 %v4210_v50, %v4208_v3  ;;  %6098 = vrcp.f32 %v4161_v47  ;;  %v3528_v3 = vpack.c.bf16 %v8370_v22, %v8370_v22  ;;  %v8802_v47 = vld [vmem:[#allocation29_spill] sm:$0xff] }
 0x8cb   : > { %v4464_v43 = vpack.c.bf16 %v4429_v41, %v4429_v41 }
 0x8cc   : > { %2639 = vrot.lane.b32.xlu2 %v2593_v37, %s6157_s6  ;;  %4396 = vmatmul.bf16.gmra.mxu0 %v4229_v6  ;;  %v8803_v6 = vld [vmem:[#allocation32_spill] sm:$0xff] }
 0x8cd   : > { %4445 = vmatmul.bf16.gmra.mxu1 %v4230_v17  ;;  %4499 = vrot.lane.b32.xlu1 %v4464_v43, %s6159_s8  ;;  %v2567_v17 = vadd.f32 %v8803_v6, %v8802_v47 }
 0x8ce   : > { %2625 = vrot.lane.b32.xlu0 %v2586_v0, %s6157_s6  ;;  %v6097_v44 = vpop.eup %6096 }
 0x8cf   : > { %v2616_v58 = vpop.permute.xlu2 %2615  ;;  %v4213_v19 = vmul.f32 %v6097_v44, %v8337_v13  ;;  %v4214_v30 = vmul.f32 %v6097_v44, %v8339_v53  ;;  %v4167_v29 = vpop.xlane.xlu0 %4166  ;;  %v3483_v53 = vadd.f32 %v8259_v8, %v8257_v35 }
 0x8d0   : > { %2662 = vst.msk [vmem:[#allocation5 + $0x8] sm:$0xf] %vm2659_vm4, %v2616_v58  ;;  %v4382_v25 = vpop.f32.mrf.mxu0  ;;  %v4431_v7 = vpop.f32.mrf.mxu1  ;;  %6100 = vrcp.f32 %v4167_v29 }
 0x8d1   : > { %v4432_v26 = vadd.f32 %v4431_v7, %v4382_v25  ;;  %v6099_v42 = vpop.eup %6098  ;;  %v3521_v5 = vpack.c.bf16 %v3483_v53, %v3483_v53 }
 0x8d2   : > { %v4211_v4 = vmul.f32 %v6099_v42, %v8341_v52  ;;  %v4212_v31 = vmul.f32 %v6099_v42, %v8345_v48  ;;  %v4170_v52 = vpop.xlane.xlu1 %4169 }
 0x8d3   : > { %v4465_v14 = vpack.c.bf16 %v4432_v26, %v4432_v26  ;;  %6102 = vrcp.f32 %v4170_v52  ;;  %v5653_v26 = vld [vmem:[%s8648_s3 + $0x8] sm:$0xff]  ;;  %v2572_v52 = vadd.f32 %v8239_v15, %v8237_v63 }
 0x8d4   : > { %3582 = vrot.lane.b32.xlu2 %v3535_v24, %s6158_s7  ;;  %v4231_v23 = vpack.c.bf16 %v4213_v19, %v4211_v4  ;;  %v4232_v46 = vpack.c.bf16 %v4214_v30, %v4212_v31  ;;  %5668 = vmatpush.bf16.msra.mxu2 %v5653_v26  ;;  %v3530_v24 = vpack.c.bf16 %v8387_v49, %v8387_v49  ;;  %v5652_v49 = vld [vmem:[%s8648_s3] sm:$0xff] }
 0x8d5   : > { %3564 = vrot.lane.b32.xlu1 %v3526_v34, %s6158_s7  ;;  %4665 = vmatpush.bf16.msra.mxu0 %v5653_v26 }
 0x8d6   : > { %4501 = vrot.lane.b32.xlu0 %v4465_v14, %s6159_s8  ;;  %v6101_v1 = vpop.eup %6100 }
 0x8d7   : > { %v2620_v56 = vpop.permute.xlu2 %2619  ;;  %v4215_v35 = vmul.f32 %v6101_v1, %v8354_v57  ;;  %v4216_v37 = vmul.f32 %v6101_v1, %v8356_v20  ;;  %v2590_v20 = vpack.c.bf16 %v2567_v17, %v2567_v17  ;;  %v3532_v1 = vpack.c.bf16 %v8396_v40, %v8396_v40 }
 0x8d8   : > { %2664 = vst.msk [vmem:[#allocation5 + $0x10] sm:$0xf] %vm2659_vm4, %v2620_v56  ;;  %v4384_v59 = vpop.f32.mrf.mxu0  ;;  %v4433_v45 = vpop.f32.mrf.mxu1  ;;  %5669 = vmatpush.bf16.msra.mxu2 %v5652_v49  ;;  %v3534_v17 = vpack.c.bf16 %v8402_v27, %v8402_v27 }
 0x8d9   : > { %v4434_v18 = vadd.f32 %v4433_v45, %v4384_v59  ;;  %v6103_v2 = vpop.eup %6102  ;;  %4666 = vmatpush.bf16.msra.mxu0 %v5652_v49 }
 0x8da   : > { %v4217_v8 = vmul.f32 %v6103_v2, %v8347_v60  ;;  %v4218_v22 = vmul.f32 %v6103_v2, %v8351_v21 }
 0x8db   : > { %v4466_v13 = vpack.c.bf16 %v4434_v18, %v4434_v18 }
 0x8dc   : > { %2611 = vrot.lane.b32.xlu2 %v2579_v38, %s6157_s6  ;;  %4401 = vmatmul.bf16.gmra.mxu0 %v4231_v23  ;;  %v4233_v57 = vpack.c.bf16 %v4217_v8, %v4215_v35  ;;  %v4234_v60 = vpack.c.bf16 %v4218_v22, %v4216_v37 }
 0x8dd   : > { %4450 = vmatmul.bf16.gmra.mxu1 %v4232_v46  ;;  %4503 = vrot.lane.b32.xlu1 %v4466_v13, %s6159_s8 }
 0x8de   : > { %2629 = vrot.lane.b32.xlu0 %v2588_v11, %s6157_s6  ;;  %v2592_v11 = vpack.c.bf16 %v2572_v52, %v2572_v52 }
 0x8df   : > { %v3559_v48 = vpop.permute.xlu2 %3558 }
 0x8e0   : > { %v4387_v32 = vpop.f32.mrf.mxu0  ;;  %v4436_v33 = vpop.f32.mrf.mxu1 }
 0x8e1   : > { %v4437_v54 = vadd.f32 %v4436_v33, %v4387_v32 }
 0x8e2   : > { %v2618_v16 = vpop.permute.xlu0 %2617 }
 0x8e3   : > { %v4467_v50 = vpack.c.bf16 %v4437_v54, %v4437_v54  ;;  %2663 = vst.msk [vmem:[#allocation5 + $0xc] sm:$0xf] %vm2659_vm4, %v2618_v16 }
 0x8e4   : > { %3554 = vrot.lane.b32.xlu2 %v3521_v5, %s6158_s7  ;;  %3604 = vst.msk [vmem:[#allocation5 + $0xc] sm:$0xf] %vm3600_vm5, %v3559_v48 }
 0x8e5   : > { %3568 = vrot.lane.b32.xlu1 %v3528_v3, %s6158_s7  ;;  %v2577_v3 = vadd.f32 %v8249_v51, %v8247_v28 }
 0x8e6   : > { %4505 = vrot.lane.b32.xlu0 %v4467_v50, %s6159_s8 }
 0x8e7   : > { %v2624_v41 = vpop.permute.xlu2 %2623  ;;  %v2594_v40 = vpack.c.bf16 %v2577_v3, %v2577_v3 }
 0x8e8   : > { %2666 = vst.msk [vmem:[#allocation5 + $0x18] sm:$0xf] %vm2659_vm4, %v2624_v41  ;;  %v4389_v43 = vpop.f32.mrf.mxu0  ;;  %v4438_v0 = vpop.f32.mrf.mxu1 }
 0x8e9   : > { %v4439_v12 = vadd.f32 %v4438_v0, %v4389_v43  ;;  %v3557_v58 = vpop.permute.xlu1 %3556 }
 0x8ea   : > { %3603 = vst.msk [vmem:[#allocation5 + $0x8] sm:$0xf] %vm3600_vm5, %v3557_v58  ;;  %v2622_v25 = vpop.permute.xlu0 %2621  ;;  %v8804_v58 = vld [vmem:[#allocation21_spill] sm:$0xff] }
 0x8eb   : > { %v4468_v7 = vpack.c.bf16 %v4439_v12, %v4439_v12  ;;  %2665 = vst.msk [vmem:[#allocation5 + $0x14] sm:$0xf] %vm2659_vm4, %v2622_v25  ;;  %v8805_v25 = vld [vmem:[#allocation9_spill] sm:$0xff] }
 0x8ec   : > { %4406 = vmatmul.bf16.gmra.mxu0 %v4233_v57  ;;  %v2542_v57 = vadd.f32 %v8805_v25, %v8804_v58 }
 0x8ed   : > { %4455 = vmatmul.bf16.gmra.mxu1 %v4234_v60  ;;  %4507 = vrot.lane.b32.xlu1 %v4468_v7, %s6159_s8 }
 0x8ee   : > { %2633 = vrot.lane.b32.xlu0 %v2590_v20, %s6157_s6  ;;  %v2580_v20 = vpack.c.bf16 %v2542_v57, %v2542_v57 }
 0x8ef   : > { %v3563_v21 = vpop.permute.xlu2 %3562 }
 0x8f0   : > { %3606 = vst.msk [vmem:[#allocation5 + $0x14] sm:$0xf] %vm3600_vm5, %v3563_v21 }
 0x8f1   : > { %v3561_v44 = vpop.permute.xlu1 %3560 }
 0x8f2   : > { %3605 = vst.msk [vmem:[#allocation5 + $0x10] sm:$0xf] %vm3600_vm5, %v3561_v44 }
 0x8f5   : > { %3572 = vrot.lane.b32.xlu1 %v3530_v24, %s6158_s7 }
 0x8f7   : > { %v3567_v42 = vpop.permute.xlu2 %3566 }
 0x8ff   : > { %v2628_v34 = vpop.permute.xlu2 %2627 }
 0x900   : > { %2668 = vst.msk [vmem:[#allocation5 + $0x20] sm:$0xf] %vm2659_vm4, %v2628_v34 }
 0x907   : > { %v3571_v14 = vpop.permute.xlu2 %3570 }
 0x90f   : > { %v2632_v4 = vpop.permute.xlu2 %2631 }
 0x910   : > { %2670 = vst.msk [vmem:[#allocation5 + $0x28] sm:$0xf] %vm2659_vm4, %v2632_v4 }
 0x917   : > { %v8488_v19 = vpop.permute.xlu2 %3574 }
 0x91f   : > { %v2636_v56 = vpop.permute.xlu2 %2635 }
 0x920   : > { %2672 = vst.msk [vmem:[#allocation5 + $0x30] sm:$0xf] %vm2659_vm4, %v2636_v56 }
 0x927   : > { %v8491_v31 = vpop.permute.xlu2 %3578 }
 0x92f   : > { %v2640_v30 = vpop.permute.xlu2 %2639 }
 0x930   : > { %2674 = vst.msk [vmem:[#allocation5 + $0x38] sm:$0xf] %vm2659_vm4, %v2640_v30  ;;  %v4461_v30 = vpack.c.bf16 %v8413_v36, %v8413_v36 }
 0x937   : > { %v4498_v62 = vpop.permute.xlu0 %4497  ;;  %v8497_v9 = vpop.permute.xlu2 %3582 }
 0x938   : > { %4544 = vst.msk [vmem:[#allocation5 + $0x8] sm:$0xf] %vm4541_vm6, %v4498_v62 }
 0x939   : > { %v4392_v55 = vpop.f32.mrf.mxu0 }
 0x93a   : > { %v4441_v59 = vpop.f32.mrf.mxu1 }
 0x93b   : > { %v4442_v45 = vadd.f32 %v4441_v59, %v4392_v55  ;;  %v4462_v55 = vpack.c.bf16 %v8417_v10, %v8417_v10 }
 0x93d   : > { %v4469_v29 = vpack.c.bf16 %v4442_v45, %v4442_v45 }
 0x93f   : > { %4509 = vrot.lane.b32.xlu0 %v4469_v29, %s6159_s8  ;;  %v2612_v18 = vpop.permute.xlu2 %2611  ;;  %v4500_v39 = vpop.permute.xlu1 %4499 }
 0x940   : > { %2660 = vst.msk [vmem:[#allocation5] sm:$0xf] %vm2659_vm4, %v2612_v18  ;;  %v2626_v38 = vpop.permute.xlu0 %2625 }
 0x941   : > { %2667 = vst.msk [vmem:[#allocation5 + $0x1c] sm:$0xf] %vm2659_vm4, %v2626_v38  ;;  %v4394_v23 = vpop.f32.mrf.mxu0 }
 0x942   : > { %3608 = vst.msk [vmem:[#allocation5 + $0x1c] sm:$0xf] %vm3600_vm5, %v3567_v42  ;;  %v4443_v13 = vpop.f32.mrf.mxu1 }
 0x943   : > { %4545 = vst.msk [vmem:[#allocation5 + $0xc] sm:$0xf] %vm4541_vm6, %v4500_v39  ;;  %v4444_v46 = vadd.f32 %v4443_v13, %v4394_v23 }
 0x945   : > { %v4470_v53 = vpack.c.bf16 %v4444_v46, %v4444_v46 }
 0x947   : > { %2637 = vrot.lane.b32.xlu0 %v2592_v11, %s6157_s6  ;;  %4511 = vrot.lane.b32.xlu1 %v4470_v53, %s6159_s8  ;;  %v3565_v48 = vpop.permute.xlu1 %3564 }
 0x948   : > { %v4502_v32 = vpop.permute.xlu0 %4501  ;;  %3607 = vst.msk [vmem:[#allocation5 + $0x18] sm:$0xf] %vm3600_vm5, %v3565_v48 }
 0x949   : > { %4546 = vst.msk [vmem:[#allocation5 + $0x10] sm:$0xf] %vm4541_vm6, %v4502_v32  ;;  %v4397_v15 = vpop.f32.mrf.mxu0  ;;  %v3555_v32 = vpop.permute.xlu2 %3554 }
 0x94a   : > { %v4446_v63 = vpop.f32.mrf.mxu1  ;;  %v5645_v33 = vld [vmem:[#allocation5 + $0x8] sm:$0xff] }
 0x94b   : > { %v4447_v54 = vadd.f32 %v4446_v63, %v4397_v15  ;;  %5496 = vmatmul.msk.bf16.vlgmr.msra.gmra.mxu2 %vm4634_vm7, %v5645_v33 }
 0x94d   : > { %v4471_v5 = vpack.c.bf16 %v4447_v54, %v4447_v54 }
 0x94f   : > { %3576 = vrot.lane.b32.xlu1 %v3532_v1, %s6158_s7  ;;  %4513 = vrot.lane.b32.xlu0 %v4471_v5, %s6159_s8  ;;  %v4504_v16 = vpop.permute.xlu1 %4503 }
 0x950   : > { %v2630_v2 = vpop.permute.xlu0 %2629  ;;  %4547 = vst.msk [vmem:[#allocation5 + $0x14] sm:$0xf] %vm4541_vm6, %v4504_v16 }
 0x951   : > { %2669 = vst.msk [vmem:[#allocation5 + $0x24] sm:$0xf] %vm2659_vm4, %v2630_v2  ;;  %v4399_v50 = vpop.f32.mrf.mxu0 }
 0x952   : > { %3610 = vst.msk [vmem:[#allocation5 + $0x24] sm:$0xf] %vm3600_vm5, %v3571_v14  ;;  %v4448_v35 = vpop.f32.mrf.mxu1  ;;  %v3520_v14 = vpack.c.bf16 %v8251_v61, %v8251_v61 }
 0x953   : > { %v4449_v8 = vadd.f32 %v4448_v35, %v4399_v50 }
 0x955   : > { %v4472_v41 = vpack.c.bf16 %v4449_v8, %v4449_v8 }
 0x957   : > { %2641 = vrot.lane.b32.xlu0 %v2594_v40, %s6157_s6  ;;  %4515 = vrot.lane.b32.xlu1 %v4472_v41, %s6159_s8  ;;  %v3569_v37 = vpop.permute.xlu1 %3568  ;;  %v5646_v47 = vld [vmem:[#allocation5 + $0x10] sm:$0xff] }
 0x958   : > { %v4506_v22 = vpop.permute.xlu0 %4505  ;;  %3609 = vst.msk [vmem:[#allocation5 + $0x20] sm:$0xf] %vm3600_vm5, %v3569_v37 }
 0x959   : > { %4548 = vst.msk [vmem:[#allocation5 + $0x18] sm:$0xf] %vm4541_vm6, %v4506_v22  ;;  %v4402_v28 = vpop.f32.mrf.mxu0 }
 0x95a   : > { %v4451_v51 = vpop.f32.mrf.mxu1 }
 0x95b   : > { %v4452_v6 = vadd.f32 %v4451_v51, %v4402_v28  ;;  %5497 = vmatmul.msk.bf16.gmra.mxu2 %vm4634_vm7, %v5646_v47 }
 0x95d   : > { %v4473_v43 = vpack.c.bf16 %v4452_v6, %v4452_v6 }
 0x95f   : > { %3580 = vrot.lane.b32.xlu1 %v3534_v17, %s6158_s7  ;;  %4517 = vrot.lane.b32.xlu0 %v4473_v43, %s6159_s8  ;;  %v4508_v0 = vpop.permute.xlu1 %4507 }
 0x960   : > { %v2634_v12 = vpop.permute.xlu0 %2633  ;;  %4549 = vst.msk [vmem:[#allocation5 + $0x1c] sm:$0xf] %vm4541_vm6, %v4508_v0 }
 0x961   : > { %2671 = vst.msk [vmem:[#allocation5 + $0x2c] sm:$0xf] %vm2659_vm4, %v2634_v12  ;;  %v4404_v7 = vpop.f32.mrf.mxu0 }
 0x962   : > { %3612 = vst.msk [vmem:[#allocation5 + $0x2c] sm:$0xf] %vm3600_vm5, %v8488_v19  ;;  %v4453_v60 = vpop.f32.mrf.mxu1 }
 0x963   : > { %v4454_v27 = vadd.f32 %v4453_v60, %v4404_v7 }
 0x965   : > { %v4474_v21 = vpack.c.bf16 %v4454_v27, %v4454_v27 }
 0x967   : > { %2613 = vrot.lane.b32.xlu0 %v2580_v20, %s6157_s6  ;;  %4519 = vrot.lane.b32.xlu1 %v4474_v21, %s6159_s8  ;;  %v3573_v26 = vpop.permute.xlu1 %3572  ;;  %v5647_v44 = vld [vmem:[#allocation5 + $0x18] sm:$0xff] }
 0x968   : > { %3611 = vst.msk [vmem:[#allocation5 + $0x28] sm:$0xf] %vm3600_vm5, %v3573_v26 }
 0x969   : > { %v4407_v24 = vpop.f32.mrf.mxu0 }
 0x96a   : > { %v4456_v42 = vpop.f32.mrf.mxu1 }
 0x96b   : > { %v4457_v34 = vadd.f32 %v4456_v42, %v4407_v24  ;;  %5498 = vmatmul.msk.bf16.gmra.mxu2 %vm4634_vm7, %v5647_v44 }
 0x96d   : > { %v4475_v4 = vpack.c.bf16 %v4457_v34, %v4457_v34 }
 0x96f   : > { %3552 = vrot.lane.b32.xlu1 %v3520_v14, %s6158_s7  ;;  %4521 = vrot.lane.b32.xlu0 %v4475_v4, %s6159_s8 }
 0x971   : > { %v4409_v19 = vpop.f32.mrf.mxu0 }
 0x972   : > { %v4458_v56 = vpop.f32.mrf.mxu1 }
 0x973   : > { %v4459_v49 = vadd.f32 %v4458_v56, %v4409_v19 }
 0x975   : > { %v4476_v62 = vpack.c.bf16 %v4459_v49, %v4459_v49 }
 0x977   : > { %4493 = vrot.lane.b32.xlu0 %v4461_v30, %s6159_s8  ;;  %4523 = vrot.lane.b32.xlu1 %v4476_v62, %s6159_s8 }
 0x97f   : > { %4495 = vrot.lane.b32.xlu1 %v4462_v55, %s6159_s8 }
 0x9b1   : > { %v4510_v61 = vpop.permute.xlu0 %4509 }
 0x9b2   : > { %4550 = vst.msk [vmem:[#allocation5 + $0x20] sm:$0xf] %vm4541_vm6, %v4510_v61 }
 0x9b9   : > { %v2638_v59 = vpop.permute.xlu0 %2637  ;;  %v4512_v45 = vpop.permute.xlu1 %4511 }
 0x9ba   : > { %2673 = vst.msk [vmem:[#allocation5 + $0x34] sm:$0xf] %vm2659_vm4, %v2638_v59 }
 0x9bb   : > { %3614 = vst.msk [vmem:[#allocation5 + $0x34] sm:$0xf] %vm3600_vm5, %v8491_v31  ;;  %v8566_v31 = vld [vmem:[%s8649_s4] ss:$0 sm:$0xff] }
 0x9bc   : > { %4551 = vst.msk [vmem:[#allocation5 + $0x24] sm:$0xf] %vm4541_vm6, %v4512_v45 }
 0x9c1   : > { %v4514_v36 = vpop.permute.xlu0 %4513  ;;  %v3577_v29 = vpop.permute.xlu1 %3576 }
 0x9c2   : > { %4552 = vst.msk [vmem:[#allocation5 + $0x28] sm:$0xf] %vm4541_vm6, %v4514_v36 }
 0x9c3   : > { %3613 = vst.msk [vmem:[#allocation5 + $0x30] sm:$0xf] %vm3600_vm5, %v3577_v29  ;;  %v5648_v10 = vld [vmem:[#allocation5 + $0x20] sm:$0xff] }
 0x9c4   : > { %5499 = vmatmul.msk.bf16.gmra.mxu2 %vm4634_vm7, %v5648_v10 }
 0x9c9   : > { %v2642_v18 = vpop.permute.xlu0 %2641  ;;  %v4516_v39 = vpop.permute.xlu1 %4515 }
 0x9ca   : > { %2675 = vst.msk [vmem:[#allocation5 + $0x3c] sm:$0xf] %vm2659_vm4, %v2642_v18 }
 0x9cb   : > { %3616 = vst.msk [vmem:[#allocation5 + $0x3c] sm:$0xf] %vm3600_vm5, %v8497_v9 }
 0x9cc   : > { %4553 = vst.msk [vmem:[#allocation5 + $0x2c] sm:$0xf] %vm4541_vm6, %v4516_v39 }
 0x9ce   : > { %v4673_v38 = vpop.f32.mrf.mxu2 }
 0x9cf   : > { %v4674_v52 = vadd.f32 %v8566_v31, %v4673_v38 }
 0x9d1   : > { %v4518_v23 = vpop.permute.xlu0 %4517  ;;  %v3581_v13 = vpop.permute.xlu1 %3580  ;;  %4710 = vst.msk [vmem:[%s6231_s10 + $0x10] sm:$0xff] %vm4634_vm7, %v4674_v52 }
 0x9d2   : > { %4554 = vst.msk [vmem:[#allocation5 + $0x30] sm:$0xf] %vm4541_vm6, %v4518_v23 }
 0x9d3   : > { %v5649_v46 = vld [vmem:[#allocation5 + $0x28] sm:$0xff]  ;;  %3615 = vst.msk [vmem:[#allocation5 + $0x38] sm:$0xf] %vm3600_vm5, %v3581_v13 }
 0x9d4   : > { %5500 = vmatmul.msk.bf16.gmra.mxu2 %vm4634_vm7, %v5649_v46 }
 0x9d6   : > { %v4675_v9 = vpop.f32.mrf.mxu2 }
 0x9d7   : > { %v4676_v11 = vadd.f32 %v8566_v31, %v4675_v9 }
 0x9d9   : > { %v2614_v53 = vpop.permute.xlu0 %2613  ;;  %v4520_v48 = vpop.permute.xlu1 %4519  ;;  %4711 = vst.msk [vmem:[%s6231_s10 + $0x18] sm:$0xff] %vm4634_vm7, %v4676_v11 }
 0x9da   : > { %2661 = vst.msk [vmem:[#allocation5 + $0x4] sm:$0xf] %vm2659_vm4, %v2614_v53 }
 0x9db   : > { %3602 = vst.msk [vmem:[#allocation5 + $0x4] sm:$0xf] %vm3600_vm5, %v3555_v32 }
 0x9dc   : > { %4555 = vst.msk [vmem:[#allocation5 + $0x34] sm:$0xf] %vm4541_vm6, %v4520_v48 }
 0x9de   : > { %v4678_v15 = vpop.f32.mrf.mxu2 }
 0x9df   : > { %v4679_v63 = vadd.f32 %v8566_v31, %v4678_v15 }
 0x9e1   : > { %v4522_v33 = vpop.permute.xlu0 %4521  ;;  %v3553_v54 = vpop.permute.xlu1 %3552  ;;  %4712 = vst.msk [vmem:[%s6231_s10 + $0x20] sm:$0xff] %vm4634_vm7, %v4679_v63 }
 0x9e2   : > { %4556 = vst.msk [vmem:[#allocation5 + $0x38] sm:$0xf] %vm4541_vm6, %v4522_v33 }
 0x9e3   : > { %3601 = vst.msk [vmem:[#allocation5] sm:$0xf] %vm3600_vm5, %v3553_v54  ;;  %v5650_v1 = vld [vmem:[#allocation5 + $0x30] sm:$0xff] }
 0x9e4   : > { %5501 = vmatmul.msk.bf16.gmra.mxu2 %vm4634_vm7, %v5650_v1 }
 0x9e6   : > { %v4680_v5 = vpop.f32.mrf.mxu2 }
 0x9e7   : > { %v4681_v16 = vadd.f32 %v8566_v31, %v4680_v5 }
 0x9e9   : > { %v4494_v2 = vpop.permute.xlu0 %4493  ;;  %v4524_v3 = vpop.permute.xlu1 %4523  ;;  %4713 = vst.msk [vmem:[%s6231_s10 + $0x28] sm:$0xff] %vm4634_vm7, %v4681_v16 }
 0x9ea   : > { %4542 = vst.msk [vmem:[#allocation5] sm:$0xf] %vm4541_vm6, %v4494_v2 }
 0x9eb   : > { %4557 = vst.msk [vmem:[#allocation5 + $0x3c] sm:$0xf] %vm4541_vm6, %v4524_v3 }
 0x9ee   : > { %v4683_v50 = vpop.f32.mrf.mxu2 }
 0x9ef   : > { %v4684_v35 = vadd.f32 %v8566_v31, %v4683_v50 }
 0x9f1   : > { %v4496_v8 = vpop.permute.xlu1 %4495  ;;  %4714 = vst.msk [vmem:[%s6231_s10 + $0x30] sm:$0xff] %vm4634_vm7, %v4684_v35 }
 0x9f2   : > { %4543 = vst.msk [vmem:[#allocation5 + $0x4] sm:$0xf] %vm4541_vm6, %v4496_v8  ;;  %v5651_v40 = vld [vmem:[#allocation5 + $0x38] sm:$0xff] }
 0x9f4   : > { %5502 = vmatmul.msk.bf16.gmra.mxu2 %vm4634_vm7, %v5651_v40 }
 0x9f6   : > { %v4685_v41 = vpop.f32.mrf.mxu2 }
 0x9f7   : > { %v4686_v37 = vadd.f32 %v8566_v31, %v4685_v41 }
 0x9f9   : > { %4715 = vst.msk [vmem:[%s6231_s10 + $0x38] sm:$0xff] %vm4634_vm7, %v4686_v37  ;;  %v5644_v22 = vld [vmem:[#allocation5] sm:$0xff] }
 0x9fa   : > { %5495 = vmatmul.msk.bf16.vlgmr.msra.gmra.mxu0 %vm4634_vm7, %v5644_v22 }
 0xa47   : > { %v4688_v47 = vpop.f32.mrf.mxu2 }
 0xa48   : > { %v4689_v28 = vadd.f32 %v8566_v31, %v4688_v47 }
 0xa4a   : > { %4716 = vst.msk [vmem:[%s6231_s10 + $0x40] sm:$0xff] %vm4634_vm7, %v4689_v28 }
 0xa4f   : > { %v4690_v51 = vpop.f32.mrf.mxu2 }
 0xa50   : > { %v4691_v6 = vadd.f32 %v8566_v31, %v4690_v51 }
 0xa52   : > { %4717 = vst.msk [vmem:[%s6231_s10 + $0x48] sm:$0xff] %vm4634_vm7, %v4691_v6 }
 0xa57   : > { %v4693_v17 = vpop.f32.mrf.mxu2 }
 0xa58   : > { %v4694_v43 = vadd.f32 %v8566_v31, %v4693_v17 }
 0xa5a   : > { %4718 = vst.msk [vmem:[%s6231_s10 + $0x50] sm:$0xff] %vm4634_vm7, %v4694_v43 }
 0xa5f   : > { %v4695_v0 = vpop.f32.mrf.mxu2 }
 0xa60   : > { %v4696_v12 = vadd.f32 %v8566_v31, %v4695_v0 }
 0xa62   : > { %4719 = vst.msk [vmem:[%s6231_s10 + $0x58] sm:$0xff] %vm4634_vm7, %v4696_v12 }
 0xa67   : > { %v4698_v58 = vpop.f32.mrf.mxu2 }
 0xa68   : > { %v4699_v25 = vadd.f32 %v8566_v31, %v4698_v58 }
 0xa6a   : > { %4720 = vst.msk [vmem:[%s6231_s10 + $0x60] sm:$0xff] %vm4634_vm7, %v4699_v25 }
 0xa6f   : > { %v4700_v57 = vpop.f32.mrf.mxu2 }
 0xa70   : > { %v4701_v7 = vadd.f32 %v8566_v31, %v4700_v57 }
 0xa72   : > { %4721 = vst.msk [vmem:[%s6231_s10 + $0x68] sm:$0xff] %vm4634_vm7, %v4701_v7 }
 0xa77   : > { %v4703_v60 = vpop.f32.mrf.mxu2  ;;  %v4668_v27 = vpop.f32.mrf.mxu0 }
 0xa78   : > { %v4704_v20 = vadd.f32 %v8566_v31, %v4703_v60  ;;  %v4669_v21 = vadd.f32 %v8566_v31, %v4668_v27 }
 0xa7a   : > { %4722 = vst.msk [vmem:[%s6231_s10 + $0x70] sm:$0xff] %vm4634_vm7, %v4704_v20 }
 0xa7b   : > { %4708 = vst.msk [vmem:[%s6231_s10] sm:$0xff] %vm4634_vm7, %v4669_v21 }
 0xa7f   : > { %v4705_v26 = vpop.f32.mrf.mxu2  ;;  %v4670_v44 = vpop.f32.mrf.mxu0 }
 0xa80   : > { %v4706_v24 = vadd.f32 %v8566_v31, %v4705_v26  ;;  %v4671_v42 = vadd.f32 %v8566_v31, %v4670_v44 }
 0xa82   : > { %4723 = vst.msk [vmem:[%s6231_s10 + $0x78] sm:$0xff] %vm4634_vm7, %v4706_v24 }
 0xa83   : > { %4709 = vst.msk [vmem:[%s6231_s10 + $0x8] sm:$0xff] %vm4634_vm7, %v4671_v42 }
 0xa84 PF: > { %s15_s22 = sadd.s32 1, %s6150_s22   ;;  %s8806_s18 = smov %s6142_s20 }
 0xa85   : > { %p12_p8 = scmp.ge.s32.totalorder %s15_s22, 6   ;;  %s8807_s19 = smov %s6146_s21 }
 0xa86   : > { %s8808_s20 = smov %s8811_s23  ;;  %s8809_s21 = smov %s8815_s24 }
 0xa87   :  { %14 = sbr.rel (!%p12_p8) target bundleno = 3 (0x3), region = 75 }

</bundles_post_ra>
